<compile_context>
chip_gen: v7x
topology: tpu7x:2x2x1
jax: 0.10.0
libtpu: 0.0.40
codegen_flags: <defaults>
</compile_context>

<pallas_src>
import jax
import jax.numpy as jnp
from jax.experimental import pallas as pl
from jax.experimental.pallas import tpu as pltpu


def _vmem():
    return pl.BlockSpec(memory_space=pltpu.MemorySpace.VMEM)


# ------------------------------ single fused forward kernel ------------------------------
def hybrid_kernel(x_ref, w1_ref, b1_ref, w2_ref, b2_ref,
                  wih1_ref, whh1_ref, bih1_ref, bhh1_ref,
                  wih2_ref, whh2_ref, bih2_ref, bhh2_ref,
                  wfc_ref, bfc_ref, wout_ref, bout_ref,
                  out_ref):
    f32 = jnp.float32
    L, B, _ = x_ref.shape                 # x: (L, B, 1) time-major, Cin=1
    K1, Co1 = w1_ref.shape
    T = L - K1 + 1                        # conv1: stride 1, pad 0
    H = whh1_ref.shape[0] // 2            # BiGRU hidden size per direction

    # --------- conv1 (Cin=1) with folded BN + ReLU, time-major output (T, B, Co1) ---------
    xv = x_ref[...]
    w1v = w1_ref[...]
    h1 = jnp.zeros((T, B, Co1), f32)
    for k in range(K1):                                        # static unroll over taps
        h1 = h1 + xv[k:k + T, :, :] * w1v[k:k + 1, :]          # (T,B,1)*(1,Co1) -> (T,B,Co1)
    h1 = jnp.maximum(h1 + b1_ref[...], 0.0)

    # --------- conv2 via in-kernel zero-pad + im2col -> single matmul, folded BN + ReLU ----
    C1 = Co1
    KC = w2_ref.shape[0]                                       # K2 * C1
    K2 = KC // C1
    pad2 = (K2 - 1) // 2                                       # stride 1, length-preserving
    if pad2 > 0:
        zrow = jnp.zeros((pad2, B, C1), f32)
        h1p = jnp.concatenate([zrow, h1, zrow], axis=0)        # (T + 2*pad2, B, C1)
    else:
        h1p = h1
    cols = jnp.concatenate([h1p[k:k + T] for k in range(K2)], axis=-1)   # (T, B, K2*C1)
    h2 = jnp.einsum('tbk,ko->tbo', cols, w2_ref[...],
                    preferred_element_type=f32) + b2_ref[...]
    h2 = jnp.maximum(h2, 0.0)                                  # (T, B, C2)

    # --------- fused bidirectional GRU layer -----------------------------------------------
    # Combined 6H column layout: [r_f r_b z_f z_b n_f n_b]; whh is block-diagonal over [hf|hb],
    # so one dot per timestep updates both directions' hidden states simultaneously.
    def bigru_layer(x_tbc, wih, whh, bih, bhh):
        gi = jnp.einsum('tbc,cg->tbg', x_tbc, wih,
                        preferred_element_type=f32) + bih      # (T, B, 6H): both directions
        hcat = jnp.zeros((B, 2 * H), f32)                      # [hf | hb]
        steps = []
        for s in range(T):                                     # fully unrolled recurrence
            tb = T - 1 - s
            gs = gi[s]                                         # fwd direction reads time s
            gt = gi[tb]                                        # bwd direction reads time T-1-s
            gi_step = jnp.concatenate(
                [gs[:, 0:H],         gt[:, H:2 * H],
                 gs[:, 2 * H:3 * H], gt[:, 3 * H:4 * H],
                 gs[:, 4 * H:5 * H], gt[:, 5 * H:6 * H]], axis=1)          # (B, 6H)
            gh = jnp.dot(hcat, whh, preferred_element_type=f32) + bhh     # (B, 6H)
            rz = jax.nn.sigmoid(gi_step[:, :4 * H] + gh[:, :4 * H])
            r = rz[:, :2 * H]
            z = rz[:, 2 * H:]
            # PyTorch GRU: hidden n-bias sits inside r*(.)
            n = jnp.tanh(gi_step[:, 4 * H:] + r * gh[:, 4 * H:])
            hcat = (1.0 - z) * n + z * hcat
            steps.append(hcat)
        return steps

    # ---- BiGRU 1: C2 -> 2H ----
    steps1 = bigru_layer(h2, wih1_ref[...], whh1_ref[...], bih1_ref[...], bhh1_ref[...])
    # time-ordered output: out1[t] = [hf(t), hb(t)]  (hb(t) was produced at step T-1-t)
    out1 = jnp.stack(
        [jnp.concatenate([steps1[t][:, :H], steps1[T - 1 - t][:, H:]], axis=1)
         for t in range(T)], axis=0)                            # (T, B, 2H)

    # ---- BiGRU 2: 2H -> 2H ----
    steps2 = bigru_layer(out1, wih2_ref[...], whh2_ref[...], bih2_ref[...], bhh2_ref[...])

    # ---- AdaptiveAvgPool1d(1) == mean over time; sum over steps is order-invariant ----
    acc = steps2[0]
    for s in range(1, T):
        acc = acc + steps2[s]
    pooled = acc * (1.0 / T)                                    # (B, 2H)

    # ---- head: Linear + ReLU + Linear ----
    hfc = jnp.maximum(
        jnp.dot(pooled, wfc_ref[...], preferred_element_type=f32) + bfc_ref[...], 0.0)
    out_ref[...] = jnp.dot(hfc, wout_ref[...], preferred_element_type=f32) + bout_ref[...]


# ------------------------------------------ wrapper --------------------------------------
@jax.jit
def hybrid_forward(x_ncl, params):
    # x_ncl: (B, 1, L) — PyTorch NCW layout for Conv1d.
    x_lb1 = jnp.transpose(x_ncl, (2, 0, 1)).astype(jnp.float32)   # (L, B, 1) time-major
    (w1, b1, w2, b2,
     wih1, whh1, bih1, bhh1,
     wih2, whh2, bih2, bhh2,
     wfc, bfc, wout, bout) = params
    B = x_ncl.shape[0]
    num_classes = wout.shape[1]
    return pl.pallas_call(
        hybrid_kernel,
        out_shape=jax.ShapeDtypeStruct((B, num_classes), jnp.float32),
        in_specs=[_vmem()] * 17,
        out_specs=_vmem(),
    )(x_lb1, w1, b1, w2, b2,
      wih1, whh1, bih1, bhh1,
      wih2, whh2, bih2, bhh2,
      wfc, bfc, wout, bout)


# ----------------------------------------- parameters ------------------------------------
def xavier_uniform(key, shape, fan_in, fan_out):
    a = (6.0 / (fan_in + fan_out)) ** 0.5
    return jax.random.uniform(key, shape, jnp.float32, -a, a)


def make_params(key, num_classes=5, hidden=32):
    H = hidden
    eps = 1e-5
    bn_scale = float(1.0 / (1.0 + eps) ** 0.5)   # eval-mode BN: mean=0, var=1, gamma=1, beta=0
    ks = jax.random.split(key, 8)

    # conv1: Conv1d(1, 8, k=2, s=1, p=0); Xavier weight, zero bias; BN folded into weight/bias
    K1, Ci1, Co1 = 2, 1, 8
    w1 = xavier_uniform(ks[0], (K1, Ci1, Co1), Ci1 * K1, Co1 * K1)
    w1f = (w1 * bn_scale).reshape(K1, Co1)
    b1f = jnp.zeros((1, Co1), jnp.float32)        # conv_bias*scale + shift == 0

    # conv2: Conv1d(8, 16, k=3, s=1, p=1); im2col weight row index = k*Cin + cin
    K2, Ci2, Co2 = 3, 8, 16
    w2 = xavier_uniform(ks[1], (K2, Ci2, Co2), Ci2 * K2, Co2 * K2)
    w2f = (w2 * bn_scale).reshape(K2 * Ci2, Co2)
    b2f = jnp.zeros((1, Co2), jnp.float32)

    # Per-direction GRU params (PyTorch default U(-1/sqrt(H), 1/sqrt(H)); gate order [r z n])
    def gru_dir(k, cin):
        k1, k2, k3, k4 = jax.random.split(k, 4)
        bound = 1.0 / (H ** 0.5)
        wih = jax.random.uniform(k1, (cin, 3 * H), jnp.float32, -bound, bound)
        whh = jax.random.uniform(k2, (H, 3 * H), jnp.float32, -bound, bound)
        bih = jax.random.uniform(k3, (1, 3 * H), jnp.float32, -bound, bound)
        bhh = jax.random.uniform(k4, (1, 3 * H), jnp.float32, -bound, bound)
        return wih, whh, bih, bhh

    def interleave(a_f, a_b):
        # per-direction columns [r z n] -> combined columns [r_f r_b z_f z_b n_f n_b]
        return jnp.concatenate(
            [a_f[:, 0:H], a_b[:, 0:H],
             a_f[:, H:2 * H], a_b[:, H:2 * H],
             a_f[:, 2 * H:3 * H], a_b[:, 2 * H:3 * H]], axis=1)

    def pack_bigru(kf, kb, cin):
        wih_f, whh_f, bih_f, bhh_f = gru_dir(kf, cin)
        wih_b, whh_b, bih_b, bhh_b = gru_dir(kb, cin)
        wih = interleave(wih_f, wih_b)                              # (cin, 6H)
        zf = jnp.zeros((H, 3 * H), jnp.float32)
        whh = interleave(jnp.concatenate([whh_f, zf], axis=0),      # block-diagonal (2H, 6H)
                         jnp.concatenate([zf, whh_b], axis=0))
        bih = interleave(bih_f, bih_b)                              # (1, 6H)
        bhh = interleave(bhh_f, bhh_b)
        return wih, whh, bih, bhh

    g1 = pack_bigru(ks[2], ks[3], Co2)       # BiGRU(16 -> 2*32)
    g2 = pack_bigru(ks[4], ks[5], 2 * H)     # BiGRU(64 -> 2*32)

    # head: Linear(2H, H) + ReLU + Linear(H, num_classes); Xavier weights, zero bias
    F = 2 * H
    w_fc = xavier_uniform(ks[6], (F, F // 2), F, F // 2)
    b_fc = jnp.zeros((1, F // 2), jnp.float32)
    w_out = xavier_uniform(ks[7], (F // 2, num_classes), F // 2, num_classes)
    b_out = jnp.zeros((1, num_classes), jnp.float32)

    return (w1f, b1f, w2f, b2f, *g1, *g2, w_fc, b_fc, w_out, b_out)


if __name__ == "__main__":
    key = jax.random.PRNGKey(0)
    k_x, k_p = jax.random.split(key)
    B, L, num_classes = 2, 16, 5
    x = jax.random.normal(k_x, (B, 1, L), jnp.float32)        # (batch, in_channels=1, length)
    params = make_params(k_p, num_classes=num_classes, hidden=32)

    out = hybrid_forward(x, params)
    out = jax.block_until_ready(out)
    assert out.shape == (B, num_classes), out.shape
    assert bool(jnp.all(jnp.isfinite(out)))
    print("KERNEL_OK")
</pallas_src>

<mosaic_0001>
module attributes {stable_mosaic.version = 11 : i64} {
  func.func @hybrid_kernel(%arg0: memref<16x2x1xf32, #tpu.memory_space<vmem>>, %arg1: memref<2x8xf32, #tpu.memory_space<vmem>>, %arg2: memref<1x8xf32, #tpu.memory_space<vmem>>, %arg3: memref<24x16xf32, #tpu.memory_space<vmem>>, %arg4: memref<1x16xf32, #tpu.memory_space<vmem>>, %arg5: memref<16x192xf32, #tpu.memory_space<vmem>>, %arg6: memref<64x192xf32, #tpu.memory_space<vmem>>, %arg7: memref<1x192xf32, #tpu.memory_space<vmem>>, %arg8: memref<1x192xf32, #tpu.memory_space<vmem>>, %arg9: memref<64x192xf32, #tpu.memory_space<vmem>>, %arg10: memref<64x192xf32, #tpu.memory_space<vmem>>, %arg11: memref<1x192xf32, #tpu.memory_space<vmem>>, %arg12: memref<1x192xf32, #tpu.memory_space<vmem>>, %arg13: memref<64x32xf32, #tpu.memory_space<vmem>>, %arg14: memref<1x32xf32, #tpu.memory_space<vmem>>, %arg15: memref<32x5xf32, #tpu.memory_space<vmem>>, %arg16: memref<1x5xf32, #tpu.memory_space<vmem>>, %arg17: memref<2x5xf32, #tpu.memory_space<vmem>>) attributes {dimension_semantics = [], scalar_prefetch = 0 : i64, scratch_operands = 0 : i64, tpu.core_type = #tpu.core_type<tc>} {
    %c0 = arith.constant 0 : index
    %c0_0 = arith.constant 0 : index
    %c0_1 = arith.constant 0 : index
    %0 = vector.load %arg0[%c0, %c0_0, %c0_1] : memref<16x2x1xf32, #tpu.memory_space<vmem>>, vector<16x2x1xf32>
    %c0_2 = arith.constant 0 : index
    %c0_3 = arith.constant 0 : index
    %1 = vector.load %arg1[%c0_2, %c0_3] : memref<2x8xf32, #tpu.memory_space<vmem>>, vector<2x8xf32>
    %cst = arith.constant 0.000000e+00 : f32
    %2 = vector.broadcast %cst : f32 to vector<15x2x8xf32>
    %3 = vector.extract_strided_slice %0 {offsets = [0, 0, 0], sizes = [15, 2, 1], strides = [1, 1, 1]} : vector<16x2x1xf32> to vector<15x2x1xf32>
    %4 = vector.extract_strided_slice %1 {offsets = [0, 0], sizes = [1, 8], strides = [1, 1]} : vector<2x8xf32> to vector<1x8xf32>
    %5 = vector.shape_cast %4 : vector<1x8xf32> to vector<1x1x8xf32>
    %6 = vector.broadcast %3 : vector<15x2x1xf32> to vector<15x2x8xf32>
    %7 = vector.broadcast %5 : vector<1x1x8xf32> to vector<15x2x8xf32>
    %8 = arith.mulf %6, %7 : vector<15x2x8xf32>
    %9 = arith.addf %2, %8 : vector<15x2x8xf32>
    %10 = vector.extract_strided_slice %0 {offsets = [1, 0, 0], sizes = [15, 2, 1], strides = [1, 1, 1]} : vector<16x2x1xf32> to vector<15x2x1xf32>
    %11 = vector.extract_strided_slice %1 {offsets = [1, 0], sizes = [1, 8], strides = [1, 1]} : vector<2x8xf32> to vector<1x8xf32>
    %12 = vector.shape_cast %11 : vector<1x8xf32> to vector<1x1x8xf32>
    %13 = vector.broadcast %10 : vector<15x2x1xf32> to vector<15x2x8xf32>
    %14 = vector.broadcast %12 : vector<1x1x8xf32> to vector<15x2x8xf32>
    %15 = arith.mulf %13, %14 : vector<15x2x8xf32>
    %16 = arith.addf %9, %15 : vector<15x2x8xf32>
    %c0_4 = arith.constant 0 : index
    %c0_5 = arith.constant 0 : index
    %17 = vector.load %arg2[%c0_4, %c0_5] : memref<1x8xf32, #tpu.memory_space<vmem>>, vector<1x8xf32>
    %18 = vector.shape_cast %17 : vector<1x8xf32> to vector<1x1x8xf32>
    %19 = vector.broadcast %18 : vector<1x1x8xf32> to vector<15x2x8xf32>
    %20 = arith.addf %16, %19 : vector<15x2x8xf32>
    %cst_6 = arith.constant 0.000000e+00 : f32
    %21 = vector.broadcast %cst_6 : f32 to vector<15x2x8xf32>
    %22 = arith.maximumf %20, %21 : vector<15x2x8xf32>
    %cst_7 = arith.constant 0.000000e+00 : f32
    %23 = vector.broadcast %cst_7 : f32 to vector<1x2x8xf32>
    %24 = tpu.concatenate %23, %22, %23 in 0 : vector<1x2x8xf32>, vector<15x2x8xf32>, vector<1x2x8xf32> -> vector<17x2x8xf32>
    %25 = vector.extract_strided_slice %24 {offsets = [0, 0, 0], sizes = [15, 2, 8], strides = [1, 1, 1]} : vector<17x2x8xf32> to vector<15x2x8xf32>
    %26 = vector.extract_strided_slice %24 {offsets = [1, 0, 0], sizes = [15, 2, 8], strides = [1, 1, 1]} : vector<17x2x8xf32> to vector<15x2x8xf32>
    %27 = vector.extract_strided_slice %24 {offsets = [2, 0, 0], sizes = [15, 2, 8], strides = [1, 1, 1]} : vector<17x2x8xf32> to vector<15x2x8xf32>
    %28 = tpu.concatenate %25, %26, %27 in 2 : vector<15x2x8xf32>, vector<15x2x8xf32>, vector<15x2x8xf32> -> vector<15x2x24xf32>
    %c0_8 = arith.constant 0 : index
    %c0_9 = arith.constant 0 : index
    %29 = vector.load %arg3[%c0_8, %c0_9] : memref<24x16xf32, #tpu.memory_space<vmem>>, vector<24x16xf32>
    "tpu.trace_start"() <{level = 10 : i32, message = "tbk,ko->tbo"}> : () -> ()
    %cst_10 = arith.constant dense<0.000000e+00> : vector<15x2x16xf32>
    %30 = tpu.matmul %28, %29, %cst_10 {dimension_numbers = #tpu.dot_dimension_numbers<[2], [0], [0, 1], [1], [0, 0, 0, 1, 1, 1], [], []>} : vector<15x2x24xf32>, vector<24x16xf32>, vector<15x2x16xf32> -> vector<15x2x16xf32>
    "tpu.trace_stop"() : () -> ()
    %c0_11 = arith.constant 0 : index
    %c0_12 = arith.constant 0 : index
    %31 = vector.load %arg4[%c0_11, %c0_12] : memref<1x16xf32, #tpu.memory_space<vmem>>, vector<1x16xf32>
    %32 = vector.shape_cast %31 : vector<1x16xf32> to vector<1x1x16xf32>
    %33 = vector.broadcast %32 : vector<1x1x16xf32> to vector<15x2x16xf32>
    %34 = arith.addf %30, %33 : vector<15x2x16xf32>
    %cst_13 = arith.constant 0.000000e+00 : f32
    %35 = vector.broadcast %cst_13 : f32 to vector<15x2x16xf32>
    %36 = arith.maximumf %34, %35 : vector<15x2x16xf32>
    %c0_14 = arith.constant 0 : index
    %c0_15 = arith.constant 0 : index
    %37 = vector.load %arg5[%c0_14, %c0_15] : memref<16x192xf32, #tpu.memory_space<vmem>>, vector<16x192xf32>
    %c0_16 = arith.constant 0 : index
    %c0_17 = arith.constant 0 : index
    %38 = vector.load %arg6[%c0_16, %c0_17] : memref<64x192xf32, #tpu.memory_space<vmem>>, vector<64x192xf32>
    %c0_18 = arith.constant 0 : index
    %c0_19 = arith.constant 0 : index
    %39 = vector.load %arg7[%c0_18, %c0_19] : memref<1x192xf32, #tpu.memory_space<vmem>>, vector<1x192xf32>
    %c0_20 = arith.constant 0 : index
    %c0_21 = arith.constant 0 : index
    %40 = vector.load %arg8[%c0_20, %c0_21] : memref<1x192xf32, #tpu.memory_space<vmem>>, vector<1x192xf32>
    "tpu.trace_start"() <{level = 10 : i32, message = "tbc,cg->tbg"}> : () -> ()
    %cst_22 = arith.constant dense<0.000000e+00> : vector<15x2x192xf32>
    %41 = tpu.matmul %36, %37, %cst_22 {dimension_numbers = #tpu.dot_dimension_numbers<[2], [0], [0, 1], [1], [0, 0, 0, 1, 1, 1], [], []>} : vector<15x2x16xf32>, vector<16x192xf32>, vector<15x2x192xf32> -> vector<15x2x192xf32>
    "tpu.trace_stop"() : () -> ()
    %42 = vector.shape_cast %39 : vector<1x192xf32> to vector<1x1x192xf32>
    %43 = vector.broadcast %42 : vector<1x1x192xf32> to vector<15x2x192xf32>
    %44 = arith.addf %41, %43 : vector<15x2x192xf32>
    %cst_23 = arith.constant 0.000000e+00 : f32
    %45 = vector.broadcast %cst_23 : f32 to vector<2x64xf32>
    %46 = vector.extract_strided_slice %44 {offsets = [0, 0, 0], sizes = [1, 2, 192], strides = [1, 1, 1]} : vector<15x2x192xf32> to vector<1x2x192xf32>
    %47 = vector.shape_cast %46 : vector<1x2x192xf32> to vector<2x192xf32>
    %48 = vector.extract_strided_slice %44 {offsets = [14, 0, 0], sizes = [1, 2, 192], strides = [1, 1, 1]} : vector<15x2x192xf32> to vector<1x2x192xf32>
    %49 = vector.shape_cast %48 : vector<1x2x192xf32> to vector<2x192xf32>
    %50 = vector.extract_strided_slice %47 {offsets = [0, 0], sizes = [2, 32], strides = [1, 1]} : vector<2x192xf32> to vector<2x32xf32>
    %51 = vector.extract_strided_slice %49 {offsets = [0, 32], sizes = [2, 32], strides = [1, 1]} : vector<2x192xf32> to vector<2x32xf32>
    %52 = vector.extract_strided_slice %47 {offsets = [0, 64], sizes = [2, 32], strides = [1, 1]} : vector<2x192xf32> to vector<2x32xf32>
    %53 = vector.extract_strided_slice %49 {offsets = [0, 96], sizes = [2, 32], strides = [1, 1]} : vector<2x192xf32> to vector<2x32xf32>
    %54 = vector.extract_strided_slice %47 {offsets = [0, 128], sizes = [2, 32], strides = [1, 1]} : vector<2x192xf32> to vector<2x32xf32>
    %55 = vector.extract_strided_slice %49 {offsets = [0, 160], sizes = [2, 32], strides = [1, 1]} : vector<2x192xf32> to vector<2x32xf32>
    %56 = tpu.concatenate %50, %51, %52, %53, %54, %55 in 1 : vector<2x32xf32>, vector<2x32xf32>, vector<2x32xf32>, vector<2x32xf32>, vector<2x32xf32>, vector<2x32xf32> -> vector<2x192xf32>
    %cst_24 = arith.constant dense<0.000000e+00> : vector<2x192xf32>
    %57 = tpu.matmul %45, %38, %cst_24 {dimension_numbers = #tpu.dot_dimension_numbers<[1], [0], [0], [1], [0, 0, 1, 1], [], []>} : vector<2x64xf32>, vector<64x192xf32>, vector<2x192xf32> -> vector<2x192xf32>
    %58 = vector.broadcast %40 : vector<1x192xf32> to vector<2x192xf32>
    %59 = arith.addf %57, %58 : vector<2x192xf32>
    %60 = vector.extract_strided_slice %56 {offsets = [0, 0], sizes = [2, 128], strides = [1, 1]} : vector<2x192xf32> to vector<2x128xf32>
    %61 = vector.extract_strided_slice %59 {offsets = [0, 0], sizes = [2, 128], strides = [1, 1]} : vector<2x192xf32> to vector<2x128xf32>
    %62 = arith.addf %60, %61 : vector<2x128xf32>
    %63 = arith.negf %62 : vector<2x128xf32>
    %64 = math.exp %63 : vector<2x128xf32>
    %cst_25 = arith.constant 1.000000e+00 : f32
    %65 = vector.broadcast %cst_25 : f32 to vector<2x128xf32>
    %66 = arith.addf %65, %64 : vector<2x128xf32>
    %67 = arith.divf %65, %66 : vector<2x128xf32>
    %68 = vector.extract_strided_slice %67 {offsets = [0, 0], sizes = [2, 64], strides = [1, 1]} : vector<2x128xf32> to vector<2x64xf32>
    %69 = vector.extract_strided_slice %67 {offsets = [0, 64], sizes = [2, 64], strides = [1, 1]} : vector<2x128xf32> to vector<2x64xf32>
    %70 = vector.extract_strided_slice %56 {offsets = [0, 128], sizes = [2, 64], strides = [1, 1]} : vector<2x192xf32> to vector<2x64xf32>
    %71 = vector.extract_strided_slice %59 {offsets = [0, 128], sizes = [2, 64], strides = [1, 1]} : vector<2x192xf32> to vector<2x64xf32>
    %72 = arith.mulf %68, %71 : vector<2x64xf32>
    %73 = arith.addf %70, %72 : vector<2x64xf32>
    %74 = math.tanh %73 : vector<2x64xf32>
    %cst_26 = arith.constant 1.000000e+00 : f32
    %75 = vector.broadcast %cst_26 : f32 to vector<2x64xf32>
    %76 = arith.subf %75, %69 : vector<2x64xf32>
    %77 = arith.mulf %76, %74 : vector<2x64xf32>
    %78 = arith.mulf %69, %45 : vector<2x64xf32>
    %79 = arith.addf %77, %78 : vector<2x64xf32>
    %80 = vector.extract_strided_slice %44 {offsets = [1, 0, 0], sizes = [1, 2, 192], strides = [1, 1, 1]} : vector<15x2x192xf32> to vector<1x2x192xf32>
    %81 = vector.shape_cast %80 : vector<1x2x192xf32> to vector<2x192xf32>
    %82 = vector.extract_strided_slice %44 {offsets = [13, 0, 0], sizes = [1, 2, 192], strides = [1, 1, 1]} : vector<15x2x192xf32> to vector<1x2x192xf32>
    %83 = vector.shape_cast %82 : vector<1x2x192xf32> to vector<2x192xf32>
    %84 = vector.extract_strided_slice %81 {offsets = [0, 0], sizes = [2, 32], strides = [1, 1]} : vector<2x192xf32> to vector<2x32xf32>
    %85 = vector.extract_strided_slice %83 {offsets = [0, 32], sizes = [2, 32], strides = [1, 1]} : vector<2x192xf32> to vector<2x32xf32>
    %86 = vector.extract_strided_slice %81 {offsets = [0, 64], sizes = [2, 32], strides = [1, 1]} : vector<2x192xf32> to vector<2x32xf32>
    %87 = vector.extract_strided_slice %83 {offsets = [0, 96], sizes = [2, 32], strides = [1, 1]} : vector<2x192xf32> to vector<2x32xf32>
    %88 = vector.extract_strided_slice %81 {offsets = [0, 128], sizes = [2, 32], strides = [1, 1]} : vector<2x192xf32> to vector<2x32xf32>
    %89 = vector.extract_strided_slice %83 {offsets = [0, 160], sizes = [2, 32], strides = [1, 1]} : vector<2x192xf32> to vector<2x32xf32>
    %90 = tpu.concatenate %84, %85, %86, %87, %88, %89 in 1 : vector<2x32xf32>, vector<2x32xf32>, vector<2x32xf32>, vector<2x32xf32>, vector<2x32xf32>, vector<2x32xf32> -> vector<2x192xf32>
    %cst_27 = arith.constant dense<0.000000e+00> : vector<2x192xf32>
    %91 = tpu.matmul %79, %38, %cst_27 {dimension_numbers = #tpu.dot_dimension_numbers<[1], [0], [0], [1], [0, 0, 1, 1], [], []>} : vector<2x64xf32>, vector<64x192xf32>, vector<2x192xf32> -> vector<2x192xf32>
    %92 = vector.broadcast %40 : vector<1x192xf32> to vector<2x192xf32>
    %93 = arith.addf %91, %92 : vector<2x192xf32>
    %94 = vector.extract_strided_slice %90 {offsets = [0, 0], sizes = [2, 128], strides = [1, 1]} : vector<2x192xf32> to vector<2x128xf32>
    %95 = vector.extract_strided_slice %93 {offsets = [0, 0], sizes = [2, 128], strides = [1, 1]} : vector<2x192xf32> to vector<2x128xf32>
    %96 = arith.addf %94, %95 : vector<2x128xf32>
    %97 = arith.negf %96 : vector<2x128xf32>
    %98 = math.exp %97 : vector<2x128xf32>
    %cst_28 = arith.constant 1.000000e+00 : f32
    %99 = vector.broadcast %cst_28 : f32 to vector<2x128xf32>
    %100 = arith.addf %99, %98 : vector<2x128xf32>
    %101 = arith.divf %99, %100 : vector<2x128xf32>
    %102 = vector.extract_strided_slice %101 {offsets = [0, 0], sizes = [2, 64], strides = [1, 1]} : vector<2x128xf32> to vector<2x64xf32>
    %103 = vector.extract_strided_slice %101 {offsets = [0, 64], sizes = [2, 64], strides = [1, 1]} : vector<2x128xf32> to vector<2x64xf32>
    %104 = vector.extract_strided_slice %90 {offsets = [0, 128], sizes = [2, 64], strides = [1, 1]} : vector<2x192xf32> to vector<2x64xf32>
    %105 = vector.extract_strided_slice %93 {offsets = [0, 128], sizes = [2, 64], strides = [1, 1]} : vector<2x192xf32> to vector<2x64xf32>
    %106 = arith.mulf %102, %105 : vector<2x64xf32>
    %107 = arith.addf %104, %106 : vector<2x64xf32>
    %108 = math.tanh %107 : vector<2x64xf32>
    %cst_29 = arith.constant 1.000000e+00 : f32
    %109 = vector.broadcast %cst_29 : f32 to vector<2x64xf32>
    %110 = arith.subf %109, %103 : vector<2x64xf32>
    %111 = arith.mulf %110, %108 : vector<2x64xf32>
    %112 = arith.mulf %103, %79 : vector<2x64xf32>
    %113 = arith.addf %111, %112 : vector<2x64xf32>
    %114 = vector.extract_strided_slice %44 {offsets = [2, 0, 0], sizes = [1, 2, 192], strides = [1, 1, 1]} : vector<15x2x192xf32> to vector<1x2x192xf32>
    %115 = vector.shape_cast %114 : vector<1x2x192xf32> to vector<2x192xf32>
    %116 = vector.extract_strided_slice %44 {offsets = [12, 0, 0], sizes = [1, 2, 192], strides = [1, 1, 1]} : vector<15x2x192xf32> to vector<1x2x192xf32>
    %117 = vector.shape_cast %116 : vector<1x2x192xf32> to vector<2x192xf32>
    %118 = vector.extract_strided_slice %115 {offsets = [0, 0], sizes = [2, 32], strides = [1, 1]} : vector<2x192xf32> to vector<2x32xf32>
    %119 = vector.extract_strided_slice %117 {offsets = [0, 32], sizes = [2, 32], strides = [1, 1]} : vector<2x192xf32> to vector<2x32xf32>
    %120 = vector.extract_strided_slice %115 {offsets = [0, 64], sizes = [2, 32], strides = [1, 1]} : vector<2x192xf32> to vector<2x32xf32>
    %121 = vector.extract_strided_slice %117 {offsets = [0, 96], sizes = [2, 32], strides = [1, 1]} : vector<2x192xf32> to vector<2x32xf32>
    %122 = vector.extract_strided_slice %115 {offsets = [0, 128], sizes = [2, 32], strides = [1, 1]} : vector<2x192xf32> to vector<2x32xf32>
    %123 = vector.extract_strided_slice %117 {offsets = [0, 160], sizes = [2, 32], strides = [1, 1]} : vector<2x192xf32> to vector<2x32xf32>
    %124 = tpu.concatenate %118, %119, %120, %121, %122, %123 in 1 : vector<2x32xf32>, vector<2x32xf32>, vector<2x32xf32>, vector<2x32xf32>, vector<2x32xf32>, vector<2x32xf32> -> vector<2x192xf32>
    %cst_30 = arith.constant dense<0.000000e+00> : vector<2x192xf32>
    %125 = tpu.matmul %113, %38, %cst_30 {dimension_numbers = #tpu.dot_dimension_numbers<[1], [0], [0], [1], [0, 0, 1, 1], [], []>} : vector<2x64xf32>, vector<64x192xf32>, vector<2x192xf32> -> vector<2x192xf32>
    %126 = vector.broadcast %40 : vector<1x192xf32> to vector<2x192xf32>
    %127 = arith.addf %125, %126 : vector<2x192xf32>
    %128 = vector.extract_strided_slice %124 {offsets = [0, 0], sizes = [2, 128], strides = [1, 1]} : vector<2x192xf32> to vector<2x128xf32>
    %129 = vector.extract_strided_slice %127 {offsets = [0, 0], sizes = [2, 128], strides = [1, 1]} : vector<2x192xf32> to vector<2x128xf32>
    %130 = arith.addf %128, %129 : vector<2x128xf32>
    %131 = arith.negf %130 : vector<2x128xf32>
    %132 = math.exp %131 : vector<2x128xf32>
    %cst_31 = arith.constant 1.000000e+00 : f32
    %133 = vector.broadcast %cst_31 : f32 to vector<2x128xf32>
    %134 = arith.addf %133, %132 : vector<2x128xf32>
    %135 = arith.divf %133, %134 : vector<2x128xf32>
    %136 = vector.extract_strided_slice %135 {offsets = [0, 0], sizes = [2, 64], strides = [1, 1]} : vector<2x128xf32> to vector<2x64xf32>
    %137 = vector.extract_strided_slice %135 {offsets = [0, 64], sizes = [2, 64], strides = [1, 1]} : vector<2x128xf32> to vector<2x64xf32>
    %138 = vector.extract_strided_slice %124 {offsets = [0, 128], sizes = [2, 64], strides = [1, 1]} : vector<2x192xf32> to vector<2x64xf32>
    %139 = vector.extract_strided_slice %127 {offsets = [0, 128], sizes = [2, 64], strides = [1, 1]} : vector<2x192xf32> to vector<2x64xf32>
    %140 = arith.mulf %136, %139 : vector<2x64xf32>
    %141 = arith.addf %138, %140 : vector<2x64xf32>
    %142 = math.tanh %141 : vector<2x64xf32>
    %cst_32 = arith.constant 1.000000e+00 : f32
    %143 = vector.broadcast %cst_32 : f32 to vector<2x64xf32>
    %144 = arith.subf %143, %137 : vector<2x64xf32>
    %145 = arith.mulf %144, %142 : vector<2x64xf32>
    %146 = arith.mulf %137, %113 : vector<2x64xf32>
    %147 = arith.addf %145, %146 : vector<2x64xf32>
    %148 = vector.extract_strided_slice %44 {offsets = [3, 0, 0], sizes = [1, 2, 192], strides = [1, 1, 1]} : vector<15x2x192xf32> to vector<1x2x192xf32>
    %149 = vector.shape_cast %148 : vector<1x2x192xf32> to vector<2x192xf32>
    %150 = vector.extract_strided_slice %44 {offsets = [11, 0, 0], sizes = [1, 2, 192], strides = [1, 1, 1]} : vector<15x2x192xf32> to vector<1x2x192xf32>
    %151 = vector.shape_cast %150 : vector<1x2x192xf32> to vector<2x192xf32>
    %152 = vector.extract_strided_slice %149 {offsets = [0, 0], sizes = [2, 32], strides = [1, 1]} : vector<2x192xf32> to vector<2x32xf32>
    %153 = vector.extract_strided_slice %151 {offsets = [0, 32], sizes = [2, 32], strides = [1, 1]} : vector<2x192xf32> to vector<2x32xf32>
    %154 = vector.extract_strided_slice %149 {offsets = [0, 64], sizes = [2, 32], strides = [1, 1]} : vector<2x192xf32> to vector<2x32xf32>
    %155 = vector.extract_strided_slice %151 {offsets = [0, 96], sizes = [2, 32], strides = [1, 1]} : vector<2x192xf32> to vector<2x32xf32>
    %156 = vector.extract_strided_slice %149 {offsets = [0, 128], sizes = [2, 32], strides = [1, 1]} : vector<2x192xf32> to vector<2x32xf32>
    %157 = vector.extract_strided_slice %151 {offsets = [0, 160], sizes = [2, 32], strides = [1, 1]} : vector<2x192xf32> to vector<2x32xf32>
    %158 = tpu.concatenate %152, %153, %154, %155, %156, %157 in 1 : vector<2x32xf32>, vector<2x32xf32>, vector<2x32xf32>, vector<2x32xf32>, vector<2x32xf32>, vector<2x32xf32> -> vector<2x192xf32>
    %cst_33 = arith.constant dense<0.000000e+00> : vector<2x192xf32>
    %159 = tpu.matmul %147, %38, %cst_33 {dimension_numbers = #tpu.dot_dimension_numbers<[1], [0], [0], [1], [0, 0, 1, 1], [], []>} : vector<2x64xf32>, vector<64x192xf32>, vector<2x192xf32> -> vector<2x192xf32>
    %160 = vector.broadcast %40 : vector<1x192xf32> to vector<2x192xf32>
    %161 = arith.addf %159, %160 : vector<2x192xf32>
    %162 = vector.extract_strided_slice %158 {offsets = [0, 0], sizes = [2, 128], strides = [1, 1]} : vector<2x192xf32> to vector<2x128xf32>
    %163 = vector.extract_strided_slice %161 {offsets = [0, 0], sizes = [2, 128], strides = [1, 1]} : vector<2x192xf32> to vector<2x128xf32>
    %164 = arith.addf %162, %163 : vector<2x128xf32>
    %165 = arith.negf %164 : vector<2x128xf32>
    %166 = math.exp %165 : vector<2x128xf32>
    %cst_34 = arith.constant 1.000000e+00 : f32
    %167 = vector.broadcast %cst_34 : f32 to vector<2x128xf32>
    %168 = arith.addf %167, %166 : vector<2x128xf32>
    %169 = arith.divf %167, %168 : vector<2x128xf32>
    %170 = vector.extract_strided_slice %169 {offsets = [0, 0], sizes = [2, 64], strides = [1, 1]} : vector<2x128xf32> to vector<2x64xf32>
    %171 = vector.extract_strided_slice %169 {offsets = [0, 64], sizes = [2, 64], strides = [1, 1]} : vector<2x128xf32> to vector<2x64xf32>
    %172 = vector.extract_strided_slice %158 {offsets = [0, 128], sizes = [2, 64], strides = [1, 1]} : vector<2x192xf32> to vector<2x64xf32>
    %173 = vector.extract_strided_slice %161 {offsets = [0, 128], sizes = [2, 64], strides = [1, 1]} : vector<2x192xf32> to vector<2x64xf32>
    %174 = arith.mulf %170, %173 : vector<2x64xf32>
    %175 = arith.addf %172, %174 : vector<2x64xf32>
    %176 = math.tanh %175 : vector<2x64xf32>
    %cst_35 = arith.constant 1.000000e+00 : f32
    %177 = vector.broadcast %cst_35 : f32 to vector<2x64xf32>
    %178 = arith.subf %177, %171 : vector<2x64xf32>
    %179 = arith.mulf %178, %176 : vector<2x64xf32>
    %180 = arith.mulf %171, %147 : vector<2x64xf32>
    %181 = arith.addf %179, %180 : vector<2x64xf32>
    %182 = vector.extract_strided_slice %44 {offsets = [4, 0, 0], sizes = [1, 2, 192], strides = [1, 1, 1]} : vector<15x2x192xf32> to vector<1x2x192xf32>
    %183 = vector.shape_cast %182 : vector<1x2x192xf32> to vector<2x192xf32>
    %184 = vector.extract_strided_slice %44 {offsets = [10, 0, 0], sizes = [1, 2, 192], strides = [1, 1, 1]} : vector<15x2x192xf32> to vector<1x2x192xf32>
    %185 = vector.shape_cast %184 : vector<1x2x192xf32> to vector<2x192xf32>
    %186 = vector.extract_strided_slice %183 {offsets = [0, 0], sizes = [2, 32], strides = [1, 1]} : vector<2x192xf32> to vector<2x32xf32>
    %187 = vector.extract_strided_slice %185 {offsets = [0, 32], sizes = [2, 32], strides = [1, 1]} : vector<2x192xf32> to vector<2x32xf32>
    %188 = vector.extract_strided_slice %183 {offsets = [0, 64], sizes = [2, 32], strides = [1, 1]} : vector<2x192xf32> to vector<2x32xf32>
    %189 = vector.extract_strided_slice %185 {offsets = [0, 96], sizes = [2, 32], strides = [1, 1]} : vector<2x192xf32> to vector<2x32xf32>
    %190 = vector.extract_strided_slice %183 {offsets = [0, 128], sizes = [2, 32], strides = [1, 1]} : vector<2x192xf32> to vector<2x32xf32>
    %191 = vector.extract_strided_slice %185 {offsets = [0, 160], sizes = [2, 32], strides = [1, 1]} : vector<2x192xf32> to vector<2x32xf32>
    %192 = tpu.concatenate %186, %187, %188, %189, %190, %191 in 1 : vector<2x32xf32>, vector<2x32xf32>, vector<2x32xf32>, vector<2x32xf32>, vector<2x32xf32>, vector<2x32xf32> -> vector<2x192xf32>
    %cst_36 = arith.constant dense<0.000000e+00> : vector<2x192xf32>
    %193 = tpu.matmul %181, %38, %cst_36 {dimension_numbers = #tpu.dot_dimension_numbers<[1], [0], [0], [1], [0, 0, 1, 1], [], []>} : vector<2x64xf32>, vector<64x192xf32>, vector<2x192xf32> -> vector<2x192xf32>
    %194 = vector.broadcast %40 : vector<1x192xf32> to vector<2x192xf32>
    %195 = arith.addf %193, %194 : vector<2x192xf32>
    %196 = vector.extract_strided_slice %192 {offsets = [0, 0], sizes = [2, 128], strides = [1, 1]} : vector<2x192xf32> to vector<2x128xf32>
    %197 = vector.extract_strided_slice %195 {offsets = [0, 0], sizes = [2, 128], strides = [1, 1]} : vector<2x192xf32> to vector<2x128xf32>
    %198 = arith.addf %196, %197 : vector<2x128xf32>
    %199 = arith.negf %198 : vector<2x128xf32>
    %200 = math.exp %199 : vector<2x128xf32>
    %cst_37 = arith.constant 1.000000e+00 : f32
    %201 = vector.broadcast %cst_37 : f32 to vector<2x128xf32>
    %202 = arith.addf %201, %200 : vector<2x128xf32>
    %203 = arith.divf %201, %202 : vector<2x128xf32>
    %204 = vector.extract_strided_slice %203 {offsets = [0, 0], sizes = [2, 64], strides = [1, 1]} : vector<2x128xf32> to vector<2x64xf32>
    %205 = vector.extract_strided_slice %203 {offsets = [0, 64], sizes = [2, 64], strides = [1, 1]} : vector<2x128xf32> to vector<2x64xf32>
    %206 = vector.extract_strided_slice %192 {offsets = [0, 128], sizes = [2, 64], strides = [1, 1]} : vector<2x192xf32> to vector<2x64xf32>
    %207 = vector.extract_strided_slice %195 {offsets = [0, 128], sizes = [2, 64], strides = [1, 1]} : vector<2x192xf32> to vector<2x64xf32>
    %208 = arith.mulf %204, %207 : vector<2x64xf32>
    %209 = arith.addf %206, %208 : vector<2x64xf32>
    %210 = math.tanh %209 : vector<2x64xf32>
    %cst_38 = arith.constant 1.000000e+00 : f32
    %211 = vector.broadcast %cst_38 : f32 to vector<2x64xf32>
    %212 = arith.subf %211, %205 : vector<2x64xf32>
    %213 = arith.mulf %212, %210 : vector<2x64xf32>
    %214 = arith.mulf %205, %181 : vector<2x64xf32>
    %215 = arith.addf %213, %214 : vector<2x64xf32>
    %216 = vector.extract_strided_slice %44 {offsets = [5, 0, 0], sizes = [1, 2, 192], strides = [1, 1, 1]} : vector<15x2x192xf32> to vector<1x2x192xf32>
    %217 = vector.shape_cast %216 : vector<1x2x192xf32> to vector<2x192xf32>
    %218 = vector.extract_strided_slice %44 {offsets = [9, 0, 0], sizes = [1, 2, 192], strides = [1, 1, 1]} : vector<15x2x192xf32> to vector<1x2x192xf32>
    %219 = vector.shape_cast %218 : vector<1x2x192xf32> to vector<2x192xf32>
    %220 = vector.extract_strided_slice %217 {offsets = [0, 0], sizes = [2, 32], strides = [1, 1]} : vector<2x192xf32> to vector<2x32xf32>
    %221 = vector.extract_strided_slice %219 {offsets = [0, 32], sizes = [2, 32], strides = [1, 1]} : vector<2x192xf32> to vector<2x32xf32>
    %222 = vector.extract_strided_slice %217 {offsets = [0, 64], sizes = [2, 32], strides = [1, 1]} : vector<2x192xf32> to vector<2x32xf32>
    %223 = vector.extract_strided_slice %219 {offsets = [0, 96], sizes = [2, 32], strides = [1, 1]} : vector<2x192xf32> to vector<2x32xf32>
    %224 = vector.extract_strided_slice %217 {offsets = [0, 128], sizes = [2, 32], strides = [1, 1]} : vector<2x192xf32> to vector<2x32xf32>
    %225 = vector.extract_strided_slice %219 {offsets = [0, 160], sizes = [2, 32], strides = [1, 1]} : vector<2x192xf32> to vector<2x32xf32>
    %226 = tpu.concatenate %220, %221, %222, %223, %224, %225 in 1 : vector<2x32xf32>, vector<2x32xf32>, vector<2x32xf32>, vector<2x32xf32>, vector<2x32xf32>, vector<2x32xf32> -> vector<2x192xf32>
    %cst_39 = arith.constant dense<0.000000e+00> : vector<2x192xf32>
    %227 = tpu.matmul %215, %38, %cst_39 {dimension_numbers = #tpu.dot_dimension_numbers<[1], [0], [0], [1], [0, 0, 1, 1], [], []>} : vector<2x64xf32>, vector<64x192xf32>, vector<2x192xf32> -> vector<2x192xf32>
    %228 = vector.broadcast %40 : vector<1x192xf32> to vector<2x192xf32>
    %229 = arith.addf %227, %228 : vector<2x192xf32>
    %230 = vector.extract_strided_slice %226 {offsets = [0, 0], sizes = [2, 128], strides = [1, 1]} : vector<2x192xf32> to vector<2x128xf32>
    %231 = vector.extract_strided_slice %229 {offsets = [0, 0], sizes = [2, 128], strides = [1, 1]} : vector<2x192xf32> to vector<2x128xf32>
    %232 = arith.addf %230, %231 : vector<2x128xf32>
    %233 = arith.negf %232 : vector<2x128xf32>
    %234 = math.exp %233 : vector<2x128xf32>
    %cst_40 = arith.constant 1.000000e+00 : f32
    %235 = vector.broadcast %cst_40 : f32 to vector<2x128xf32>
    %236 = arith.addf %235, %234 : vector<2x128xf32>
    %237 = arith.divf %235, %236 : vector<2x128xf32>
    %238 = vector.extract_strided_slice %237 {offsets = [0, 0], sizes = [2, 64], strides = [1, 1]} : vector<2x128xf32> to vector<2x64xf32>
    %239 = vector.extract_strided_slice %237 {offsets = [0, 64], sizes = [2, 64], strides = [1, 1]} : vector<2x128xf32> to vector<2x64xf32>
    %240 = vector.extract_strided_slice %226 {offsets = [0, 128], sizes = [2, 64], strides = [1, 1]} : vector<2x192xf32> to vector<2x64xf32>
    %241 = vector.extract_strided_slice %229 {offsets = [0, 128], sizes = [2, 64], strides = [1, 1]} : vector<2x192xf32> to vector<2x64xf32>
    %242 = arith.mulf %238, %241 : vector<2x64xf32>
    %243 = arith.addf %240, %242 : vector<2x64xf32>
    %244 = math.tanh %243 : vector<2x64xf32>
    %cst_41 = arith.constant 1.000000e+00 : f32
    %245 = vector.broadcast %cst_41 : f32 to vector<2x64xf32>
    %246 = arith.subf %245, %239 : vector<2x64xf32>
    %247 = arith.mulf %246, %244 : vector<2x64xf32>
    %248 = arith.mulf %239, %215 : vector<2x64xf32>
    %249 = arith.addf %247, %248 : vector<2x64xf32>
    %250 = vector.extract_strided_slice %44 {offsets = [6, 0, 0], sizes = [1, 2, 192], strides = [1, 1, 1]} : vector<15x2x192xf32> to vector<1x2x192xf32>
    %251 = vector.shape_cast %250 : vector<1x2x192xf32> to vector<2x192xf32>
    %252 = vector.extract_strided_slice %44 {offsets = [8, 0, 0], sizes = [1, 2, 192], strides = [1, 1, 1]} : vector<15x2x192xf32> to vector<1x2x192xf32>
    %253 = vector.shape_cast %252 : vector<1x2x192xf32> to vector<2x192xf32>
    %254 = vector.extract_strided_slice %251 {offsets = [0, 0], sizes = [2, 32], strides = [1, 1]} : vector<2x192xf32> to vector<2x32xf32>
    %255 = vector.extract_strided_slice %253 {offsets = [0, 32], sizes = [2, 32], strides = [1, 1]} : vector<2x192xf32> to vector<2x32xf32>
    %256 = vector.extract_strided_slice %251 {offsets = [0, 64], sizes = [2, 32], strides = [1, 1]} : vector<2x192xf32> to vector<2x32xf32>
    %257 = vector.extract_strided_slice %253 {offsets = [0, 96], sizes = [2, 32], strides = [1, 1]} : vector<2x192xf32> to vector<2x32xf32>
    %258 = vector.extract_strided_slice %251 {offsets = [0, 128], sizes = [2, 32], strides = [1, 1]} : vector<2x192xf32> to vector<2x32xf32>
    %259 = vector.extract_strided_slice %253 {offsets = [0, 160], sizes = [2, 32], strides = [1, 1]} : vector<2x192xf32> to vector<2x32xf32>
    %260 = tpu.concatenate %254, %255, %256, %257, %258, %259 in 1 : vector<2x32xf32>, vector<2x32xf32>, vector<2x32xf32>, vector<2x32xf32>, vector<2x32xf32>, vector<2x32xf32> -> vector<2x192xf32>
    %cst_42 = arith.constant dense<0.000000e+00> : vector<2x192xf32>
    %261 = tpu.matmul %249, %38, %cst_42 {dimension_numbers = #tpu.dot_dimension_numbers<[1], [0], [0], [1], [0, 0, 1, 1], [], []>} : vector<2x64xf32>, vector<64x192xf32>, vector<2x192xf32> -> vector<2x192xf32>
    %262 = vector.broadcast %40 : vector<1x192xf32> to vector<2x192xf32>
    %263 = arith.addf %261, %262 : vector<2x192xf32>
    %264 = vector.extract_strided_slice %260 {offsets = [0, 0], sizes = [2, 128], strides = [1, 1]} : vector<2x192xf32> to vector<2x128xf32>
    %265 = vector.extract_strided_slice %263 {offsets = [0, 0], sizes = [2, 128], strides = [1, 1]} : vector<2x192xf32> to vector<2x128xf32>
    %266 = arith.addf %264, %265 : vector<2x128xf32>
    %267 = arith.negf %266 : vector<2x128xf32>
    %268 = math.exp %267 : vector<2x128xf32>
    %cst_43 = arith.constant 1.000000e+00 : f32
    %269 = vector.broadcast %cst_43 : f32 to vector<2x128xf32>
    %270 = arith.addf %269, %268 : vector<2x128xf32>
    %271 = arith.divf %269, %270 : vector<2x128xf32>
    %272 = vector.extract_strided_slice %271 {offsets = [0, 0], sizes = [2, 64], strides = [1, 1]} : vector<2x128xf32> to vector<2x64xf32>
    %273 = vector.extract_strided_slice %271 {offsets = [0, 64], sizes = [2, 64], strides = [1, 1]} : vector<2x128xf32> to vector<2x64xf32>
    %274 = vector.extract_strided_slice %260 {offsets = [0, 128], sizes = [2, 64], strides = [1, 1]} : vector<2x192xf32> to vector<2x64xf32>
    %275 = vector.extract_strided_slice %263 {offsets = [0, 128], sizes = [2, 64], strides = [1, 1]} : vector<2x192xf32> to vector<2x64xf32>
    %276 = arith.mulf %272, %275 : vector<2x64xf32>
    %277 = arith.addf %274, %276 : vector<2x64xf32>
    %278 = math.tanh %277 : vector<2x64xf32>
    %cst_44 = arith.constant 1.000000e+00 : f32
    %279 = vector.broadcast %cst_44 : f32 to vector<2x64xf32>
    %280 = arith.subf %279, %273 : vector<2x64xf32>
    %281 = arith.mulf %280, %278 : vector<2x64xf32>
    %282 = arith.mulf %273, %249 : vector<2x64xf32>
    %283 = arith.addf %281, %282 : vector<2x64xf32>
    %284 = vector.extract_strided_slice %44 {offsets = [7, 0, 0], sizes = [1, 2, 192], strides = [1, 1, 1]} : vector<15x2x192xf32> to vector<1x2x192xf32>
    %285 = vector.shape_cast %284 : vector<1x2x192xf32> to vector<2x192xf32>
    %286 = vector.extract_strided_slice %44 {offsets = [7, 0, 0], sizes = [1, 2, 192], strides = [1, 1, 1]} : vector<15x2x192xf32> to vector<1x2x192xf32>
    %287 = vector.shape_cast %286 : vector<1x2x192xf32> to vector<2x192xf32>
    %288 = vector.extract_strided_slice %285 {offsets = [0, 0], sizes = [2, 32], strides = [1, 1]} : vector<2x192xf32> to vector<2x32xf32>
    %289 = vector.extract_strided_slice %287 {offsets = [0, 32], sizes = [2, 32], strides = [1, 1]} : vector<2x192xf32> to vector<2x32xf32>
    %290 = vector.extract_strided_slice %285 {offsets = [0, 64], sizes = [2, 32], strides = [1, 1]} : vector<2x192xf32> to vector<2x32xf32>
    %291 = vector.extract_strided_slice %287 {offsets = [0, 96], sizes = [2, 32], strides = [1, 1]} : vector<2x192xf32> to vector<2x32xf32>
    %292 = vector.extract_strided_slice %285 {offsets = [0, 128], sizes = [2, 32], strides = [1, 1]} : vector<2x192xf32> to vector<2x32xf32>
    %293 = vector.extract_strided_slice %287 {offsets = [0, 160], sizes = [2, 32], strides = [1, 1]} : vector<2x192xf32> to vector<2x32xf32>
    %294 = tpu.concatenate %288, %289, %290, %291, %292, %293 in 1 : vector<2x32xf32>, vector<2x32xf32>, vector<2x32xf32>, vector<2x32xf32>, vector<2x32xf32>, vector<2x32xf32> -> vector<2x192xf32>
    %cst_45 = arith.constant dense<0.000000e+00> : vector<2x192xf32>
    %295 = tpu.matmul %283, %38, %cst_45 {dimension_numbers = #tpu.dot_dimension_numbers<[1], [0], [0], [1], [0, 0, 1, 1], [], []>} : vector<2x64xf32>, vector<64x192xf32>, vector<2x192xf32> -> vector<2x192xf32>
    %296 = vector.broadcast %40 : vector<1x192xf32> to vector<2x192xf32>
    %297 = arith.addf %295, %296 : vector<2x192xf32>
    %298 = vector.extract_strided_slice %294 {offsets = [0, 0], sizes = [2, 128], strides = [1, 1]} : vector<2x192xf32> to vector<2x128xf32>
    %299 = vector.extract_strided_slice %297 {offsets = [0, 0], sizes = [2, 128], strides = [1, 1]} : vector<2x192xf32> to vector<2x128xf32>
    %300 = arith.addf %298, %299 : vector<2x128xf32>
    %301 = arith.negf %300 : vector<2x128xf32>
    %302 = math.exp %301 : vector<2x128xf32>
    %cst_46 = arith.constant 1.000000e+00 : f32
    %303 = vector.broadcast %cst_46 : f32 to vector<2x128xf32>
    %304 = arith.addf %303, %302 : vector<2x128xf32>
    %305 = arith.divf %303, %304 : vector<2x128xf32>
    %306 = vector.extract_strided_slice %305 {offsets = [0, 0], sizes = [2, 64], strides = [1, 1]} : vector<2x128xf32> to vector<2x64xf32>
    %307 = vector.extract_strided_slice %305 {offsets = [0, 64], sizes = [2, 64], strides = [1, 1]} : vector<2x128xf32> to vector<2x64xf32>
    %308 = vector.extract_strided_slice %294 {offsets = [0, 128], sizes = [2, 64], strides = [1, 1]} : vector<2x192xf32> to vector<2x64xf32>
    %309 = vector.extract_strided_slice %297 {offsets = [0, 128], sizes = [2, 64], strides = [1, 1]} : vector<2x192xf32> to vector<2x64xf32>
    %310 = arith.mulf %306, %309 : vector<2x64xf32>
    %311 = arith.addf %308, %310 : vector<2x64xf32>
    %312 = math.tanh %311 : vector<2x64xf32>
    %cst_47 = arith.constant 1.000000e+00 : f32
    %313 = vector.broadcast %cst_47 : f32 to vector<2x64xf32>
    %314 = arith.subf %313, %307 : vector<2x64xf32>
    %315 = arith.mulf %314, %312 : vector<2x64xf32>
    %316 = arith.mulf %307, %283 : vector<2x64xf32>
    %317 = arith.addf %315, %316 : vector<2x64xf32>
    %318 = vector.extract_strided_slice %44 {offsets = [8, 0, 0], sizes = [1, 2, 192], strides = [1, 1, 1]} : vector<15x2x192xf32> to vector<1x2x192xf32>
    %319 = vector.shape_cast %318 : vector<1x2x192xf32> to vector<2x192xf32>
    %320 = vector.extract_strided_slice %44 {offsets = [6, 0, 0], sizes = [1, 2, 192], strides = [1, 1, 1]} : vector<15x2x192xf32> to vector<1x2x192xf32>
    %321 = vector.shape_cast %320 : vector<1x2x192xf32> to vector<2x192xf32>
    %322 = vector.extract_strided_slice %319 {offsets = [0, 0], sizes = [2, 32], strides = [1, 1]} : vector<2x192xf32> to vector<2x32xf32>
    %323 = vector.extract_strided_slice %321 {offsets = [0, 32], sizes = [2, 32], strides = [1, 1]} : vector<2x192xf32> to vector<2x32xf32>
    %324 = vector.extract_strided_slice %319 {offsets = [0, 64], sizes = [2, 32], strides = [1, 1]} : vector<2x192xf32> to vector<2x32xf32>
    %325 = vector.extract_strided_slice %321 {offsets = [0, 96], sizes = [2, 32], strides = [1, 1]} : vector<2x192xf32> to vector<2x32xf32>
    %326 = vector.extract_strided_slice %319 {offsets = [0, 128], sizes = [2, 32], strides = [1, 1]} : vector<2x192xf32> to vector<2x32xf32>
    %327 = vector.extract_strided_slice %321 {offsets = [0, 160], sizes = [2, 32], strides = [1, 1]} : vector<2x192xf32> to vector<2x32xf32>
    %328 = tpu.concatenate %322, %323, %324, %325, %326, %327 in 1 : vector<2x32xf32>, vector<2x32xf32>, vector<2x32xf32>, vector<2x32xf32>, vector<2x32xf32>, vector<2x32xf32> -> vector<2x192xf32>
    %cst_48 = arith.constant dense<0.000000e+00> : vector<2x192xf32>
    %329 = tpu.matmul %317, %38, %cst_48 {dimension_numbers = #tpu.dot_dimension_numbers<[1], [0], [0], [1], [0, 0, 1, 1], [], []>} : vector<2x64xf32>, vector<64x192xf32>, vector<2x192xf32> -> vector<2x192xf32>
    %330 = vector.broadcast %40 : vector<1x192xf32> to vector<2x192xf32>
    %331 = arith.addf %329, %330 : vector<2x192xf32>
    %332 = vector.extract_strided_slice %328 {offsets = [0, 0], sizes = [2, 128], strides = [1, 1]} : vector<2x192xf32> to vector<2x128xf32>
    %333 = vector.extract_strided_slice %331 {offsets = [0, 0], sizes = [2, 128], strides = [1, 1]} : vector<2x192xf32> to vector<2x128xf32>
    %334 = arith.addf %332, %333 : vector<2x128xf32>
    %335 = arith.negf %334 : vector<2x128xf32>
    %336 = math.exp %335 : vector<2x128xf32>
    %cst_49 = arith.constant 1.000000e+00 : f32
    %337 = vector.broadcast %cst_49 : f32 to vector<2x128xf32>
    %338 = arith.addf %337, %336 : vector<2x128xf32>
    %339 = arith.divf %337, %338 : vector<2x128xf32>
    %340 = vector.extract_strided_slice %339 {offsets = [0, 0], sizes = [2, 64], strides = [1, 1]} : vector<2x128xf32> to vector<2x64xf32>
    %341 = vector.extract_strided_slice %339 {offsets = [0, 64], sizes = [2, 64], strides = [1, 1]} : vector<2x128xf32> to vector<2x64xf32>
    %342 = vector.extract_strided_slice %328 {offsets = [0, 128], sizes = [2, 64], strides = [1, 1]} : vector<2x192xf32> to vector<2x64xf32>
    %343 = vector.extract_strided_slice %331 {offsets = [0, 128], sizes = [2, 64], strides = [1, 1]} : vector<2x192xf32> to vector<2x64xf32>
    %344 = arith.mulf %340, %343 : vector<2x64xf32>
    %345 = arith.addf %342, %344 : vector<2x64xf32>
    %346 = math.tanh %345 : vector<2x64xf32>
    %cst_50 = arith.constant 1.000000e+00 : f32
    %347 = vector.broadcast %cst_50 : f32 to vector<2x64xf32>
    %348 = arith.subf %347, %341 : vector<2x64xf32>
    %349 = arith.mulf %348, %346 : vector<2x64xf32>
    %350 = arith.mulf %341, %317 : vector<2x64xf32>
    %351 = arith.addf %349, %350 : vector<2x64xf32>
    %352 = vector.extract_strided_slice %44 {offsets = [9, 0, 0], sizes = [1, 2, 192], strides = [1, 1, 1]} : vector<15x2x192xf32> to vector<1x2x192xf32>
    %353 = vector.shape_cast %352 : vector<1x2x192xf32> to vector<2x192xf32>
    %354 = vector.extract_strided_slice %44 {offsets = [5, 0, 0], sizes = [1, 2, 192], strides = [1, 1, 1]} : vector<15x2x192xf32> to vector<1x2x192xf32>
    %355 = vector.shape_cast %354 : vector<1x2x192xf32> to vector<2x192xf32>
    %356 = vector.extract_strided_slice %353 {offsets = [0, 0], sizes = [2, 32], strides = [1, 1]} : vector<2x192xf32> to vector<2x32xf32>
    %357 = vector.extract_strided_slice %355 {offsets = [0, 32], sizes = [2, 32], strides = [1, 1]} : vector<2x192xf32> to vector<2x32xf32>
    %358 = vector.extract_strided_slice %353 {offsets = [0, 64], sizes = [2, 32], strides = [1, 1]} : vector<2x192xf32> to vector<2x32xf32>
    %359 = vector.extract_strided_slice %355 {offsets = [0, 96], sizes = [2, 32], strides = [1, 1]} : vector<2x192xf32> to vector<2x32xf32>
    %360 = vector.extract_strided_slice %353 {offsets = [0, 128], sizes = [2, 32], strides = [1, 1]} : vector<2x192xf32> to vector<2x32xf32>
    %361 = vector.extract_strided_slice %355 {offsets = [0, 160], sizes = [2, 32], strides = [1, 1]} : vector<2x192xf32> to vector<2x32xf32>
    %362 = tpu.concatenate %356, %357, %358, %359, %360, %361 in 1 : vector<2x32xf32>, vector<2x32xf32>, vector<2x32xf32>, vector<2x32xf32>, vector<2x32xf32>, vector<2x32xf32> -> vector<2x192xf32>
    %cst_51 = arith.constant dense<0.000000e+00> : vector<2x192xf32>
    %363 = tpu.matmul %351, %38, %cst_51 {dimension_numbers = #tpu.dot_dimension_numbers<[1], [0], [0], [1], [0, 0, 1, 1], [], []>} : vector<2x64xf32>, vector<64x192xf32>, vector<2x192xf32> -> vector<2x192xf32>
    %364 = vector.broadcast %40 : vector<1x192xf32> to vector<2x192xf32>
    %365 = arith.addf %363, %364 : vector<2x192xf32>
    %366 = vector.extract_strided_slice %362 {offsets = [0, 0], sizes = [2, 128], strides = [1, 1]} : vector<2x192xf32> to vector<2x128xf32>
    %367 = vector.extract_strided_slice %365 {offsets = [0, 0], sizes = [2, 128], strides = [1, 1]} : vector<2x192xf32> to vector<2x128xf32>
    %368 = arith.addf %366, %367 : vector<2x128xf32>
    %369 = arith.negf %368 : vector<2x128xf32>
    %370 = math.exp %369 : vector<2x128xf32>
    %cst_52 = arith.constant 1.000000e+00 : f32
    %371 = vector.broadcast %cst_52 : f32 to vector<2x128xf32>
    %372 = arith.addf %371, %370 : vector<2x128xf32>
    %373 = arith.divf %371, %372 : vector<2x128xf32>
    %374 = vector.extract_strided_slice %373 {offsets = [0, 0], sizes = [2, 64], strides = [1, 1]} : vector<2x128xf32> to vector<2x64xf32>
    %375 = vector.extract_strided_slice %373 {offsets = [0, 64], sizes = [2, 64], strides = [1, 1]} : vector<2x128xf32> to vector<2x64xf32>
    %376 = vector.extract_strided_slice %362 {offsets = [0, 128], sizes = [2, 64], strides = [1, 1]} : vector<2x192xf32> to vector<2x64xf32>
    %377 = vector.extract_strided_slice %365 {offsets = [0, 128], sizes = [2, 64], strides = [1, 1]} : vector<2x192xf32> to vector<2x64xf32>
    %378 = arith.mulf %374, %377 : vector<2x64xf32>
    %379 = arith.addf %376, %378 : vector<2x64xf32>
    %380 = math.tanh %379 : vector<2x64xf32>
    %cst_53 = arith.constant 1.000000e+00 : f32
    %381 = vector.broadcast %cst_53 : f32 to vector<2x64xf32>
    %382 = arith.subf %381, %375 : vector<2x64xf32>
    %383 = arith.mulf %382, %380 : vector<2x64xf32>
    %384 = arith.mulf %375, %351 : vector<2x64xf32>
    %385 = arith.addf %383, %384 : vector<2x64xf32>
    %386 = vector.extract_strided_slice %44 {offsets = [10, 0, 0], sizes = [1, 2, 192], strides = [1, 1, 1]} : vector<15x2x192xf32> to vector<1x2x192xf32>
    %387 = vector.shape_cast %386 : vector<1x2x192xf32> to vector<2x192xf32>
    %388 = vector.extract_strided_slice %44 {offsets = [4, 0, 0], sizes = [1, 2, 192], strides = [1, 1, 1]} : vector<15x2x192xf32> to vector<1x2x192xf32>
    %389 = vector.shape_cast %388 : vector<1x2x192xf32> to vector<2x192xf32>
    %390 = vector.extract_strided_slice %387 {offsets = [0, 0], sizes = [2, 32], strides = [1, 1]} : vector<2x192xf32> to vector<2x32xf32>
    %391 = vector.extract_strided_slice %389 {offsets = [0, 32], sizes = [2, 32], strides = [1, 1]} : vector<2x192xf32> to vector<2x32xf32>
    %392 = vector.extract_strided_slice %387 {offsets = [0, 64], sizes = [2, 32], strides = [1, 1]} : vector<2x192xf32> to vector<2x32xf32>
    %393 = vector.extract_strided_slice %389 {offsets = [0, 96], sizes = [2, 32], strides = [1, 1]} : vector<2x192xf32> to vector<2x32xf32>
    %394 = vector.extract_strided_slice %387 {offsets = [0, 128], sizes = [2, 32], strides = [1, 1]} : vector<2x192xf32> to vector<2x32xf32>
    %395 = vector.extract_strided_slice %389 {offsets = [0, 160], sizes = [2, 32], strides = [1, 1]} : vector<2x192xf32> to vector<2x32xf32>
    %396 = tpu.concatenate %390, %391, %392, %393, %394, %395 in 1 : vector<2x32xf32>, vector<2x32xf32>, vector<2x32xf32>, vector<2x32xf32>, vector<2x32xf32>, vector<2x32xf32> -> vector<2x192xf32>
    %cst_54 = arith.constant dense<0.000000e+00> : vector<2x192xf32>
    %397 = tpu.matmul %385, %38, %cst_54 {dimension_numbers = #tpu.dot_dimension_numbers<[1], [0], [0], [1], [0, 0, 1, 1], [], []>} : vector<2x64xf32>, vector<64x192xf32>, vector<2x192xf32> -> vector<2x192xf32>
    %398 = vector.broadcast %40 : vector<1x192xf32> to vector<2x192xf32>
    %399 = arith.addf %397, %398 : vector<2x192xf32>
    %400 = vector.extract_strided_slice %396 {offsets = [0, 0], sizes = [2, 128], strides = [1, 1]} : vector<2x192xf32> to vector<2x128xf32>
    %401 = vector.extract_strided_slice %399 {offsets = [0, 0], sizes = [2, 128], strides = [1, 1]} : vector<2x192xf32> to vector<2x128xf32>
    %402 = arith.addf %400, %401 : vector<2x128xf32>
    %403 = arith.negf %402 : vector<2x128xf32>
    %404 = math.exp %403 : vector<2x128xf32>
    %cst_55 = arith.constant 1.000000e+00 : f32
    %405 = vector.broadcast %cst_55 : f32 to vector<2x128xf32>
    %406 = arith.addf %405, %404 : vector<2x128xf32>
    %407 = arith.divf %405, %406 : vector<2x128xf32>
    %408 = vector.extract_strided_slice %407 {offsets = [0, 0], sizes = [2, 64], strides = [1, 1]} : vector<2x128xf32> to vector<2x64xf32>
    %409 = vector.extract_strided_slice %407 {offsets = [0, 64], sizes = [2, 64], strides = [1, 1]} : vector<2x128xf32> to vector<2x64xf32>
    %410 = vector.extract_strided_slice %396 {offsets = [0, 128], sizes = [2, 64], strides = [1, 1]} : vector<2x192xf32> to vector<2x64xf32>
    %411 = vector.extract_strided_slice %399 {offsets = [0, 128], sizes = [2, 64], strides = [1, 1]} : vector<2x192xf32> to vector<2x64xf32>
    %412 = arith.mulf %408, %411 : vector<2x64xf32>
    %413 = arith.addf %410, %412 : vector<2x64xf32>
    %414 = math.tanh %413 : vector<2x64xf32>
    %cst_56 = arith.constant 1.000000e+00 : f32
    %415 = vector.broadcast %cst_56 : f32 to vector<2x64xf32>
    %416 = arith.subf %415, %409 : vector<2x64xf32>
    %417 = arith.mulf %416, %414 : vector<2x64xf32>
    %418 = arith.mulf %409, %385 : vector<2x64xf32>
    %419 = arith.addf %417, %418 : vector<2x64xf32>
    %420 = vector.extract_strided_slice %44 {offsets = [11, 0, 0], sizes = [1, 2, 192], strides = [1, 1, 1]} : vector<15x2x192xf32> to vector<1x2x192xf32>
    %421 = vector.shape_cast %420 : vector<1x2x192xf32> to vector<2x192xf32>
    %422 = vector.extract_strided_slice %44 {offsets = [3, 0, 0], sizes = [1, 2, 192], strides = [1, 1, 1]} : vector<15x2x192xf32> to vector<1x2x192xf32>
    %423 = vector.shape_cast %422 : vector<1x2x192xf32> to vector<2x192xf32>
    %424 = vector.extract_strided_slice %421 {offsets = [0, 0], sizes = [2, 32], strides = [1, 1]} : vector<2x192xf32> to vector<2x32xf32>
    %425 = vector.extract_strided_slice %423 {offsets = [0, 32], sizes = [2, 32], strides = [1, 1]} : vector<2x192xf32> to vector<2x32xf32>
    %426 = vector.extract_strided_slice %421 {offsets = [0, 64], sizes = [2, 32], strides = [1, 1]} : vector<2x192xf32> to vector<2x32xf32>
    %427 = vector.extract_strided_slice %423 {offsets = [0, 96], sizes = [2, 32], strides = [1, 1]} : vector<2x192xf32> to vector<2x32xf32>
    %428 = vector.extract_strided_slice %421 {offsets = [0, 128], sizes = [2, 32], strides = [1, 1]} : vector<2x192xf32> to vector<2x32xf32>
    %429 = vector.extract_strided_slice %423 {offsets = [0, 160], sizes = [2, 32], strides = [1, 1]} : vector<2x192xf32> to vector<2x32xf32>
    %430 = tpu.concatenate %424, %425, %426, %427, %428, %429 in 1 : vector<2x32xf32>, vector<2x32xf32>, vector<2x32xf32>, vector<2x32xf32>, vector<2x32xf32>, vector<2x32xf32> -> vector<2x192xf32>
    %cst_57 = arith.constant dense<0.000000e+00> : vector<2x192xf32>
    %431 = tpu.matmul %419, %38, %cst_57 {dimension_numbers = #tpu.dot_dimension_numbers<[1], [0], [0], [1], [0, 0, 1, 1], [], []>} : vector<2x64xf32>, vector<64x192xf32>, vector<2x192xf32> -> vector<2x192xf32>
    %432 = vector.broadcast %40 : vector<1x192xf32> to vector<2x192xf32>
    %433 = arith.addf %431, %432 : vector<2x192xf32>
    %434 = vector.extract_strided_slice %430 {offsets = [0, 0], sizes = [2, 128], strides = [1, 1]} : vector<2x192xf32> to vector<2x128xf32>
    %435 = vector.extract_strided_slice %433 {offsets = [0, 0], sizes = [2, 128], strides = [1, 1]} : vector<2x192xf32> to vector<2x128xf32>
    %436 = arith.addf %434, %435 : vector<2x128xf32>
    %437 = arith.negf %436 : vector<2x128xf32>
    %438 = math.exp %437 : vector<2x128xf32>
    %cst_58 = arith.constant 1.000000e+00 : f32
    %439 = vector.broadcast %cst_58 : f32 to vector<2x128xf32>
    %440 = arith.addf %439, %438 : vector<2x128xf32>
    %441 = arith.divf %439, %440 : vector<2x128xf32>
    %442 = vector.extract_strided_slice %441 {offsets = [0, 0], sizes = [2, 64], strides = [1, 1]} : vector<2x128xf32> to vector<2x64xf32>
    %443 = vector.extract_strided_slice %441 {offsets = [0, 64], sizes = [2, 64], strides = [1, 1]} : vector<2x128xf32> to vector<2x64xf32>
    %444 = vector.extract_strided_slice %430 {offsets = [0, 128], sizes = [2, 64], strides = [1, 1]} : vector<2x192xf32> to vector<2x64xf32>
    %445 = vector.extract_strided_slice %433 {offsets = [0, 128], sizes = [2, 64], strides = [1, 1]} : vector<2x192xf32> to vector<2x64xf32>
    %446 = arith.mulf %442, %445 : vector<2x64xf32>
    %447 = arith.addf %444, %446 : vector<2x64xf32>
    %448 = math.tanh %447 : vector<2x64xf32>
    %cst_59 = arith.constant 1.000000e+00 : f32
    %449 = vector.broadcast %cst_59 : f32 to vector<2x64xf32>
    %450 = arith.subf %449, %443 : vector<2x64xf32>
    %451 = arith.mulf %450, %448 : vector<2x64xf32>
    %452 = arith.mulf %443, %419 : vector<2x64xf32>
    %453 = arith.addf %451, %452 : vector<2x64xf32>
    %454 = vector.extract_strided_slice %44 {offsets = [12, 0, 0], sizes = [1, 2, 192], strides = [1, 1, 1]} : vector<15x2x192xf32> to vector<1x2x192xf32>
    %455 = vector.shape_cast %454 : vector<1x2x192xf32> to vector<2x192xf32>
    %456 = vector.extract_strided_slice %44 {offsets = [2, 0, 0], sizes = [1, 2, 192], strides = [1, 1, 1]} : vector<15x2x192xf32> to vector<1x2x192xf32>
    %457 = vector.shape_cast %456 : vector<1x2x192xf32> to vector<2x192xf32>
    %458 = vector.extract_strided_slice %455 {offsets = [0, 0], sizes = [2, 32], strides = [1, 1]} : vector<2x192xf32> to vector<2x32xf32>
    %459 = vector.extract_strided_slice %457 {offsets = [0, 32], sizes = [2, 32], strides = [1, 1]} : vector<2x192xf32> to vector<2x32xf32>
    %460 = vector.extract_strided_slice %455 {offsets = [0, 64], sizes = [2, 32], strides = [1, 1]} : vector<2x192xf32> to vector<2x32xf32>
    %461 = vector.extract_strided_slice %457 {offsets = [0, 96], sizes = [2, 32], strides = [1, 1]} : vector<2x192xf32> to vector<2x32xf32>
    %462 = vector.extract_strided_slice %455 {offsets = [0, 128], sizes = [2, 32], strides = [1, 1]} : vector<2x192xf32> to vector<2x32xf32>
    %463 = vector.extract_strided_slice %457 {offsets = [0, 160], sizes = [2, 32], strides = [1, 1]} : vector<2x192xf32> to vector<2x32xf32>
    %464 = tpu.concatenate %458, %459, %460, %461, %462, %463 in 1 : vector<2x32xf32>, vector<2x32xf32>, vector<2x32xf32>, vector<2x32xf32>, vector<2x32xf32>, vector<2x32xf32> -> vector<2x192xf32>
    %cst_60 = arith.constant dense<0.000000e+00> : vector<2x192xf32>
    %465 = tpu.matmul %453, %38, %cst_60 {dimension_numbers = #tpu.dot_dimension_numbers<[1], [0], [0], [1], [0, 0, 1, 1], [], []>} : vector<2x64xf32>, vector<64x192xf32>, vector<2x192xf32> -> vector<2x192xf32>
    %466 = vector.broadcast %40 : vector<1x192xf32> to vector<2x192xf32>
    %467 = arith.addf %465, %466 : vector<2x192xf32>
    %468 = vector.extract_strided_slice %464 {offsets = [0, 0], sizes = [2, 128], strides = [1, 1]} : vector<2x192xf32> to vector<2x128xf32>
    %469 = vector.extract_strided_slice %467 {offsets = [0, 0], sizes = [2, 128], strides = [1, 1]} : vector<2x192xf32> to vector<2x128xf32>
    %470 = arith.addf %468, %469 : vector<2x128xf32>
    %471 = arith.negf %470 : vector<2x128xf32>
    %472 = math.exp %471 : vector<2x128xf32>
    %cst_61 = arith.constant 1.000000e+00 : f32
    %473 = vector.broadcast %cst_61 : f32 to vector<2x128xf32>
    %474 = arith.addf %473, %472 : vector<2x128xf32>
    %475 = arith.divf %473, %474 : vector<2x128xf32>
    %476 = vector.extract_strided_slice %475 {offsets = [0, 0], sizes = [2, 64], strides = [1, 1]} : vector<2x128xf32> to vector<2x64xf32>
    %477 = vector.extract_strided_slice %475 {offsets = [0, 64], sizes = [2, 64], strides = [1, 1]} : vector<2x128xf32> to vector<2x64xf32>
    %478 = vector.extract_strided_slice %464 {offsets = [0, 128], sizes = [2, 64], strides = [1, 1]} : vector<2x192xf32> to vector<2x64xf32>
    %479 = vector.extract_strided_slice %467 {offsets = [0, 128], sizes = [2, 64], strides = [1, 1]} : vector<2x192xf32> to vector<2x64xf32>
    %480 = arith.mulf %476, %479 : vector<2x64xf32>
    %481 = arith.addf %478, %480 : vector<2x64xf32>
    %482 = math.tanh %481 : vector<2x64xf32>
    %cst_62 = arith.constant 1.000000e+00 : f32
    %483 = vector.broadcast %cst_62 : f32 to vector<2x64xf32>
    %484 = arith.subf %483, %477 : vector<2x64xf32>
    %485 = arith.mulf %484, %482 : vector<2x64xf32>
    %486 = arith.mulf %477, %453 : vector<2x64xf32>
    %487 = arith.addf %485, %486 : vector<2x64xf32>
    %488 = vector.extract_strided_slice %44 {offsets = [13, 0, 0], sizes = [1, 2, 192], strides = [1, 1, 1]} : vector<15x2x192xf32> to vector<1x2x192xf32>
    %489 = vector.shape_cast %488 : vector<1x2x192xf32> to vector<2x192xf32>
    %490 = vector.extract_strided_slice %44 {offsets = [1, 0, 0], sizes = [1, 2, 192], strides = [1, 1, 1]} : vector<15x2x192xf32> to vector<1x2x192xf32>
    %491 = vector.shape_cast %490 : vector<1x2x192xf32> to vector<2x192xf32>
    %492 = vector.extract_strided_slice %489 {offsets = [0, 0], sizes = [2, 32], strides = [1, 1]} : vector<2x192xf32> to vector<2x32xf32>
    %493 = vector.extract_strided_slice %491 {offsets = [0, 32], sizes = [2, 32], strides = [1, 1]} : vector<2x192xf32> to vector<2x32xf32>
    %494 = vector.extract_strided_slice %489 {offsets = [0, 64], sizes = [2, 32], strides = [1, 1]} : vector<2x192xf32> to vector<2x32xf32>
    %495 = vector.extract_strided_slice %491 {offsets = [0, 96], sizes = [2, 32], strides = [1, 1]} : vector<2x192xf32> to vector<2x32xf32>
    %496 = vector.extract_strided_slice %489 {offsets = [0, 128], sizes = [2, 32], strides = [1, 1]} : vector<2x192xf32> to vector<2x32xf32>
    %497 = vector.extract_strided_slice %491 {offsets = [0, 160], sizes = [2, 32], strides = [1, 1]} : vector<2x192xf32> to vector<2x32xf32>
    %498 = tpu.concatenate %492, %493, %494, %495, %496, %497 in 1 : vector<2x32xf32>, vector<2x32xf32>, vector<2x32xf32>, vector<2x32xf32>, vector<2x32xf32>, vector<2x32xf32> -> vector<2x192xf32>
    %cst_63 = arith.constant dense<0.000000e+00> : vector<2x192xf32>
    %499 = tpu.matmul %487, %38, %cst_63 {dimension_numbers = #tpu.dot_dimension_numbers<[1], [0], [0], [1], [0, 0, 1, 1], [], []>} : vector<2x64xf32>, vector<64x192xf32>, vector<2x192xf32> -> vector<2x192xf32>
    %500 = vector.broadcast %40 : vector<1x192xf32> to vector<2x192xf32>
    %501 = arith.addf %499, %500 : vector<2x192xf32>
    %502 = vector.extract_strided_slice %498 {offsets = [0, 0], sizes = [2, 128], strides = [1, 1]} : vector<2x192xf32> to vector<2x128xf32>
    %503 = vector.extract_strided_slice %501 {offsets = [0, 0], sizes = [2, 128], strides = [1, 1]} : vector<2x192xf32> to vector<2x128xf32>
    %504 = arith.addf %502, %503 : vector<2x128xf32>
    %505 = arith.negf %504 : vector<2x128xf32>
    %506 = math.exp %505 : vector<2x128xf32>
    %cst_64 = arith.constant 1.000000e+00 : f32
    %507 = vector.broadcast %cst_64 : f32 to vector<2x128xf32>
    %508 = arith.addf %507, %506 : vector<2x128xf32>
    %509 = arith.divf %507, %508 : vector<2x128xf32>
    %510 = vector.extract_strided_slice %509 {offsets = [0, 0], sizes = [2, 64], strides = [1, 1]} : vector<2x128xf32> to vector<2x64xf32>
    %511 = vector.extract_strided_slice %509 {offsets = [0, 64], sizes = [2, 64], strides = [1, 1]} : vector<2x128xf32> to vector<2x64xf32>
    %512 = vector.extract_strided_slice %498 {offsets = [0, 128], sizes = [2, 64], strides = [1, 1]} : vector<2x192xf32> to vector<2x64xf32>
    %513 = vector.extract_strided_slice %501 {offsets = [0, 128], sizes = [2, 64], strides = [1, 1]} : vector<2x192xf32> to vector<2x64xf32>
    %514 = arith.mulf %510, %513 : vector<2x64xf32>
    %515 = arith.addf %512, %514 : vector<2x64xf32>
    %516 = math.tanh %515 : vector<2x64xf32>
    %cst_65 = arith.constant 1.000000e+00 : f32
    %517 = vector.broadcast %cst_65 : f32 to vector<2x64xf32>
    %518 = arith.subf %517, %511 : vector<2x64xf32>
    %519 = arith.mulf %518, %516 : vector<2x64xf32>
    %520 = arith.mulf %511, %487 : vector<2x64xf32>
    %521 = arith.addf %519, %520 : vector<2x64xf32>
    %522 = vector.extract_strided_slice %44 {offsets = [14, 0, 0], sizes = [1, 2, 192], strides = [1, 1, 1]} : vector<15x2x192xf32> to vector<1x2x192xf32>
    %523 = vector.shape_cast %522 : vector<1x2x192xf32> to vector<2x192xf32>
    %524 = vector.extract_strided_slice %44 {offsets = [0, 0, 0], sizes = [1, 2, 192], strides = [1, 1, 1]} : vector<15x2x192xf32> to vector<1x2x192xf32>
    %525 = vector.shape_cast %524 : vector<1x2x192xf32> to vector<2x192xf32>
    %526 = vector.extract_strided_slice %523 {offsets = [0, 0], sizes = [2, 32], strides = [1, 1]} : vector<2x192xf32> to vector<2x32xf32>
    %527 = vector.extract_strided_slice %525 {offsets = [0, 32], sizes = [2, 32], strides = [1, 1]} : vector<2x192xf32> to vector<2x32xf32>
    %528 = vector.extract_strided_slice %523 {offsets = [0, 64], sizes = [2, 32], strides = [1, 1]} : vector<2x192xf32> to vector<2x32xf32>
    %529 = vector.extract_strided_slice %525 {offsets = [0, 96], sizes = [2, 32], strides = [1, 1]} : vector<2x192xf32> to vector<2x32xf32>
    %530 = vector.extract_strided_slice %523 {offsets = [0, 128], sizes = [2, 32], strides = [1, 1]} : vector<2x192xf32> to vector<2x32xf32>
    %531 = vector.extract_strided_slice %525 {offsets = [0, 160], sizes = [2, 32], strides = [1, 1]} : vector<2x192xf32> to vector<2x32xf32>
    %532 = tpu.concatenate %526, %527, %528, %529, %530, %531 in 1 : vector<2x32xf32>, vector<2x32xf32>, vector<2x32xf32>, vector<2x32xf32>, vector<2x32xf32>, vector<2x32xf32> -> vector<2x192xf32>
    %cst_66 = arith.constant dense<0.000000e+00> : vector<2x192xf32>
    %533 = tpu.matmul %521, %38, %cst_66 {dimension_numbers = #tpu.dot_dimension_numbers<[1], [0], [0], [1], [0, 0, 1, 1], [], []>} : vector<2x64xf32>, vector<64x192xf32>, vector<2x192xf32> -> vector<2x192xf32>
    %534 = vector.broadcast %40 : vector<1x192xf32> to vector<2x192xf32>
    %535 = arith.addf %533, %534 : vector<2x192xf32>
    %536 = vector.extract_strided_slice %532 {offsets = [0, 0], sizes = [2, 128], strides = [1, 1]} : vector<2x192xf32> to vector<2x128xf32>
    %537 = vector.extract_strided_slice %535 {offsets = [0, 0], sizes = [2, 128], strides = [1, 1]} : vector<2x192xf32> to vector<2x128xf32>
    %538 = arith.addf %536, %537 : vector<2x128xf32>
    %539 = arith.negf %538 : vector<2x128xf32>
    %540 = math.exp %539 : vector<2x128xf32>
    %cst_67 = arith.constant 1.000000e+00 : f32
    %541 = vector.broadcast %cst_67 : f32 to vector<2x128xf32>
    %542 = arith.addf %541, %540 : vector<2x128xf32>
    %543 = arith.divf %541, %542 : vector<2x128xf32>
    %544 = vector.extract_strided_slice %543 {offsets = [0, 0], sizes = [2, 64], strides = [1, 1]} : vector<2x128xf32> to vector<2x64xf32>
    %545 = vector.extract_strided_slice %543 {offsets = [0, 64], sizes = [2, 64], strides = [1, 1]} : vector<2x128xf32> to vector<2x64xf32>
    %546 = vector.extract_strided_slice %532 {offsets = [0, 128], sizes = [2, 64], strides = [1, 1]} : vector<2x192xf32> to vector<2x64xf32>
    %547 = vector.extract_strided_slice %535 {offsets = [0, 128], sizes = [2, 64], strides = [1, 1]} : vector<2x192xf32> to vector<2x64xf32>
    %548 = arith.mulf %544, %547 : vector<2x64xf32>
    %549 = arith.addf %546, %548 : vector<2x64xf32>
    %550 = math.tanh %549 : vector<2x64xf32>
    %cst_68 = arith.constant 1.000000e+00 : f32
    %551 = vector.broadcast %cst_68 : f32 to vector<2x64xf32>
    %552 = arith.subf %551, %545 : vector<2x64xf32>
    %553 = arith.mulf %552, %550 : vector<2x64xf32>
    %554 = arith.mulf %545, %521 : vector<2x64xf32>
    %555 = arith.addf %553, %554 : vector<2x64xf32>
    %556 = vector.extract_strided_slice %79 {offsets = [0, 0], sizes = [2, 32], strides = [1, 1]} : vector<2x64xf32> to vector<2x32xf32>
    %557 = vector.extract_strided_slice %555 {offsets = [0, 32], sizes = [2, 32], strides = [1, 1]} : vector<2x64xf32> to vector<2x32xf32>
    %558 = tpu.concatenate %556, %557 in 1 : vector<2x32xf32>, vector<2x32xf32> -> vector<2x64xf32>
    %559 = vector.extract_strided_slice %113 {offsets = [0, 0], sizes = [2, 32], strides = [1, 1]} : vector<2x64xf32> to vector<2x32xf32>
    %560 = vector.extract_strided_slice %521 {offsets = [0, 32], sizes = [2, 32], strides = [1, 1]} : vector<2x64xf32> to vector<2x32xf32>
    %561 = tpu.concatenate %559, %560 in 1 : vector<2x32xf32>, vector<2x32xf32> -> vector<2x64xf32>
    %562 = vector.extract_strided_slice %147 {offsets = [0, 0], sizes = [2, 32], strides = [1, 1]} : vector<2x64xf32> to vector<2x32xf32>
    %563 = vector.extract_strided_slice %487 {offsets = [0, 32], sizes = [2, 32], strides = [1, 1]} : vector<2x64xf32> to vector<2x32xf32>
    %564 = tpu.concatenate %562, %563 in 1 : vector<2x32xf32>, vector<2x32xf32> -> vector<2x64xf32>
    %565 = vector.extract_strided_slice %181 {offsets = [0, 0], sizes = [2, 32], strides = [1, 1]} : vector<2x64xf32> to vector<2x32xf32>
    %566 = vector.extract_strided_slice %453 {offsets = [0, 32], sizes = [2, 32], strides = [1, 1]} : vector<2x64xf32> to vector<2x32xf32>
    %567 = tpu.concatenate %565, %566 in 1 : vector<2x32xf32>, vector<2x32xf32> -> vector<2x64xf32>
    %568 = vector.extract_strided_slice %215 {offsets = [0, 0], sizes = [2, 32], strides = [1, 1]} : vector<2x64xf32> to vector<2x32xf32>
    %569 = vector.extract_strided_slice %419 {offsets = [0, 32], sizes = [2, 32], strides = [1, 1]} : vector<2x64xf32> to vector<2x32xf32>
    %570 = tpu.concatenate %568, %569 in 1 : vector<2x32xf32>, vector<2x32xf32> -> vector<2x64xf32>
    %571 = vector.extract_strided_slice %249 {offsets = [0, 0], sizes = [2, 32], strides = [1, 1]} : vector<2x64xf32> to vector<2x32xf32>
    %572 = vector.extract_strided_slice %385 {offsets = [0, 32], sizes = [2, 32], strides = [1, 1]} : vector<2x64xf32> to vector<2x32xf32>
    %573 = tpu.concatenate %571, %572 in 1 : vector<2x32xf32>, vector<2x32xf32> -> vector<2x64xf32>
    %574 = vector.extract_strided_slice %283 {offsets = [0, 0], sizes = [2, 32], strides = [1, 1]} : vector<2x64xf32> to vector<2x32xf32>
    %575 = vector.extract_strided_slice %351 {offsets = [0, 32], sizes = [2, 32], strides = [1, 1]} : vector<2x64xf32> to vector<2x32xf32>
    %576 = tpu.concatenate %574, %575 in 1 : vector<2x32xf32>, vector<2x32xf32> -> vector<2x64xf32>
    %577 = vector.extract_strided_slice %317 {offsets = [0, 0], sizes = [2, 32], strides = [1, 1]} : vector<2x64xf32> to vector<2x32xf32>
    %578 = vector.extract_strided_slice %317 {offsets = [0, 32], sizes = [2, 32], strides = [1, 1]} : vector<2x64xf32> to vector<2x32xf32>
    %579 = tpu.concatenate %577, %578 in 1 : vector<2x32xf32>, vector<2x32xf32> -> vector<2x64xf32>
    %580 = vector.extract_strided_slice %351 {offsets = [0, 0], sizes = [2, 32], strides = [1, 1]} : vector<2x64xf32> to vector<2x32xf32>
    %581 = vector.extract_strided_slice %283 {offsets = [0, 32], sizes = [2, 32], strides = [1, 1]} : vector<2x64xf32> to vector<2x32xf32>
    %582 = tpu.concatenate %580, %581 in 1 : vector<2x32xf32>, vector<2x32xf32> -> vector<2x64xf32>
    %583 = vector.extract_strided_slice %385 {offsets = [0, 0], sizes = [2, 32], strides = [1, 1]} : vector<2x64xf32> to vector<2x32xf32>
    %584 = vector.extract_strided_slice %249 {offsets = [0, 32], sizes = [2, 32], strides = [1, 1]} : vector<2x64xf32> to vector<2x32xf32>
    %585 = tpu.concatenate %583, %584 in 1 : vector<2x32xf32>, vector<2x32xf32> -> vector<2x64xf32>
    %586 = vector.extract_strided_slice %419 {offsets = [0, 0], sizes = [2, 32], strides = [1, 1]} : vector<2x64xf32> to vector<2x32xf32>
    %587 = vector.extract_strided_slice %215 {offsets = [0, 32], sizes = [2, 32], strides = [1, 1]} : vector<2x64xf32> to vector<2x32xf32>
    %588 = tpu.concatenate %586, %587 in 1 : vector<2x32xf32>, vector<2x32xf32> -> vector<2x64xf32>
    %589 = vector.extract_strided_slice %453 {offsets = [0, 0], sizes = [2, 32], strides = [1, 1]} : vector<2x64xf32> to vector<2x32xf32>
    %590 = vector.extract_strided_slice %181 {offsets = [0, 32], sizes = [2, 32], strides = [1, 1]} : vector<2x64xf32> to vector<2x32xf32>
    %591 = tpu.concatenate %589, %590 in 1 : vector<2x32xf32>, vector<2x32xf32> -> vector<2x64xf32>
    %592 = vector.extract_strided_slice %487 {offsets = [0, 0], sizes = [2, 32], strides = [1, 1]} : vector<2x64xf32> to vector<2x32xf32>
    %593 = vector.extract_strided_slice %147 {offsets = [0, 32], sizes = [2, 32], strides = [1, 1]} : vector<2x64xf32> to vector<2x32xf32>
    %594 = tpu.concatenate %592, %593 in 1 : vector<2x32xf32>, vector<2x32xf32> -> vector<2x64xf32>
    %595 = vector.extract_strided_slice %521 {offsets = [0, 0], sizes = [2, 32], strides = [1, 1]} : vector<2x64xf32> to vector<2x32xf32>
    %596 = vector.extract_strided_slice %113 {offsets = [0, 32], sizes = [2, 32], strides = [1, 1]} : vector<2x64xf32> to vector<2x32xf32>
    %597 = tpu.concatenate %595, %596 in 1 : vector<2x32xf32>, vector<2x32xf32> -> vector<2x64xf32>
    %598 = vector.extract_strided_slice %555 {offsets = [0, 0], sizes = [2, 32], strides = [1, 1]} : vector<2x64xf32> to vector<2x32xf32>
    %599 = vector.extract_strided_slice %79 {offsets = [0, 32], sizes = [2, 32], strides = [1, 1]} : vector<2x64xf32> to vector<2x32xf32>
    %600 = tpu.concatenate %598, %599 in 1 : vector<2x32xf32>, vector<2x32xf32> -> vector<2x64xf32>
    %601 = vector.shape_cast %558 : vector<2x64xf32> to vector<1x2x64xf32>
    %602 = vector.shape_cast %561 : vector<2x64xf32> to vector<1x2x64xf32>
    %603 = vector.shape_cast %564 : vector<2x64xf32> to vector<1x2x64xf32>
    %604 = vector.shape_cast %567 : vector<2x64xf32> to vector<1x2x64xf32>
    %605 = vector.shape_cast %570 : vector<2x64xf32> to vector<1x2x64xf32>
    %606 = vector.shape_cast %573 : vector<2x64xf32> to vector<1x2x64xf32>
    %607 = vector.shape_cast %576 : vector<2x64xf32> to vector<1x2x64xf32>
    %608 = vector.shape_cast %579 : vector<2x64xf32> to vector<1x2x64xf32>
    %609 = vector.shape_cast %582 : vector<2x64xf32> to vector<1x2x64xf32>
    %610 = vector.shape_cast %585 : vector<2x64xf32> to vector<1x2x64xf32>
    %611 = vector.shape_cast %588 : vector<2x64xf32> to vector<1x2x64xf32>
    %612 = vector.shape_cast %591 : vector<2x64xf32> to vector<1x2x64xf32>
    %613 = vector.shape_cast %594 : vector<2x64xf32> to vector<1x2x64xf32>
    %614 = vector.shape_cast %597 : vector<2x64xf32> to vector<1x2x64xf32>
    %615 = vector.shape_cast %600 : vector<2x64xf32> to vector<1x2x64xf32>
    %616 = tpu.concatenate %601, %602, %603, %604, %605, %606, %607, %608, %609, %610, %611, %612, %613, %614, %615 in 0 : vector<1x2x64xf32>, vector<1x2x64xf32>, vector<1x2x64xf32>, vector<1x2x64xf32>, vector<1x2x64xf32>, vector<1x2x64xf32>, vector<1x2x64xf32>, vector<1x2x64xf32>, vector<1x2x64xf32>, vector<1x2x64xf32>, vector<1x2x64xf32>, vector<1x2x64xf32>, vector<1x2x64xf32>, vector<1x2x64xf32>, vector<1x2x64xf32> -> vector<15x2x64xf32>
    %c0_69 = arith.constant 0 : index
    %c0_70 = arith.constant 0 : index
    %617 = vector.load %arg9[%c0_69, %c0_70] : memref<64x192xf32, #tpu.memory_space<vmem>>, vector<64x192xf32>
    %c0_71 = arith.constant 0 : index
    %c0_72 = arith.constant 0 : index
    %618 = vector.load %arg10[%c0_71, %c0_72] : memref<64x192xf32, #tpu.memory_space<vmem>>, vector<64x192xf32>
    %c0_73 = arith.constant 0 : index
    %c0_74 = arith.constant 0 : index
    %619 = vector.load %arg11[%c0_73, %c0_74] : memref<1x192xf32, #tpu.memory_space<vmem>>, vector<1x192xf32>
    %c0_75 = arith.constant 0 : index
    %c0_76 = arith.constant 0 : index
    %620 = vector.load %arg12[%c0_75, %c0_76] : memref<1x192xf32, #tpu.memory_space<vmem>>, vector<1x192xf32>
    "tpu.trace_start"() <{level = 10 : i32, message = "tbc,cg->tbg"}> : () -> ()
    %cst_77 = arith.constant dense<0.000000e+00> : vector<15x2x192xf32>
    %621 = tpu.matmul %616, %617, %cst_77 {dimension_numbers = #tpu.dot_dimension_numbers<[2], [0], [0, 1], [1], [0, 0, 0, 1, 1, 1], [], []>} : vector<15x2x64xf32>, vector<64x192xf32>, vector<15x2x192xf32> -> vector<15x2x192xf32>
    "tpu.trace_stop"() : () -> ()
    %622 = vector.shape_cast %619 : vector<1x192xf32> to vector<1x1x192xf32>
    %623 = vector.broadcast %622 : vector<1x1x192xf32> to vector<15x2x192xf32>
    %624 = arith.addf %621, %623 : vector<15x2x192xf32>
    %cst_78 = arith.constant 0.000000e+00 : f32
    %625 = vector.broadcast %cst_78 : f32 to vector<2x64xf32>
    %626 = vector.extract_strided_slice %624 {offsets = [0, 0, 0], sizes = [1, 2, 192], strides = [1, 1, 1]} : vector<15x2x192xf32> to vector<1x2x192xf32>
    %627 = vector.shape_cast %626 : vector<1x2x192xf32> to vector<2x192xf32>
    %628 = vector.extract_strided_slice %624 {offsets = [14, 0, 0], sizes = [1, 2, 192], strides = [1, 1, 1]} : vector<15x2x192xf32> to vector<1x2x192xf32>
    %629 = vector.shape_cast %628 : vector<1x2x192xf32> to vector<2x192xf32>
    %630 = vector.extract_strided_slice %627 {offsets = [0, 0], sizes = [2, 32], strides = [1, 1]} : vector<2x192xf32> to vector<2x32xf32>
    %631 = vector.extract_strided_slice %629 {offsets = [0, 32], sizes = [2, 32], strides = [1, 1]} : vector<2x192xf32> to vector<2x32xf32>
    %632 = vector.extract_strided_slice %627 {offsets = [0, 64], sizes = [2, 32], strides = [1, 1]} : vector<2x192xf32> to vector<2x32xf32>
    %633 = vector.extract_strided_slice %629 {offsets = [0, 96], sizes = [2, 32], strides = [1, 1]} : vector<2x192xf32> to vector<2x32xf32>
    %634 = vector.extract_strided_slice %627 {offsets = [0, 128], sizes = [2, 32], strides = [1, 1]} : vector<2x192xf32> to vector<2x32xf32>
    %635 = vector.extract_strided_slice %629 {offsets = [0, 160], sizes = [2, 32], strides = [1, 1]} : vector<2x192xf32> to vector<2x32xf32>
    %636 = tpu.concatenate %630, %631, %632, %633, %634, %635 in 1 : vector<2x32xf32>, vector<2x32xf32>, vector<2x32xf32>, vector<2x32xf32>, vector<2x32xf32>, vector<2x32xf32> -> vector<2x192xf32>
    %cst_79 = arith.constant dense<0.000000e+00> : vector<2x192xf32>
    %637 = tpu.matmul %625, %618, %cst_79 {dimension_numbers = #tpu.dot_dimension_numbers<[1], [0], [0], [1], [0, 0, 1, 1], [], []>} : vector<2x64xf32>, vector<64x192xf32>, vector<2x192xf32> -> vector<2x192xf32>
    %638 = vector.broadcast %620 : vector<1x192xf32> to vector<2x192xf32>
    %639 = arith.addf %637, %638 : vector<2x192xf32>
    %640 = vector.extract_strided_slice %636 {offsets = [0, 0], sizes = [2, 128], strides = [1, 1]} : vector<2x192xf32> to vector<2x128xf32>
    %641 = vector.extract_strided_slice %639 {offsets = [0, 0], sizes = [2, 128], strides = [1, 1]} : vector<2x192xf32> to vector<2x128xf32>
    %642 = arith.addf %640, %641 : vector<2x128xf32>
    %643 = arith.negf %642 : vector<2x128xf32>
    %644 = math.exp %643 : vector<2x128xf32>
    %cst_80 = arith.constant 1.000000e+00 : f32
    %645 = vector.broadcast %cst_80 : f32 to vector<2x128xf32>
    %646 = arith.addf %645, %644 : vector<2x128xf32>
    %647 = arith.divf %645, %646 : vector<2x128xf32>
    %648 = vector.extract_strided_slice %647 {offsets = [0, 0], sizes = [2, 64], strides = [1, 1]} : vector<2x128xf32> to vector<2x64xf32>
    %649 = vector.extract_strided_slice %647 {offsets = [0, 64], sizes = [2, 64], strides = [1, 1]} : vector<2x128xf32> to vector<2x64xf32>
    %650 = vector.extract_strided_slice %636 {offsets = [0, 128], sizes = [2, 64], strides = [1, 1]} : vector<2x192xf32> to vector<2x64xf32>
    %651 = vector.extract_strided_slice %639 {offsets = [0, 128], sizes = [2, 64], strides = [1, 1]} : vector<2x192xf32> to vector<2x64xf32>
    %652 = arith.mulf %648, %651 : vector<2x64xf32>
    %653 = arith.addf %650, %652 : vector<2x64xf32>
    %654 = math.tanh %653 : vector<2x64xf32>
    %cst_81 = arith.constant 1.000000e+00 : f32
    %655 = vector.broadcast %cst_81 : f32 to vector<2x64xf32>
    %656 = arith.subf %655, %649 : vector<2x64xf32>
    %657 = arith.mulf %656, %654 : vector<2x64xf32>
    %658 = arith.mulf %649, %625 : vector<2x64xf32>
    %659 = arith.addf %657, %658 : vector<2x64xf32>
    %660 = vector.extract_strided_slice %624 {offsets = [1, 0, 0], sizes = [1, 2, 192], strides = [1, 1, 1]} : vector<15x2x192xf32> to vector<1x2x192xf32>
    %661 = vector.shape_cast %660 : vector<1x2x192xf32> to vector<2x192xf32>
    %662 = vector.extract_strided_slice %624 {offsets = [13, 0, 0], sizes = [1, 2, 192], strides = [1, 1, 1]} : vector<15x2x192xf32> to vector<1x2x192xf32>
    %663 = vector.shape_cast %662 : vector<1x2x192xf32> to vector<2x192xf32>
    %664 = vector.extract_strided_slice %661 {offsets = [0, 0], sizes = [2, 32], strides = [1, 1]} : vector<2x192xf32> to vector<2x32xf32>
    %665 = vector.extract_strided_slice %663 {offsets = [0, 32], sizes = [2, 32], strides = [1, 1]} : vector<2x192xf32> to vector<2x32xf32>
    %666 = vector.extract_strided_slice %661 {offsets = [0, 64], sizes = [2, 32], strides = [1, 1]} : vector<2x192xf32> to vector<2x32xf32>
    %667 = vector.extract_strided_slice %663 {offsets = [0, 96], sizes = [2, 32], strides = [1, 1]} : vector<2x192xf32> to vector<2x32xf32>
    %668 = vector.extract_strided_slice %661 {offsets = [0, 128], sizes = [2, 32], strides = [1, 1]} : vector<2x192xf32> to vector<2x32xf32>
    %669 = vector.extract_strided_slice %663 {offsets = [0, 160], sizes = [2, 32], strides = [1, 1]} : vector<2x192xf32> to vector<2x32xf32>
    %670 = tpu.concatenate %664, %665, %666, %667, %668, %669 in 1 : vector<2x32xf32>, vector<2x32xf32>, vector<2x32xf32>, vector<2x32xf32>, vector<2x32xf32>, vector<2x32xf32> -> vector<2x192xf32>
    %cst_82 = arith.constant dense<0.000000e+00> : vector<2x192xf32>
    %671 = tpu.matmul %659, %618, %cst_82 {dimension_numbers = #tpu.dot_dimension_numbers<[1], [0], [0], [1], [0, 0, 1, 1], [], []>} : vector<2x64xf32>, vector<64x192xf32>, vector<2x192xf32> -> vector<2x192xf32>
    %672 = vector.broadcast %620 : vector<1x192xf32> to vector<2x192xf32>
    %673 = arith.addf %671, %672 : vector<2x192xf32>
    %674 = vector.extract_strided_slice %670 {offsets = [0, 0], sizes = [2, 128], strides = [1, 1]} : vector<2x192xf32> to vector<2x128xf32>
    %675 = vector.extract_strided_slice %673 {offsets = [0, 0], sizes = [2, 128], strides = [1, 1]} : vector<2x192xf32> to vector<2x128xf32>
    %676 = arith.addf %674, %675 : vector<2x128xf32>
    %677 = arith.negf %676 : vector<2x128xf32>
    %678 = math.exp %677 : vector<2x128xf32>
    %cst_83 = arith.constant 1.000000e+00 : f32
    %679 = vector.broadcast %cst_83 : f32 to vector<2x128xf32>
    %680 = arith.addf %679, %678 : vector<2x128xf32>
    %681 = arith.divf %679, %680 : vector<2x128xf32>
    %682 = vector.extract_strided_slice %681 {offsets = [0, 0], sizes = [2, 64], strides = [1, 1]} : vector<2x128xf32> to vector<2x64xf32>
    %683 = vector.extract_strided_slice %681 {offsets = [0, 64], sizes = [2, 64], strides = [1, 1]} : vector<2x128xf32> to vector<2x64xf32>
    %684 = vector.extract_strided_slice %670 {offsets = [0, 128], sizes = [2, 64], strides = [1, 1]} : vector<2x192xf32> to vector<2x64xf32>
    %685 = vector.extract_strided_slice %673 {offsets = [0, 128], sizes = [2, 64], strides = [1, 1]} : vector<2x192xf32> to vector<2x64xf32>
    %686 = arith.mulf %682, %685 : vector<2x64xf32>
    %687 = arith.addf %684, %686 : vector<2x64xf32>
    %688 = math.tanh %687 : vector<2x64xf32>
    %cst_84 = arith.constant 1.000000e+00 : f32
    %689 = vector.broadcast %cst_84 : f32 to vector<2x64xf32>
    %690 = arith.subf %689, %683 : vector<2x64xf32>
    %691 = arith.mulf %690, %688 : vector<2x64xf32>
    %692 = arith.mulf %683, %659 : vector<2x64xf32>
    %693 = arith.addf %691, %692 : vector<2x64xf32>
    %694 = vector.extract_strided_slice %624 {offsets = [2, 0, 0], sizes = [1, 2, 192], strides = [1, 1, 1]} : vector<15x2x192xf32> to vector<1x2x192xf32>
    %695 = vector.shape_cast %694 : vector<1x2x192xf32> to vector<2x192xf32>
    %696 = vector.extract_strided_slice %624 {offsets = [12, 0, 0], sizes = [1, 2, 192], strides = [1, 1, 1]} : vector<15x2x192xf32> to vector<1x2x192xf32>
    %697 = vector.shape_cast %696 : vector<1x2x192xf32> to vector<2x192xf32>
    %698 = vector.extract_strided_slice %695 {offsets = [0, 0], sizes = [2, 32], strides = [1, 1]} : vector<2x192xf32> to vector<2x32xf32>
    %699 = vector.extract_strided_slice %697 {offsets = [0, 32], sizes = [2, 32], strides = [1, 1]} : vector<2x192xf32> to vector<2x32xf32>
    %700 = vector.extract_strided_slice %695 {offsets = [0, 64], sizes = [2, 32], strides = [1, 1]} : vector<2x192xf32> to vector<2x32xf32>
    %701 = vector.extract_strided_slice %697 {offsets = [0, 96], sizes = [2, 32], strides = [1, 1]} : vector<2x192xf32> to vector<2x32xf32>
    %702 = vector.extract_strided_slice %695 {offsets = [0, 128], sizes = [2, 32], strides = [1, 1]} : vector<2x192xf32> to vector<2x32xf32>
    %703 = vector.extract_strided_slice %697 {offsets = [0, 160], sizes = [2, 32], strides = [1, 1]} : vector<2x192xf32> to vector<2x32xf32>
    %704 = tpu.concatenate %698, %699, %700, %701, %702, %703 in 1 : vector<2x32xf32>, vector<2x32xf32>, vector<2x32xf32>, vector<2x32xf32>, vector<2x32xf32>, vector<2x32xf32> -> vector<2x192xf32>
    %cst_85 = arith.constant dense<0.000000e+00> : vector<2x192xf32>
    %705 = tpu.matmul %693, %618, %cst_85 {dimension_numbers = #tpu.dot_dimension_numbers<[1], [0], [0], [1], [0, 0, 1, 1], [], []>} : vector<2x64xf32>, vector<64x192xf32>, vector<2x192xf32> -> vector<2x192xf32>
    %706 = vector.broadcast %620 : vector<1x192xf32> to vector<2x192xf32>
    %707 = arith.addf %705, %706 : vector<2x192xf32>
    %708 = vector.extract_strided_slice %704 {offsets = [0, 0], sizes = [2, 128], strides = [1, 1]} : vector<2x192xf32> to vector<2x128xf32>
    %709 = vector.extract_strided_slice %707 {offsets = [0, 0], sizes = [2, 128], strides = [1, 1]} : vector<2x192xf32> to vector<2x128xf32>
    %710 = arith.addf %708, %709 : vector<2x128xf32>
    %711 = arith.negf %710 : vector<2x128xf32>
    %712 = math.exp %711 : vector<2x128xf32>
    %cst_86 = arith.constant 1.000000e+00 : f32
    %713 = vector.broadcast %cst_86 : f32 to vector<2x128xf32>
    %714 = arith.addf %713, %712 : vector<2x128xf32>
    %715 = arith.divf %713, %714 : vector<2x128xf32>
    %716 = vector.extract_strided_slice %715 {offsets = [0, 0], sizes = [2, 64], strides = [1, 1]} : vector<2x128xf32> to vector<2x64xf32>
    %717 = vector.extract_strided_slice %715 {offsets = [0, 64], sizes = [2, 64], strides = [1, 1]} : vector<2x128xf32> to vector<2x64xf32>
    %718 = vector.extract_strided_slice %704 {offsets = [0, 128], sizes = [2, 64], strides = [1, 1]} : vector<2x192xf32> to vector<2x64xf32>
    %719 = vector.extract_strided_slice %707 {offsets = [0, 128], sizes = [2, 64], strides = [1, 1]} : vector<2x192xf32> to vector<2x64xf32>
    %720 = arith.mulf %716, %719 : vector<2x64xf32>
    %721 = arith.addf %718, %720 : vector<2x64xf32>
    %722 = math.tanh %721 : vector<2x64xf32>
    %cst_87 = arith.constant 1.000000e+00 : f32
    %723 = vector.broadcast %cst_87 : f32 to vector<2x64xf32>
    %724 = arith.subf %723, %717 : vector<2x64xf32>
    %725 = arith.mulf %724, %722 : vector<2x64xf32>
    %726 = arith.mulf %717, %693 : vector<2x64xf32>
    %727 = arith.addf %725, %726 : vector<2x64xf32>
    %728 = vector.extract_strided_slice %624 {offsets = [3, 0, 0], sizes = [1, 2, 192], strides = [1, 1, 1]} : vector<15x2x192xf32> to vector<1x2x192xf32>
    %729 = vector.shape_cast %728 : vector<1x2x192xf32> to vector<2x192xf32>
    %730 = vector.extract_strided_slice %624 {offsets = [11, 0, 0], sizes = [1, 2, 192], strides = [1, 1, 1]} : vector<15x2x192xf32> to vector<1x2x192xf32>
    %731 = vector.shape_cast %730 : vector<1x2x192xf32> to vector<2x192xf32>
    %732 = vector.extract_strided_slice %729 {offsets = [0, 0], sizes = [2, 32], strides = [1, 1]} : vector<2x192xf32> to vector<2x32xf32>
    %733 = vector.extract_strided_slice %731 {offsets = [0, 32], sizes = [2, 32], strides = [1, 1]} : vector<2x192xf32> to vector<2x32xf32>
    %734 = vector.extract_strided_slice %729 {offsets = [0, 64], sizes = [2, 32], strides = [1, 1]} : vector<2x192xf32> to vector<2x32xf32>
    %735 = vector.extract_strided_slice %731 {offsets = [0, 96], sizes = [2, 32], strides = [1, 1]} : vector<2x192xf32> to vector<2x32xf32>
    %736 = vector.extract_strided_slice %729 {offsets = [0, 128], sizes = [2, 32], strides = [1, 1]} : vector<2x192xf32> to vector<2x32xf32>
    %737 = vector.extract_strided_slice %731 {offsets = [0, 160], sizes = [2, 32], strides = [1, 1]} : vector<2x192xf32> to vector<2x32xf32>
    %738 = tpu.concatenate %732, %733, %734, %735, %736, %737 in 1 : vector<2x32xf32>, vector<2x32xf32>, vector<2x32xf32>, vector<2x32xf32>, vector<2x32xf32>, vector<2x32xf32> -> vector<2x192xf32>
    %cst_88 = arith.constant dense<0.000000e+00> : vector<2x192xf32>
    %739 = tpu.matmul %727, %618, %cst_88 {dimension_numbers = #tpu.dot_dimension_numbers<[1], [0], [0], [1], [0, 0, 1, 1], [], []>} : vector<2x64xf32>, vector<64x192xf32>, vector<2x192xf32> -> vector<2x192xf32>
    %740 = vector.broadcast %620 : vector<1x192xf32> to vector<2x192xf32>
    %741 = arith.addf %739, %740 : vector<2x192xf32>
    %742 = vector.extract_strided_slice %738 {offsets = [0, 0], sizes = [2, 128], strides = [1, 1]} : vector<2x192xf32> to vector<2x128xf32>
    %743 = vector.extract_strided_slice %741 {offsets = [0, 0], sizes = [2, 128], strides = [1, 1]} : vector<2x192xf32> to vector<2x128xf32>
    %744 = arith.addf %742, %743 : vector<2x128xf32>
    %745 = arith.negf %744 : vector<2x128xf32>
    %746 = math.exp %745 : vector<2x128xf32>
    %cst_89 = arith.constant 1.000000e+00 : f32
    %747 = vector.broadcast %cst_89 : f32 to vector<2x128xf32>
    %748 = arith.addf %747, %746 : vector<2x128xf32>
    %749 = arith.divf %747, %748 : vector<2x128xf32>
    %750 = vector.extract_strided_slice %749 {offsets = [0, 0], sizes = [2, 64], strides = [1, 1]} : vector<2x128xf32> to vector<2x64xf32>
    %751 = vector.extract_strided_slice %749 {offsets = [0, 64], sizes = [2, 64], strides = [1, 1]} : vector<2x128xf32> to vector<2x64xf32>
    %752 = vector.extract_strided_slice %738 {offsets = [0, 128], sizes = [2, 64], strides = [1, 1]} : vector<2x192xf32> to vector<2x64xf32>
    %753 = vector.extract_strided_slice %741 {offsets = [0, 128], sizes = [2, 64], strides = [1, 1]} : vector<2x192xf32> to vector<2x64xf32>
    %754 = arith.mulf %750, %753 : vector<2x64xf32>
    %755 = arith.addf %752, %754 : vector<2x64xf32>
    %756 = math.tanh %755 : vector<2x64xf32>
    %cst_90 = arith.constant 1.000000e+00 : f32
    %757 = vector.broadcast %cst_90 : f32 to vector<2x64xf32>
    %758 = arith.subf %757, %751 : vector<2x64xf32>
    %759 = arith.mulf %758, %756 : vector<2x64xf32>
    %760 = arith.mulf %751, %727 : vector<2x64xf32>
    %761 = arith.addf %759, %760 : vector<2x64xf32>
    %762 = vector.extract_strided_slice %624 {offsets = [4, 0, 0], sizes = [1, 2, 192], strides = [1, 1, 1]} : vector<15x2x192xf32> to vector<1x2x192xf32>
    %763 = vector.shape_cast %762 : vector<1x2x192xf32> to vector<2x192xf32>
    %764 = vector.extract_strided_slice %624 {offsets = [10, 0, 0], sizes = [1, 2, 192], strides = [1, 1, 1]} : vector<15x2x192xf32> to vector<1x2x192xf32>
    %765 = vector.shape_cast %764 : vector<1x2x192xf32> to vector<2x192xf32>
    %766 = vector.extract_strided_slice %763 {offsets = [0, 0], sizes = [2, 32], strides = [1, 1]} : vector<2x192xf32> to vector<2x32xf32>
    %767 = vector.extract_strided_slice %765 {offsets = [0, 32], sizes = [2, 32], strides = [1, 1]} : vector<2x192xf32> to vector<2x32xf32>
    %768 = vector.extract_strided_slice %763 {offsets = [0, 64], sizes = [2, 32], strides = [1, 1]} : vector<2x192xf32> to vector<2x32xf32>
    %769 = vector.extract_strided_slice %765 {offsets = [0, 96], sizes = [2, 32], strides = [1, 1]} : vector<2x192xf32> to vector<2x32xf32>
    %770 = vector.extract_strided_slice %763 {offsets = [0, 128], sizes = [2, 32], strides = [1, 1]} : vector<2x192xf32> to vector<2x32xf32>
    %771 = vector.extract_strided_slice %765 {offsets = [0, 160], sizes = [2, 32], strides = [1, 1]} : vector<2x192xf32> to vector<2x32xf32>
    %772 = tpu.concatenate %766, %767, %768, %769, %770, %771 in 1 : vector<2x32xf32>, vector<2x32xf32>, vector<2x32xf32>, vector<2x32xf32>, vector<2x32xf32>, vector<2x32xf32> -> vector<2x192xf32>
    %cst_91 = arith.constant dense<0.000000e+00> : vector<2x192xf32>
    %773 = tpu.matmul %761, %618, %cst_91 {dimension_numbers = #tpu.dot_dimension_numbers<[1], [0], [0], [1], [0, 0, 1, 1], [], []>} : vector<2x64xf32>, vector<64x192xf32>, vector<2x192xf32> -> vector<2x192xf32>
    %774 = vector.broadcast %620 : vector<1x192xf32> to vector<2x192xf32>
    %775 = arith.addf %773, %774 : vector<2x192xf32>
    %776 = vector.extract_strided_slice %772 {offsets = [0, 0], sizes = [2, 128], strides = [1, 1]} : vector<2x192xf32> to vector<2x128xf32>
    %777 = vector.extract_strided_slice %775 {offsets = [0, 0], sizes = [2, 128], strides = [1, 1]} : vector<2x192xf32> to vector<2x128xf32>
    %778 = arith.addf %776, %777 : vector<2x128xf32>
    %779 = arith.negf %778 : vector<2x128xf32>
    %780 = math.exp %779 : vector<2x128xf32>
    %cst_92 = arith.constant 1.000000e+00 : f32
    %781 = vector.broadcast %cst_92 : f32 to vector<2x128xf32>
    %782 = arith.addf %781, %780 : vector<2x128xf32>
    %783 = arith.divf %781, %782 : vector<2x128xf32>
    %784 = vector.extract_strided_slice %783 {offsets = [0, 0], sizes = [2, 64], strides = [1, 1]} : vector<2x128xf32> to vector<2x64xf32>
    %785 = vector.extract_strided_slice %783 {offsets = [0, 64], sizes = [2, 64], strides = [1, 1]} : vector<2x128xf32> to vector<2x64xf32>
    %786 = vector.extract_strided_slice %772 {offsets = [0, 128], sizes = [2, 64], strides = [1, 1]} : vector<2x192xf32> to vector<2x64xf32>
    %787 = vector.extract_strided_slice %775 {offsets = [0, 128], sizes = [2, 64], strides = [1, 1]} : vector<2x192xf32> to vector<2x64xf32>
    %788 = arith.mulf %784, %787 : vector<2x64xf32>
    %789 = arith.addf %786, %788 : vector<2x64xf32>
    %790 = math.tanh %789 : vector<2x64xf32>
    %cst_93 = arith.constant 1.000000e+00 : f32
    %791 = vector.broadcast %cst_93 : f32 to vector<2x64xf32>
    %792 = arith.subf %791, %785 : vector<2x64xf32>
    %793 = arith.mulf %792, %790 : vector<2x64xf32>
    %794 = arith.mulf %785, %761 : vector<2x64xf32>
    %795 = arith.addf %793, %794 : vector<2x64xf32>
    %796 = vector.extract_strided_slice %624 {offsets = [5, 0, 0], sizes = [1, 2, 192], strides = [1, 1, 1]} : vector<15x2x192xf32> to vector<1x2x192xf32>
    %797 = vector.shape_cast %796 : vector<1x2x192xf32> to vector<2x192xf32>
    %798 = vector.extract_strided_slice %624 {offsets = [9, 0, 0], sizes = [1, 2, 192], strides = [1, 1, 1]} : vector<15x2x192xf32> to vector<1x2x192xf32>
    %799 = vector.shape_cast %798 : vector<1x2x192xf32> to vector<2x192xf32>
    %800 = vector.extract_strided_slice %797 {offsets = [0, 0], sizes = [2, 32], strides = [1, 1]} : vector<2x192xf32> to vector<2x32xf32>
    %801 = vector.extract_strided_slice %799 {offsets = [0, 32], sizes = [2, 32], strides = [1, 1]} : vector<2x192xf32> to vector<2x32xf32>
    %802 = vector.extract_strided_slice %797 {offsets = [0, 64], sizes = [2, 32], strides = [1, 1]} : vector<2x192xf32> to vector<2x32xf32>
    %803 = vector.extract_strided_slice %799 {offsets = [0, 96], sizes = [2, 32], strides = [1, 1]} : vector<2x192xf32> to vector<2x32xf32>
    %804 = vector.extract_strided_slice %797 {offsets = [0, 128], sizes = [2, 32], strides = [1, 1]} : vector<2x192xf32> to vector<2x32xf32>
    %805 = vector.extract_strided_slice %799 {offsets = [0, 160], sizes = [2, 32], strides = [1, 1]} : vector<2x192xf32> to vector<2x32xf32>
    %806 = tpu.concatenate %800, %801, %802, %803, %804, %805 in 1 : vector<2x32xf32>, vector<2x32xf32>, vector<2x32xf32>, vector<2x32xf32>, vector<2x32xf32>, vector<2x32xf32> -> vector<2x192xf32>
    %cst_94 = arith.constant dense<0.000000e+00> : vector<2x192xf32>
    %807 = tpu.matmul %795, %618, %cst_94 {dimension_numbers = #tpu.dot_dimension_numbers<[1], [0], [0], [1], [0, 0, 1, 1], [], []>} : vector<2x64xf32>, vector<64x192xf32>, vector<2x192xf32> -> vector<2x192xf32>
    %808 = vector.broadcast %620 : vector<1x192xf32> to vector<2x192xf32>
    %809 = arith.addf %807, %808 : vector<2x192xf32>
    %810 = vector.extract_strided_slice %806 {offsets = [0, 0], sizes = [2, 128], strides = [1, 1]} : vector<2x192xf32> to vector<2x128xf32>
    %811 = vector.extract_strided_slice %809 {offsets = [0, 0], sizes = [2, 128], strides = [1, 1]} : vector<2x192xf32> to vector<2x128xf32>
    %812 = arith.addf %810, %811 : vector<2x128xf32>
    %813 = arith.negf %812 : vector<2x128xf32>
    %814 = math.exp %813 : vector<2x128xf32>
    %cst_95 = arith.constant 1.000000e+00 : f32
    %815 = vector.broadcast %cst_95 : f32 to vector<2x128xf32>
    %816 = arith.addf %815, %814 : vector<2x128xf32>
    %817 = arith.divf %815, %816 : vector<2x128xf32>
    %818 = vector.extract_strided_slice %817 {offsets = [0, 0], sizes = [2, 64], strides = [1, 1]} : vector<2x128xf32> to vector<2x64xf32>
    %819 = vector.extract_strided_slice %817 {offsets = [0, 64], sizes = [2, 64], strides = [1, 1]} : vector<2x128xf32> to vector<2x64xf32>
    %820 = vector.extract_strided_slice %806 {offsets = [0, 128], sizes = [2, 64], strides = [1, 1]} : vector<2x192xf32> to vector<2x64xf32>
    %821 = vector.extract_strided_slice %809 {offsets = [0, 128], sizes = [2, 64], strides = [1, 1]} : vector<2x192xf32> to vector<2x64xf32>
    %822 = arith.mulf %818, %821 : vector<2x64xf32>
    %823 = arith.addf %820, %822 : vector<2x64xf32>
    %824 = math.tanh %823 : vector<2x64xf32>
    %cst_96 = arith.constant 1.000000e+00 : f32
    %825 = vector.broadcast %cst_96 : f32 to vector<2x64xf32>
    %826 = arith.subf %825, %819 : vector<2x64xf32>
    %827 = arith.mulf %826, %824 : vector<2x64xf32>
    %828 = arith.mulf %819, %795 : vector<2x64xf32>
    %829 = arith.addf %827, %828 : vector<2x64xf32>
    %830 = vector.extract_strided_slice %624 {offsets = [6, 0, 0], sizes = [1, 2, 192], strides = [1, 1, 1]} : vector<15x2x192xf32> to vector<1x2x192xf32>
    %831 = vector.shape_cast %830 : vector<1x2x192xf32> to vector<2x192xf32>
    %832 = vector.extract_strided_slice %624 {offsets = [8, 0, 0], sizes = [1, 2, 192], strides = [1, 1, 1]} : vector<15x2x192xf32> to vector<1x2x192xf32>
    %833 = vector.shape_cast %832 : vector<1x2x192xf32> to vector<2x192xf32>
    %834 = vector.extract_strided_slice %831 {offsets = [0, 0], sizes = [2, 32], strides = [1, 1]} : vector<2x192xf32> to vector<2x32xf32>
    %835 = vector.extract_strided_slice %833 {offsets = [0, 32], sizes = [2, 32], strides = [1, 1]} : vector<2x192xf32> to vector<2x32xf32>
    %836 = vector.extract_strided_slice %831 {offsets = [0, 64], sizes = [2, 32], strides = [1, 1]} : vector<2x192xf32> to vector<2x32xf32>
    %837 = vector.extract_strided_slice %833 {offsets = [0, 96], sizes = [2, 32], strides = [1, 1]} : vector<2x192xf32> to vector<2x32xf32>
    %838 = vector.extract_strided_slice %831 {offsets = [0, 128], sizes = [2, 32], strides = [1, 1]} : vector<2x192xf32> to vector<2x32xf32>
    %839 = vector.extract_strided_slice %833 {offsets = [0, 160], sizes = [2, 32], strides = [1, 1]} : vector<2x192xf32> to vector<2x32xf32>
    %840 = tpu.concatenate %834, %835, %836, %837, %838, %839 in 1 : vector<2x32xf32>, vector<2x32xf32>, vector<2x32xf32>, vector<2x32xf32>, vector<2x32xf32>, vector<2x32xf32> -> vector<2x192xf32>
    %cst_97 = arith.constant dense<0.000000e+00> : vector<2x192xf32>
    %841 = tpu.matmul %829, %618, %cst_97 {dimension_numbers = #tpu.dot_dimension_numbers<[1], [0], [0], [1], [0, 0, 1, 1], [], []>} : vector<2x64xf32>, vector<64x192xf32>, vector<2x192xf32> -> vector<2x192xf32>
    %842 = vector.broadcast %620 : vector<1x192xf32> to vector<2x192xf32>
    %843 = arith.addf %841, %842 : vector<2x192xf32>
    %844 = vector.extract_strided_slice %840 {offsets = [0, 0], sizes = [2, 128], strides = [1, 1]} : vector<2x192xf32> to vector<2x128xf32>
    %845 = vector.extract_strided_slice %843 {offsets = [0, 0], sizes = [2, 128], strides = [1, 1]} : vector<2x192xf32> to vector<2x128xf32>
    %846 = arith.addf %844, %845 : vector<2x128xf32>
    %847 = arith.negf %846 : vector<2x128xf32>
    %848 = math.exp %847 : vector<2x128xf32>
    %cst_98 = arith.constant 1.000000e+00 : f32
    %849 = vector.broadcast %cst_98 : f32 to vector<2x128xf32>
    %850 = arith.addf %849, %848 : vector<2x128xf32>
    %851 = arith.divf %849, %850 : vector<2x128xf32>
    %852 = vector.extract_strided_slice %851 {offsets = [0, 0], sizes = [2, 64], strides = [1, 1]} : vector<2x128xf32> to vector<2x64xf32>
    %853 = vector.extract_strided_slice %851 {offsets = [0, 64], sizes = [2, 64], strides = [1, 1]} : vector<2x128xf32> to vector<2x64xf32>
    %854 = vector.extract_strided_slice %840 {offsets = [0, 128], sizes = [2, 64], strides = [1, 1]} : vector<2x192xf32> to vector<2x64xf32>
    %855 = vector.extract_strided_slice %843 {offsets = [0, 128], sizes = [2, 64], strides = [1, 1]} : vector<2x192xf32> to vector<2x64xf32>
    %856 = arith.mulf %852, %855 : vector<2x64xf32>
    %857 = arith.addf %854, %856 : vector<2x64xf32>
    %858 = math.tanh %857 : vector<2x64xf32>
    %cst_99 = arith.constant 1.000000e+00 : f32
    %859 = vector.broadcast %cst_99 : f32 to vector<2x64xf32>
    %860 = arith.subf %859, %853 : vector<2x64xf32>
    %861 = arith.mulf %860, %858 : vector<2x64xf32>
    %862 = arith.mulf %853, %829 : vector<2x64xf32>
    %863 = arith.addf %861, %862 : vector<2x64xf32>
    %864 = vector.extract_strided_slice %624 {offsets = [7, 0, 0], sizes = [1, 2, 192], strides = [1, 1, 1]} : vector<15x2x192xf32> to vector<1x2x192xf32>
    %865 = vector.shape_cast %864 : vector<1x2x192xf32> to vector<2x192xf32>
    %866 = vector.extract_strided_slice %624 {offsets = [7, 0, 0], sizes = [1, 2, 192], strides = [1, 1, 1]} : vector<15x2x192xf32> to vector<1x2x192xf32>
    %867 = vector.shape_cast %866 : vector<1x2x192xf32> to vector<2x192xf32>
    %868 = vector.extract_strided_slice %865 {offsets = [0, 0], sizes = [2, 32], strides = [1, 1]} : vector<2x192xf32> to vector<2x32xf32>
    %869 = vector.extract_strided_slice %867 {offsets = [0, 32], sizes = [2, 32], strides = [1, 1]} : vector<2x192xf32> to vector<2x32xf32>
    %870 = vector.extract_strided_slice %865 {offsets = [0, 64], sizes = [2, 32], strides = [1, 1]} : vector<2x192xf32> to vector<2x32xf32>
    %871 = vector.extract_strided_slice %867 {offsets = [0, 96], sizes = [2, 32], strides = [1, 1]} : vector<2x192xf32> to vector<2x32xf32>
    %872 = vector.extract_strided_slice %865 {offsets = [0, 128], sizes = [2, 32], strides = [1, 1]} : vector<2x192xf32> to vector<2x32xf32>
    %873 = vector.extract_strided_slice %867 {offsets = [0, 160], sizes = [2, 32], strides = [1, 1]} : vector<2x192xf32> to vector<2x32xf32>
    %874 = tpu.concatenate %868, %869, %870, %871, %872, %873 in 1 : vector<2x32xf32>, vector<2x32xf32>, vector<2x32xf32>, vector<2x32xf32>, vector<2x32xf32>, vector<2x32xf32> -> vector<2x192xf32>
    %cst_100 = arith.constant dense<0.000000e+00> : vector<2x192xf32>
    %875 = tpu.matmul %863, %618, %cst_100 {dimension_numbers = #tpu.dot_dimension_numbers<[1], [0], [0], [1], [0, 0, 1, 1], [], []>} : vector<2x64xf32>, vector<64x192xf32>, vector<2x192xf32> -> vector<2x192xf32>
    %876 = vector.broadcast %620 : vector<1x192xf32> to vector<2x192xf32>
    %877 = arith.addf %875, %876 : vector<2x192xf32>
    %878 = vector.extract_strided_slice %874 {offsets = [0, 0], sizes = [2, 128], strides = [1, 1]} : vector<2x192xf32> to vector<2x128xf32>
    %879 = vector.extract_strided_slice %877 {offsets = [0, 0], sizes = [2, 128], strides = [1, 1]} : vector<2x192xf32> to vector<2x128xf32>
    %880 = arith.addf %878, %879 : vector<2x128xf32>
    %881 = arith.negf %880 : vector<2x128xf32>
    %882 = math.exp %881 : vector<2x128xf32>
    %cst_101 = arith.constant 1.000000e+00 : f32
    %883 = vector.broadcast %cst_101 : f32 to vector<2x128xf32>
    %884 = arith.addf %883, %882 : vector<2x128xf32>
    %885 = arith.divf %883, %884 : vector<2x128xf32>
    %886 = vector.extract_strided_slice %885 {offsets = [0, 0], sizes = [2, 64], strides = [1, 1]} : vector<2x128xf32> to vector<2x64xf32>
    %887 = vector.extract_strided_slice %885 {offsets = [0, 64], sizes = [2, 64], strides = [1, 1]} : vector<2x128xf32> to vector<2x64xf32>
    %888 = vector.extract_strided_slice %874 {offsets = [0, 128], sizes = [2, 64], strides = [1, 1]} : vector<2x192xf32> to vector<2x64xf32>
    %889 = vector.extract_strided_slice %877 {offsets = [0, 128], sizes = [2, 64], strides = [1, 1]} : vector<2x192xf32> to vector<2x64xf32>
    %890 = arith.mulf %886, %889 : vector<2x64xf32>
    %891 = arith.addf %888, %890 : vector<2x64xf32>
    %892 = math.tanh %891 : vector<2x64xf32>
    %cst_102 = arith.constant 1.000000e+00 : f32
    %893 = vector.broadcast %cst_102 : f32 to vector<2x64xf32>
    %894 = arith.subf %893, %887 : vector<2x64xf32>
    %895 = arith.mulf %894, %892 : vector<2x64xf32>
    %896 = arith.mulf %887, %863 : vector<2x64xf32>
    %897 = arith.addf %895, %896 : vector<2x64xf32>
    %898 = vector.extract_strided_slice %624 {offsets = [8, 0, 0], sizes = [1, 2, 192], strides = [1, 1, 1]} : vector<15x2x192xf32> to vector<1x2x192xf32>
    %899 = vector.shape_cast %898 : vector<1x2x192xf32> to vector<2x192xf32>
    %900 = vector.extract_strided_slice %624 {offsets = [6, 0, 0], sizes = [1, 2, 192], strides = [1, 1, 1]} : vector<15x2x192xf32> to vector<1x2x192xf32>
    %901 = vector.shape_cast %900 : vector<1x2x192xf32> to vector<2x192xf32>
    %902 = vector.extract_strided_slice %899 {offsets = [0, 0], sizes = [2, 32], strides = [1, 1]} : vector<2x192xf32> to vector<2x32xf32>
    %903 = vector.extract_strided_slice %901 {offsets = [0, 32], sizes = [2, 32], strides = [1, 1]} : vector<2x192xf32> to vector<2x32xf32>
    %904 = vector.extract_strided_slice %899 {offsets = [0, 64], sizes = [2, 32], strides = [1, 1]} : vector<2x192xf32> to vector<2x32xf32>
    %905 = vector.extract_strided_slice %901 {offsets = [0, 96], sizes = [2, 32], strides = [1, 1]} : vector<2x192xf32> to vector<2x32xf32>
    %906 = vector.extract_strided_slice %899 {offsets = [0, 128], sizes = [2, 32], strides = [1, 1]} : vector<2x192xf32> to vector<2x32xf32>
    %907 = vector.extract_strided_slice %901 {offsets = [0, 160], sizes = [2, 32], strides = [1, 1]} : vector<2x192xf32> to vector<2x32xf32>
    %908 = tpu.concatenate %902, %903, %904, %905, %906, %907 in 1 : vector<2x32xf32>, vector<2x32xf32>, vector<2x32xf32>, vector<2x32xf32>, vector<2x32xf32>, vector<2x32xf32> -> vector<2x192xf32>
    %cst_103 = arith.constant dense<0.000000e+00> : vector<2x192xf32>
    %909 = tpu.matmul %897, %618, %cst_103 {dimension_numbers = #tpu.dot_dimension_numbers<[1], [0], [0], [1], [0, 0, 1, 1], [], []>} : vector<2x64xf32>, vector<64x192xf32>, vector<2x192xf32> -> vector<2x192xf32>
    %910 = vector.broadcast %620 : vector<1x192xf32> to vector<2x192xf32>
    %911 = arith.addf %909, %910 : vector<2x192xf32>
    %912 = vector.extract_strided_slice %908 {offsets = [0, 0], sizes = [2, 128], strides = [1, 1]} : vector<2x192xf32> to vector<2x128xf32>
    %913 = vector.extract_strided_slice %911 {offsets = [0, 0], sizes = [2, 128], strides = [1, 1]} : vector<2x192xf32> to vector<2x128xf32>
    %914 = arith.addf %912, %913 : vector<2x128xf32>
    %915 = arith.negf %914 : vector<2x128xf32>
    %916 = math.exp %915 : vector<2x128xf32>
    %cst_104 = arith.constant 1.000000e+00 : f32
    %917 = vector.broadcast %cst_104 : f32 to vector<2x128xf32>
    %918 = arith.addf %917, %916 : vector<2x128xf32>
    %919 = arith.divf %917, %918 : vector<2x128xf32>
    %920 = vector.extract_strided_slice %919 {offsets = [0, 0], sizes = [2, 64], strides = [1, 1]} : vector<2x128xf32> to vector<2x64xf32>
    %921 = vector.extract_strided_slice %919 {offsets = [0, 64], sizes = [2, 64], strides = [1, 1]} : vector<2x128xf32> to vector<2x64xf32>
    %922 = vector.extract_strided_slice %908 {offsets = [0, 128], sizes = [2, 64], strides = [1, 1]} : vector<2x192xf32> to vector<2x64xf32>
    %923 = vector.extract_strided_slice %911 {offsets = [0, 128], sizes = [2, 64], strides = [1, 1]} : vector<2x192xf32> to vector<2x64xf32>
    %924 = arith.mulf %920, %923 : vector<2x64xf32>
    %925 = arith.addf %922, %924 : vector<2x64xf32>
    %926 = math.tanh %925 : vector<2x64xf32>
    %cst_105 = arith.constant 1.000000e+00 : f32
    %927 = vector.broadcast %cst_105 : f32 to vector<2x64xf32>
    %928 = arith.subf %927, %921 : vector<2x64xf32>
    %929 = arith.mulf %928, %926 : vector<2x64xf32>
    %930 = arith.mulf %921, %897 : vector<2x64xf32>
    %931 = arith.addf %929, %930 : vector<2x64xf32>
    %932 = vector.extract_strided_slice %624 {offsets = [9, 0, 0], sizes = [1, 2, 192], strides = [1, 1, 1]} : vector<15x2x192xf32> to vector<1x2x192xf32>
    %933 = vector.shape_cast %932 : vector<1x2x192xf32> to vector<2x192xf32>
    %934 = vector.extract_strided_slice %624 {offsets = [5, 0, 0], sizes = [1, 2, 192], strides = [1, 1, 1]} : vector<15x2x192xf32> to vector<1x2x192xf32>
    %935 = vector.shape_cast %934 : vector<1x2x192xf32> to vector<2x192xf32>
    %936 = vector.extract_strided_slice %933 {offsets = [0, 0], sizes = [2, 32], strides = [1, 1]} : vector<2x192xf32> to vector<2x32xf32>
    %937 = vector.extract_strided_slice %935 {offsets = [0, 32], sizes = [2, 32], strides = [1, 1]} : vector<2x192xf32> to vector<2x32xf32>
    %938 = vector.extract_strided_slice %933 {offsets = [0, 64], sizes = [2, 32], strides = [1, 1]} : vector<2x192xf32> to vector<2x32xf32>
    %939 = vector.extract_strided_slice %935 {offsets = [0, 96], sizes = [2, 32], strides = [1, 1]} : vector<2x192xf32> to vector<2x32xf32>
    %940 = vector.extract_strided_slice %933 {offsets = [0, 128], sizes = [2, 32], strides = [1, 1]} : vector<2x192xf32> to vector<2x32xf32>
    %941 = vector.extract_strided_slice %935 {offsets = [0, 160], sizes = [2, 32], strides = [1, 1]} : vector<2x192xf32> to vector<2x32xf32>
    %942 = tpu.concatenate %936, %937, %938, %939, %940, %941 in 1 : vector<2x32xf32>, vector<2x32xf32>, vector<2x32xf32>, vector<2x32xf32>, vector<2x32xf32>, vector<2x32xf32> -> vector<2x192xf32>
    %cst_106 = arith.constant dense<0.000000e+00> : vector<2x192xf32>
    %943 = tpu.matmul %931, %618, %cst_106 {dimension_numbers = #tpu.dot_dimension_numbers<[1], [0], [0], [1], [0, 0, 1, 1], [], []>} : vector<2x64xf32>, vector<64x192xf32>, vector<2x192xf32> -> vector<2x192xf32>
    %944 = vector.broadcast %620 : vector<1x192xf32> to vector<2x192xf32>
    %945 = arith.addf %943, %944 : vector<2x192xf32>
    %946 = vector.extract_strided_slice %942 {offsets = [0, 0], sizes = [2, 128], strides = [1, 1]} : vector<2x192xf32> to vector<2x128xf32>
    %947 = vector.extract_strided_slice %945 {offsets = [0, 0], sizes = [2, 128], strides = [1, 1]} : vector<2x192xf32> to vector<2x128xf32>
    %948 = arith.addf %946, %947 : vector<2x128xf32>
    %949 = arith.negf %948 : vector<2x128xf32>
    %950 = math.exp %949 : vector<2x128xf32>
    %cst_107 = arith.constant 1.000000e+00 : f32
    %951 = vector.broadcast %cst_107 : f32 to vector<2x128xf32>
    %952 = arith.addf %951, %950 : vector<2x128xf32>
    %953 = arith.divf %951, %952 : vector<2x128xf32>
    %954 = vector.extract_strided_slice %953 {offsets = [0, 0], sizes = [2, 64], strides = [1, 1]} : vector<2x128xf32> to vector<2x64xf32>
    %955 = vector.extract_strided_slice %953 {offsets = [0, 64], sizes = [2, 64], strides = [1, 1]} : vector<2x128xf32> to vector<2x64xf32>
    %956 = vector.extract_strided_slice %942 {offsets = [0, 128], sizes = [2, 64], strides = [1, 1]} : vector<2x192xf32> to vector<2x64xf32>
    %957 = vector.extract_strided_slice %945 {offsets = [0, 128], sizes = [2, 64], strides = [1, 1]} : vector<2x192xf32> to vector<2x64xf32>
    %958 = arith.mulf %954, %957 : vector<2x64xf32>
    %959 = arith.addf %956, %958 : vector<2x64xf32>
    %960 = math.tanh %959 : vector<2x64xf32>
    %cst_108 = arith.constant 1.000000e+00 : f32
    %961 = vector.broadcast %cst_108 : f32 to vector<2x64xf32>
    %962 = arith.subf %961, %955 : vector<2x64xf32>
    %963 = arith.mulf %962, %960 : vector<2x64xf32>
    %964 = arith.mulf %955, %931 : vector<2x64xf32>
    %965 = arith.addf %963, %964 : vector<2x64xf32>
    %966 = vector.extract_strided_slice %624 {offsets = [10, 0, 0], sizes = [1, 2, 192], strides = [1, 1, 1]} : vector<15x2x192xf32> to vector<1x2x192xf32>
    %967 = vector.shape_cast %966 : vector<1x2x192xf32> to vector<2x192xf32>
    %968 = vector.extract_strided_slice %624 {offsets = [4, 0, 0], sizes = [1, 2, 192], strides = [1, 1, 1]} : vector<15x2x192xf32> to vector<1x2x192xf32>
    %969 = vector.shape_cast %968 : vector<1x2x192xf32> to vector<2x192xf32>
    %970 = vector.extract_strided_slice %967 {offsets = [0, 0], sizes = [2, 32], strides = [1, 1]} : vector<2x192xf32> to vector<2x32xf32>
    %971 = vector.extract_strided_slice %969 {offsets = [0, 32], sizes = [2, 32], strides = [1, 1]} : vector<2x192xf32> to vector<2x32xf32>
    %972 = vector.extract_strided_slice %967 {offsets = [0, 64], sizes = [2, 32], strides = [1, 1]} : vector<2x192xf32> to vector<2x32xf32>
    %973 = vector.extract_strided_slice %969 {offsets = [0, 96], sizes = [2, 32], strides = [1, 1]} : vector<2x192xf32> to vector<2x32xf32>
    %974 = vector.extract_strided_slice %967 {offsets = [0, 128], sizes = [2, 32], strides = [1, 1]} : vector<2x192xf32> to vector<2x32xf32>
    %975 = vector.extract_strided_slice %969 {offsets = [0, 160], sizes = [2, 32], strides = [1, 1]} : vector<2x192xf32> to vector<2x32xf32>
    %976 = tpu.concatenate %970, %971, %972, %973, %974, %975 in 1 : vector<2x32xf32>, vector<2x32xf32>, vector<2x32xf32>, vector<2x32xf32>, vector<2x32xf32>, vector<2x32xf32> -> vector<2x192xf32>
    %cst_109 = arith.constant dense<0.000000e+00> : vector<2x192xf32>
    %977 = tpu.matmul %965, %618, %cst_109 {dimension_numbers = #tpu.dot_dimension_numbers<[1], [0], [0], [1], [0, 0, 1, 1], [], []>} : vector<2x64xf32>, vector<64x192xf32>, vector<2x192xf32> -> vector<2x192xf32>
    %978 = vector.broadcast %620 : vector<1x192xf32> to vector<2x192xf32>
    %979 = arith.addf %977, %978 : vector<2x192xf32>
    %980 = vector.extract_strided_slice %976 {offsets = [0, 0], sizes = [2, 128], strides = [1, 1]} : vector<2x192xf32> to vector<2x128xf32>
    %981 = vector.extract_strided_slice %979 {offsets = [0, 0], sizes = [2, 128], strides = [1, 1]} : vector<2x192xf32> to vector<2x128xf32>
    %982 = arith.addf %980, %981 : vector<2x128xf32>
    %983 = arith.negf %982 : vector<2x128xf32>
    %984 = math.exp %983 : vector<2x128xf32>
    %cst_110 = arith.constant 1.000000e+00 : f32
    %985 = vector.broadcast %cst_110 : f32 to vector<2x128xf32>
    %986 = arith.addf %985, %984 : vector<2x128xf32>
    %987 = arith.divf %985, %986 : vector<2x128xf32>
    %988 = vector.extract_strided_slice %987 {offsets = [0, 0], sizes = [2, 64], strides = [1, 1]} : vector<2x128xf32> to vector<2x64xf32>
    %989 = vector.extract_strided_slice %987 {offsets = [0, 64], sizes = [2, 64], strides = [1, 1]} : vector<2x128xf32> to vector<2x64xf32>
    %990 = vector.extract_strided_slice %976 {offsets = [0, 128], sizes = [2, 64], strides = [1, 1]} : vector<2x192xf32> to vector<2x64xf32>
    %991 = vector.extract_strided_slice %979 {offsets = [0, 128], sizes = [2, 64], strides = [1, 1]} : vector<2x192xf32> to vector<2x64xf32>
    %992 = arith.mulf %988, %991 : vector<2x64xf32>
    %993 = arith.addf %990, %992 : vector<2x64xf32>
    %994 = math.tanh %993 : vector<2x64xf32>
    %cst_111 = arith.constant 1.000000e+00 : f32
    %995 = vector.broadcast %cst_111 : f32 to vector<2x64xf32>
    %996 = arith.subf %995, %989 : vector<2x64xf32>
    %997 = arith.mulf %996, %994 : vector<2x64xf32>
    %998 = arith.mulf %989, %965 : vector<2x64xf32>
    %999 = arith.addf %997, %998 : vector<2x64xf32>
    %1000 = vector.extract_strided_slice %624 {offsets = [11, 0, 0], sizes = [1, 2, 192], strides = [1, 1, 1]} : vector<15x2x192xf32> to vector<1x2x192xf32>
    %1001 = vector.shape_cast %1000 : vector<1x2x192xf32> to vector<2x192xf32>
    %1002 = vector.extract_strided_slice %624 {offsets = [3, 0, 0], sizes = [1, 2, 192], strides = [1, 1, 1]} : vector<15x2x192xf32> to vector<1x2x192xf32>
    %1003 = vector.shape_cast %1002 : vector<1x2x192xf32> to vector<2x192xf32>
    %1004 = vector.extract_strided_slice %1001 {offsets = [0, 0], sizes = [2, 32], strides = [1, 1]} : vector<2x192xf32> to vector<2x32xf32>
    %1005 = vector.extract_strided_slice %1003 {offsets = [0, 32], sizes = [2, 32], strides = [1, 1]} : vector<2x192xf32> to vector<2x32xf32>
    %1006 = vector.extract_strided_slice %1001 {offsets = [0, 64], sizes = [2, 32], strides = [1, 1]} : vector<2x192xf32> to vector<2x32xf32>
    %1007 = vector.extract_strided_slice %1003 {offsets = [0, 96], sizes = [2, 32], strides = [1, 1]} : vector<2x192xf32> to vector<2x32xf32>
    %1008 = vector.extract_strided_slice %1001 {offsets = [0, 128], sizes = [2, 32], strides = [1, 1]} : vector<2x192xf32> to vector<2x32xf32>
    %1009 = vector.extract_strided_slice %1003 {offsets = [0, 160], sizes = [2, 32], strides = [1, 1]} : vector<2x192xf32> to vector<2x32xf32>
    %1010 = tpu.concatenate %1004, %1005, %1006, %1007, %1008, %1009 in 1 : vector<2x32xf32>, vector<2x32xf32>, vector<2x32xf32>, vector<2x32xf32>, vector<2x32xf32>, vector<2x32xf32> -> vector<2x192xf32>
    %cst_112 = arith.constant dense<0.000000e+00> : vector<2x192xf32>
    %1011 = tpu.matmul %999, %618, %cst_112 {dimension_numbers = #tpu.dot_dimension_numbers<[1], [0], [0], [1], [0, 0, 1, 1], [], []>} : vector<2x64xf32>, vector<64x192xf32>, vector<2x192xf32> -> vector<2x192xf32>
    %1012 = vector.broadcast %620 : vector<1x192xf32> to vector<2x192xf32>
    %1013 = arith.addf %1011, %1012 : vector<2x192xf32>
    %1014 = vector.extract_strided_slice %1010 {offsets = [0, 0], sizes = [2, 128], strides = [1, 1]} : vector<2x192xf32> to vector<2x128xf32>
    %1015 = vector.extract_strided_slice %1013 {offsets = [0, 0], sizes = [2, 128], strides = [1, 1]} : vector<2x192xf32> to vector<2x128xf32>
    %1016 = arith.addf %1014, %1015 : vector<2x128xf32>
    %1017 = arith.negf %1016 : vector<2x128xf32>
    %1018 = math.exp %1017 : vector<2x128xf32>
    %cst_113 = arith.constant 1.000000e+00 : f32
    %1019 = vector.broadcast %cst_113 : f32 to vector<2x128xf32>
    %1020 = arith.addf %1019, %1018 : vector<2x128xf32>
    %1021 = arith.divf %1019, %1020 : vector<2x128xf32>
    %1022 = vector.extract_strided_slice %1021 {offsets = [0, 0], sizes = [2, 64], strides = [1, 1]} : vector<2x128xf32> to vector<2x64xf32>
    %1023 = vector.extract_strided_slice %1021 {offsets = [0, 64], sizes = [2, 64], strides = [1, 1]} : vector<2x128xf32> to vector<2x64xf32>
    %1024 = vector.extract_strided_slice %1010 {offsets = [0, 128], sizes = [2, 64], strides = [1, 1]} : vector<2x192xf32> to vector<2x64xf32>
    %1025 = vector.extract_strided_slice %1013 {offsets = [0, 128], sizes = [2, 64], strides = [1, 1]} : vector<2x192xf32> to vector<2x64xf32>
    %1026 = arith.mulf %1022, %1025 : vector<2x64xf32>
    %1027 = arith.addf %1024, %1026 : vector<2x64xf32>
    %1028 = math.tanh %1027 : vector<2x64xf32>
    %cst_114 = arith.constant 1.000000e+00 : f32
    %1029 = vector.broadcast %cst_114 : f32 to vector<2x64xf32>
    %1030 = arith.subf %1029, %1023 : vector<2x64xf32>
    %1031 = arith.mulf %1030, %1028 : vector<2x64xf32>
    %1032 = arith.mulf %1023, %999 : vector<2x64xf32>
    %1033 = arith.addf %1031, %1032 : vector<2x64xf32>
    %1034 = vector.extract_strided_slice %624 {offsets = [12, 0, 0], sizes = [1, 2, 192], strides = [1, 1, 1]} : vector<15x2x192xf32> to vector<1x2x192xf32>
    %1035 = vector.shape_cast %1034 : vector<1x2x192xf32> to vector<2x192xf32>
    %1036 = vector.extract_strided_slice %624 {offsets = [2, 0, 0], sizes = [1, 2, 192], strides = [1, 1, 1]} : vector<15x2x192xf32> to vector<1x2x192xf32>
    %1037 = vector.shape_cast %1036 : vector<1x2x192xf32> to vector<2x192xf32>
    %1038 = vector.extract_strided_slice %1035 {offsets = [0, 0], sizes = [2, 32], strides = [1, 1]} : vector<2x192xf32> to vector<2x32xf32>
    %1039 = vector.extract_strided_slice %1037 {offsets = [0, 32], sizes = [2, 32], strides = [1, 1]} : vector<2x192xf32> to vector<2x32xf32>
    %1040 = vector.extract_strided_slice %1035 {offsets = [0, 64], sizes = [2, 32], strides = [1, 1]} : vector<2x192xf32> to vector<2x32xf32>
    %1041 = vector.extract_strided_slice %1037 {offsets = [0, 96], sizes = [2, 32], strides = [1, 1]} : vector<2x192xf32> to vector<2x32xf32>
    %1042 = vector.extract_strided_slice %1035 {offsets = [0, 128], sizes = [2, 32], strides = [1, 1]} : vector<2x192xf32> to vector<2x32xf32>
    %1043 = vector.extract_strided_slice %1037 {offsets = [0, 160], sizes = [2, 32], strides = [1, 1]} : vector<2x192xf32> to vector<2x32xf32>
    %1044 = tpu.concatenate %1038, %1039, %1040, %1041, %1042, %1043 in 1 : vector<2x32xf32>, vector<2x32xf32>, vector<2x32xf32>, vector<2x32xf32>, vector<2x32xf32>, vector<2x32xf32> -> vector<2x192xf32>
    %cst_115 = arith.constant dense<0.000000e+00> : vector<2x192xf32>
    %1045 = tpu.matmul %1033, %618, %cst_115 {dimension_numbers = #tpu.dot_dimension_numbers<[1], [0], [0], [1], [0, 0, 1, 1], [], []>} : vector<2x64xf32>, vector<64x192xf32>, vector<2x192xf32> -> vector<2x192xf32>
    %1046 = vector.broadcast %620 : vector<1x192xf32> to vector<2x192xf32>
    %1047 = arith.addf %1045, %1046 : vector<2x192xf32>
    %1048 = vector.extract_strided_slice %1044 {offsets = [0, 0], sizes = [2, 128], strides = [1, 1]} : vector<2x192xf32> to vector<2x128xf32>
    %1049 = vector.extract_strided_slice %1047 {offsets = [0, 0], sizes = [2, 128], strides = [1, 1]} : vector<2x192xf32> to vector<2x128xf32>
    %1050 = arith.addf %1048, %1049 : vector<2x128xf32>
    %1051 = arith.negf %1050 : vector<2x128xf32>
    %1052 = math.exp %1051 : vector<2x128xf32>
    %cst_116 = arith.constant 1.000000e+00 : f32
    %1053 = vector.broadcast %cst_116 : f32 to vector<2x128xf32>
    %1054 = arith.addf %1053, %1052 : vector<2x128xf32>
    %1055 = arith.divf %1053, %1054 : vector<2x128xf32>
    %1056 = vector.extract_strided_slice %1055 {offsets = [0, 0], sizes = [2, 64], strides = [1, 1]} : vector<2x128xf32> to vector<2x64xf32>
    %1057 = vector.extract_strided_slice %1055 {offsets = [0, 64], sizes = [2, 64], strides = [1, 1]} : vector<2x128xf32> to vector<2x64xf32>
    %1058 = vector.extract_strided_slice %1044 {offsets = [0, 128], sizes = [2, 64], strides = [1, 1]} : vector<2x192xf32> to vector<2x64xf32>
    %1059 = vector.extract_strided_slice %1047 {offsets = [0, 128], sizes = [2, 64], strides = [1, 1]} : vector<2x192xf32> to vector<2x64xf32>
    %1060 = arith.mulf %1056, %1059 : vector<2x64xf32>
    %1061 = arith.addf %1058, %1060 : vector<2x64xf32>
    %1062 = math.tanh %1061 : vector<2x64xf32>
    %cst_117 = arith.constant 1.000000e+00 : f32
    %1063 = vector.broadcast %cst_117 : f32 to vector<2x64xf32>
    %1064 = arith.subf %1063, %1057 : vector<2x64xf32>
    %1065 = arith.mulf %1064, %1062 : vector<2x64xf32>
    %1066 = arith.mulf %1057, %1033 : vector<2x64xf32>
    %1067 = arith.addf %1065, %1066 : vector<2x64xf32>
    %1068 = vector.extract_strided_slice %624 {offsets = [13, 0, 0], sizes = [1, 2, 192], strides = [1, 1, 1]} : vector<15x2x192xf32> to vector<1x2x192xf32>
    %1069 = vector.shape_cast %1068 : vector<1x2x192xf32> to vector<2x192xf32>
    %1070 = vector.extract_strided_slice %624 {offsets = [1, 0, 0], sizes = [1, 2, 192], strides = [1, 1, 1]} : vector<15x2x192xf32> to vector<1x2x192xf32>
    %1071 = vector.shape_cast %1070 : vector<1x2x192xf32> to vector<2x192xf32>
    %1072 = vector.extract_strided_slice %1069 {offsets = [0, 0], sizes = [2, 32], strides = [1, 1]} : vector<2x192xf32> to vector<2x32xf32>
    %1073 = vector.extract_strided_slice %1071 {offsets = [0, 32], sizes = [2, 32], strides = [1, 1]} : vector<2x192xf32> to vector<2x32xf32>
    %1074 = vector.extract_strided_slice %1069 {offsets = [0, 64], sizes = [2, 32], strides = [1, 1]} : vector<2x192xf32> to vector<2x32xf32>
    %1075 = vector.extract_strided_slice %1071 {offsets = [0, 96], sizes = [2, 32], strides = [1, 1]} : vector<2x192xf32> to vector<2x32xf32>
    %1076 = vector.extract_strided_slice %1069 {offsets = [0, 128], sizes = [2, 32], strides = [1, 1]} : vector<2x192xf32> to vector<2x32xf32>
    %1077 = vector.extract_strided_slice %1071 {offsets = [0, 160], sizes = [2, 32], strides = [1, 1]} : vector<2x192xf32> to vector<2x32xf32>
    %1078 = tpu.concatenate %1072, %1073, %1074, %1075, %1076, %1077 in 1 : vector<2x32xf32>, vector<2x32xf32>, vector<2x32xf32>, vector<2x32xf32>, vector<2x32xf32>, vector<2x32xf32> -> vector<2x192xf32>
    %cst_118 = arith.constant dense<0.000000e+00> : vector<2x192xf32>
    %1079 = tpu.matmul %1067, %618, %cst_118 {dimension_numbers = #tpu.dot_dimension_numbers<[1], [0], [0], [1], [0, 0, 1, 1], [], []>} : vector<2x64xf32>, vector<64x192xf32>, vector<2x192xf32> -> vector<2x192xf32>
    %1080 = vector.broadcast %620 : vector<1x192xf32> to vector<2x192xf32>
    %1081 = arith.addf %1079, %1080 : vector<2x192xf32>
    %1082 = vector.extract_strided_slice %1078 {offsets = [0, 0], sizes = [2, 128], strides = [1, 1]} : vector<2x192xf32> to vector<2x128xf32>
    %1083 = vector.extract_strided_slice %1081 {offsets = [0, 0], sizes = [2, 128], strides = [1, 1]} : vector<2x192xf32> to vector<2x128xf32>
    %1084 = arith.addf %1082, %1083 : vector<2x128xf32>
    %1085 = arith.negf %1084 : vector<2x128xf32>
    %1086 = math.exp %1085 : vector<2x128xf32>
    %cst_119 = arith.constant 1.000000e+00 : f32
    %1087 = vector.broadcast %cst_119 : f32 to vector<2x128xf32>
    %1088 = arith.addf %1087, %1086 : vector<2x128xf32>
    %1089 = arith.divf %1087, %1088 : vector<2x128xf32>
    %1090 = vector.extract_strided_slice %1089 {offsets = [0, 0], sizes = [2, 64], strides = [1, 1]} : vector<2x128xf32> to vector<2x64xf32>
    %1091 = vector.extract_strided_slice %1089 {offsets = [0, 64], sizes = [2, 64], strides = [1, 1]} : vector<2x128xf32> to vector<2x64xf32>
    %1092 = vector.extract_strided_slice %1078 {offsets = [0, 128], sizes = [2, 64], strides = [1, 1]} : vector<2x192xf32> to vector<2x64xf32>
    %1093 = vector.extract_strided_slice %1081 {offsets = [0, 128], sizes = [2, 64], strides = [1, 1]} : vector<2x192xf32> to vector<2x64xf32>
    %1094 = arith.mulf %1090, %1093 : vector<2x64xf32>
    %1095 = arith.addf %1092, %1094 : vector<2x64xf32>
    %1096 = math.tanh %1095 : vector<2x64xf32>
    %cst_120 = arith.constant 1.000000e+00 : f32
    %1097 = vector.broadcast %cst_120 : f32 to vector<2x64xf32>
    %1098 = arith.subf %1097, %1091 : vector<2x64xf32>
    %1099 = arith.mulf %1098, %1096 : vector<2x64xf32>
    %1100 = arith.mulf %1091, %1067 : vector<2x64xf32>
    %1101 = arith.addf %1099, %1100 : vector<2x64xf32>
    %1102 = vector.extract_strided_slice %624 {offsets = [14, 0, 0], sizes = [1, 2, 192], strides = [1, 1, 1]} : vector<15x2x192xf32> to vector<1x2x192xf32>
    %1103 = vector.shape_cast %1102 : vector<1x2x192xf32> to vector<2x192xf32>
    %1104 = vector.extract_strided_slice %624 {offsets = [0, 0, 0], sizes = [1, 2, 192], strides = [1, 1, 1]} : vector<15x2x192xf32> to vector<1x2x192xf32>
    %1105 = vector.shape_cast %1104 : vector<1x2x192xf32> to vector<2x192xf32>
    %1106 = vector.extract_strided_slice %1103 {offsets = [0, 0], sizes = [2, 32], strides = [1, 1]} : vector<2x192xf32> to vector<2x32xf32>
    %1107 = vector.extract_strided_slice %1105 {offsets = [0, 32], sizes = [2, 32], strides = [1, 1]} : vector<2x192xf32> to vector<2x32xf32>
    %1108 = vector.extract_strided_slice %1103 {offsets = [0, 64], sizes = [2, 32], strides = [1, 1]} : vector<2x192xf32> to vector<2x32xf32>
    %1109 = vector.extract_strided_slice %1105 {offsets = [0, 96], sizes = [2, 32], strides = [1, 1]} : vector<2x192xf32> to vector<2x32xf32>
    %1110 = vector.extract_strided_slice %1103 {offsets = [0, 128], sizes = [2, 32], strides = [1, 1]} : vector<2x192xf32> to vector<2x32xf32>
    %1111 = vector.extract_strided_slice %1105 {offsets = [0, 160], sizes = [2, 32], strides = [1, 1]} : vector<2x192xf32> to vector<2x32xf32>
    %1112 = tpu.concatenate %1106, %1107, %1108, %1109, %1110, %1111 in 1 : vector<2x32xf32>, vector<2x32xf32>, vector<2x32xf32>, vector<2x32xf32>, vector<2x32xf32>, vector<2x32xf32> -> vector<2x192xf32>
    %cst_121 = arith.constant dense<0.000000e+00> : vector<2x192xf32>
    %1113 = tpu.matmul %1101, %618, %cst_121 {dimension_numbers = #tpu.dot_dimension_numbers<[1], [0], [0], [1], [0, 0, 1, 1], [], []>} : vector<2x64xf32>, vector<64x192xf32>, vector<2x192xf32> -> vector<2x192xf32>
    %1114 = vector.broadcast %620 : vector<1x192xf32> to vector<2x192xf32>
    %1115 = arith.addf %1113, %1114 : vector<2x192xf32>
    %1116 = vector.extract_strided_slice %1112 {offsets = [0, 0], sizes = [2, 128], strides = [1, 1]} : vector<2x192xf32> to vector<2x128xf32>
    %1117 = vector.extract_strided_slice %1115 {offsets = [0, 0], sizes = [2, 128], strides = [1, 1]} : vector<2x192xf32> to vector<2x128xf32>
    %1118 = arith.addf %1116, %1117 : vector<2x128xf32>
    %1119 = arith.negf %1118 : vector<2x128xf32>
    %1120 = math.exp %1119 : vector<2x128xf32>
    %cst_122 = arith.constant 1.000000e+00 : f32
    %1121 = vector.broadcast %cst_122 : f32 to vector<2x128xf32>
    %1122 = arith.addf %1121, %1120 : vector<2x128xf32>
    %1123 = arith.divf %1121, %1122 : vector<2x128xf32>
    %1124 = vector.extract_strided_slice %1123 {offsets = [0, 0], sizes = [2, 64], strides = [1, 1]} : vector<2x128xf32> to vector<2x64xf32>
    %1125 = vector.extract_strided_slice %1123 {offsets = [0, 64], sizes = [2, 64], strides = [1, 1]} : vector<2x128xf32> to vector<2x64xf32>
    %1126 = vector.extract_strided_slice %1112 {offsets = [0, 128], sizes = [2, 64], strides = [1, 1]} : vector<2x192xf32> to vector<2x64xf32>
    %1127 = vector.extract_strided_slice %1115 {offsets = [0, 128], sizes = [2, 64], strides = [1, 1]} : vector<2x192xf32> to vector<2x64xf32>
    %1128 = arith.mulf %1124, %1127 : vector<2x64xf32>
    %1129 = arith.addf %1126, %1128 : vector<2x64xf32>
    %1130 = math.tanh %1129 : vector<2x64xf32>
    %cst_123 = arith.constant 1.000000e+00 : f32
    %1131 = vector.broadcast %cst_123 : f32 to vector<2x64xf32>
    %1132 = arith.subf %1131, %1125 : vector<2x64xf32>
    %1133 = arith.mulf %1132, %1130 : vector<2x64xf32>
    %1134 = arith.mulf %1125, %1101 : vector<2x64xf32>
    %1135 = arith.addf %1133, %1134 : vector<2x64xf32>
    %1136 = arith.addf %659, %693 : vector<2x64xf32>
    %1137 = arith.addf %1136, %727 : vector<2x64xf32>
    %1138 = arith.addf %1137, %761 : vector<2x64xf32>
    %1139 = arith.addf %1138, %795 : vector<2x64xf32>
    %1140 = arith.addf %1139, %829 : vector<2x64xf32>
    %1141 = arith.addf %1140, %863 : vector<2x64xf32>
    %1142 = arith.addf %1141, %897 : vector<2x64xf32>
    %1143 = arith.addf %1142, %931 : vector<2x64xf32>
    %1144 = arith.addf %1143, %965 : vector<2x64xf32>
    %1145 = arith.addf %1144, %999 : vector<2x64xf32>
    %1146 = arith.addf %1145, %1033 : vector<2x64xf32>
    %1147 = arith.addf %1146, %1067 : vector<2x64xf32>
    %1148 = arith.addf %1147, %1101 : vector<2x64xf32>
    %1149 = arith.addf %1148, %1135 : vector<2x64xf32>
    %cst_124 = arith.constant 0.0666666701 : f32
    %1150 = vector.broadcast %cst_124 : f32 to vector<2x64xf32>
    %1151 = arith.mulf %1149, %1150 : vector<2x64xf32>
    %c0_125 = arith.constant 0 : index
    %c0_126 = arith.constant 0 : index
    %1152 = vector.load %arg13[%c0_125, %c0_126] : memref<64x32xf32, #tpu.memory_space<vmem>>, vector<64x32xf32>
    %cst_127 = arith.constant dense<0.000000e+00> : vector<2x32xf32>
    %1153 = tpu.matmul %1151, %1152, %cst_127 {dimension_numbers = #tpu.dot_dimension_numbers<[1], [0], [0], [1], [0, 0, 1, 1], [], []>} : vector<2x64xf32>, vector<64x32xf32>, vector<2x32xf32> -> vector<2x32xf32>
    %c0_128 = arith.constant 0 : index
    %c0_129 = arith.constant 0 : index
    %1154 = vector.load %arg14[%c0_128, %c0_129] : memref<1x32xf32, #tpu.memory_space<vmem>>, vector<1x32xf32>
    %1155 = vector.broadcast %1154 : vector<1x32xf32> to vector<2x32xf32>
    %1156 = arith.addf %1153, %1155 : vector<2x32xf32>
    %cst_130 = arith.constant 0.000000e+00 : f32
    %1157 = vector.broadcast %cst_130 : f32 to vector<2x32xf32>
    %1158 = arith.maximumf %1156, %1157 : vector<2x32xf32>
    %c0_131 = arith.constant 0 : index
    %c0_132 = arith.constant 0 : index
    %1159 = vector.load %arg15[%c0_131, %c0_132] : memref<32x5xf32, #tpu.memory_space<vmem>>, vector<32x5xf32>
    %cst_133 = arith.constant dense<0.000000e+00> : vector<2x5xf32>
    %1160 = tpu.matmul %1158, %1159, %cst_133 {dimension_numbers = #tpu.dot_dimension_numbers<[1], [0], [0], [1], [0, 0, 1, 1], [], []>} : vector<2x32xf32>, vector<32x5xf32>, vector<2x5xf32> -> vector<2x5xf32>
    %c0_134 = arith.constant 0 : index
    %c0_135 = arith.constant 0 : index
    %1161 = vector.load %arg16[%c0_134, %c0_135] : memref<1x5xf32, #tpu.memory_space<vmem>>, vector<1x5xf32>
    %1162 = vector.broadcast %1161 : vector<1x5xf32> to vector<2x5xf32>
    %1163 = arith.addf %1160, %1162 : vector<2x5xf32>
    %c0_136 = arith.constant 0 : index
    %c0_137 = arith.constant 0 : index
    %1164 = vector.load %arg17[%c0_136, %c0_137] : memref<2x5xf32, #tpu.memory_space<vmem>>, vector<2x5xf32>
    tpu.vector_store %arg17[%c0_136, %c0_137], %1163 {strides = array<i32>} : memref<2x5xf32, #tpu.memory_space<vmem>>, vector<2x5xf32>,
    return
  }
}

</mosaic_0001>

<bundles_post_ra>
// kernel: hybrid_forward.1
= control target key start
LH: loop header
LB: loop body
LE: loop exit
PB: predicated region body
PF: predicated region fallthrough
CT: control target
= control target key end

     0   :  { %s7570_s0 = inlined_call_operand.vmem [shape: f32[16,2,1], index: 0, kind: input, shape index: {}]   ;;  %s7571_s1 = inlined_call_operand.vmem [shape: f32[2,8], index: 1, kind: input, shape index: {}]   ;;  %s7572_s2 = inlined_call_operand.vmem [shape: f32[1,8], index: 2, kind: input, shape index: {}]   ;;  %s7573_s3 = inlined_call_operand.vmem [shape: f32[24,16], index: 3, kind: input, shape index: {}]   ;;  %s7574_s4 = inlined_call_operand.vmem [shape: f32[1,16], index: 4, kind: input, shape index: {}]   ;;  %s7575_s5 = inlined_call_operand.vmem [shape: f32[16,192], index: 5, kind: input, shape index: {}]   ;;  %s7576_s6 = inlined_call_operand.vmem [shape: f32[64,192], index: 6, kind: input, shape index: {}]   ;;  %s7577_s7 = inlined_call_operand.vmem [shape: f32[1,192], index: 7, kind: input, shape index: {}]   ;;  %s7578_s8 = inlined_call_operand.vmem [shape: f32[1,192], index: 8, kind: input, shape index: {}]   ;;  %s7579_s9 = inlined_call_operand.hbm [shape: f32[64,192], index: 9, kind: input, shape index: {}]   ;;  %s7580_s10 = inlined_call_operand.hbm [shape: f32[64,192], index: 10, kind: input, shape index: {}]   ;;  %s7581_s11 = inlined_call_operand.vmem [shape: f32[1,192], index: 11, kind: input, shape index: {}]   ;;  %s7582_s12 = inlined_call_operand.vmem [shape: f32[1,192], index: 12, kind: input, shape index: {}]   ;;  %s7583_s13 = inlined_call_operand.vmem [shape: f32[64,32], index: 13, kind: input, shape index: {}]   ;;  %s7584_s14 = inlined_call_operand.vmem [shape: f32[1,32], index: 14, kind: input, shape index: {}]   ;;  %s7585_s15 = inlined_call_operand.vmem [shape: f32[32,5], index: 15, kind: input, shape index: {}]   ;;  %s7586_s16 = inlined_call_operand.vmem [shape: f32[1,5], index: 16, kind: input, shape index: {}]   ;;  %s7587_s17 = inlined_call_operand.hbm [shape: f32[2,5], index: 17, kind: output, shape index: {}]  }
   0x1   :  { %7589 = sst [smem:[#allocation11_spill]] %s7570_s0 }
   0x2   :  { %7590 = sst [smem:[#allocation12_spill]] %s7571_s1 }
   0x3   :  { %22 = vsyncpa [#allocation3], 0 }
   0x4   :  { %23 = vsyncpa [#allocation6], 0 }
   0x5   :  { %24 = vsyncpa [#allocation4], 0  ;;  %s5800_s24 = smov [#allocation2]   ;;  %s5728_s28 = scalar_lea.hbm %s7579_s9, 2048 }
   0x6   :  { %s48_s25 = sshll.u32 %s5800_s24, 4  ;;  %p5729_p0 = scmp.ne.s32.totalorder %s7579_s9, %s5728_s28  ;;  %s49_s25 = int_to_ptr.vmem [resolvable:$true] %s48_s25 }
   0x7   :  { %p5732_p1 = scmp.lt.u32.totalorder %s5728_s28, %s7579_s9 }
   0x9   :  { %p5734_p2 = pnand %p5732_p1, %p5729_p0 }
   0xb   :  { %5737 = shalt.err (!%p5734_p2)
}
   0xc   :  { %s5738_s19 = scalar_lea.vmem %s49_s25, 2048  ;;  %p5743_p4 = scmp.lt.s32.totalorder %s49_s25, %s49_s25 }
   0xd   :  { %p5739_p3 = scmp.ne.s32.totalorder %s49_s25, %s5738_s19  ;;  %p5744_p5 = scmp.lt.s32.totalorder %s5738_s19, %s5738_s19 }
   0xf   :  { %p5745_p6 = por %p5744_p5, %p5743_p4 }
  0x11   :  { %p5746_p7 = pnand %p5745_p6, %p5739_p3 }
  0x13   :  { %5749 = shalt.err (!%p5746_p7)
}
  0x14   :  { %s5801_s1 = smov 256   ;;  %s5802_s20 = smov 16  }
  0x15   :  { %54 = dma.hbm_to_vmem [thread:$0]  %s7579_s9, 2048, %s49_s25, [#allocation3], %s5801_s1, %s5801_s1, %s5802_s20  }
  0x16   :  { %s5803_s23 = smov [#allocation5]   ;;  %s5750_s28 = scalar_lea.hbm %s7580_s10, 2048 }
  0x17   :  { %s60_s24 = sshll.u32 %s5803_s23, 4  ;;  %p5751_p8 = scmp.ne.s32.totalorder %s7580_s10, %s5750_s28  ;;  %s61_s24 = int_to_ptr.vmem [resolvable:$true] %s60_s24 }
  0x18   :  { %p5754_p9 = scmp.lt.u32.totalorder %s5750_s28, %s7580_s10 }
  0x1a   :  { %p5756_p10 = pnand %p5754_p9, %p5751_p8 }
  0x1c   :  { %5759 = shalt.err (!%p5756_p10)
}
  0x1d   :  { %s5760_s19 = scalar_lea.vmem %s61_s24, 2048  ;;  %p5765_p12 = scmp.lt.s32.totalorder %s61_s24, %s61_s24 }
  0x1e   :  { %p5761_p11 = scmp.ne.s32.totalorder %s61_s24, %s5760_s19  ;;  %p5766_p13 = scmp.lt.s32.totalorder %s5760_s19, %s5760_s19 }
  0x20   :  { %p5767_p0 = por %p5766_p13, %p5765_p12 }
  0x22   :  { %p5768_p1 = pnand %p5767_p0, %p5761_p11 }
  0x24   :  { %5771 = shalt.err (!%p5768_p1)
}
  0x25   :  { %66 = dma.hbm_to_vmem [thread:$0]  %s7580_s10, 2048, %s61_s24, [#allocation6], %s5801_s1, %s5801_s1, %s5802_s20  }
  0x26   :  { %5794 = dma.done.wait [#allocation3], 2048  }
  0x27   :  { %5795 = vsyncadd [#allocation3], 4294965248 }
  0x28   :  { %5796 = dma.done.wait [#allocation6], 2048  }
  0x29   :  { %5797 = vsyncadd [#allocation6], 4294965248  ;;  %v5804_v0 = vmov 0   ;;  %s7591_s23 = sld [smem:[#allocation11_spill]]  ;;  %v5805_v17 = vmov 0.0   ;;  %v177_v18 = vlaneseq  ;;  %s7592_s28 = sld [smem:[#allocation12_spill]] }
  0x2a   :  { %5547 = vset.pattern.permute.xlu1 %v5804_v0  ;;  %5546 = vset.pattern.permute.xlu0 %v5804_v0  ;;  %v6003_v37 = vld [vmem:[%s7572_s2] ss:$0 sm:$0xff]  ;;  %s5806_s2 = smov 8   ;;  %vm393_vm0 = vcmask 64512   ;;  %vm409_vm1 = vcmask 130048   ;;  %vm535_vm2 = vcmask 195584  }
  0x2b   :  { %946 = vmatprep.mubr.f32.mxu1 %v5805_v17  ;;  %v5977_v19 = vshrl.u32 %v177_v18, 7  ;;  %vm1083_vm3 = vcmask 261120   ;;  %vm1085_vm4 = vcmask 523264   ;;  %vm1087_vm5 = vcmask 785408   ;;  %s5811_s22 = smov [#allocation7]  }
  0x2c   :  { %vm5810_vm6 = vmmov 0   ;;  %s4863_s26 = sshll.u32 %s5811_s22, 4  ;;  %vm4855_vm7 = vcmask 33792   ;;  %s4864_s26 = int_to_ptr.vmem [resolvable:$true] %s4863_s26 }
  0x2d   :  { %v5980_v20 = vsub.s32 1, %v5977_v19  ;;  %v5983_v21 = vsub.s32 0, %v5977_v19  ;;  %p5777_p3 = scmp.lt.s32.totalorder %s4864_s26, %s4864_s26 }
  0x2f   :  { %v87_v1 = vld [vmem:[%s7591_s23 + $0x4] sm:$0x3]  ;;  %v85_v2 = vld [vmem:[%s7591_s23] sm:$0x3]  ;;  %v88_v3 = vld [vmem:[%s7591_s23 + $0x6] sm:$0x3] }
  0x30   :  { %114 = vperm.xlu1 %5547, %v87_v1   ;;  %104 = vperm.xlu0 %5546, %v85_v2   ;;  %v86_v4 = vld [vmem:[%s7591_s23 + $0x2] sm:$0x3]  ;;  %v90_v5 = vld [vmem:[%s7591_s23 + $0xa] sm:$0x3]  ;;  %v89_v6 = vld [vmem:[%s7591_s23 + $0x8] sm:$0x3] }
  0x31   :  { %v92_v7 = vld [vmem:[%s7591_s23 + $0xe] sm:$0x3]  ;;  %v91_v8 = vld [vmem:[%s7591_s23 + $0xc] sm:$0x3]  ;;  %v94_v9 = vld [vmem:[%s7591_s23 + $0x12] sm:$0x3] }
  0x32   :  { %v93_v10 = vld [vmem:[%s7591_s23 + $0x10] sm:$0x3]  ;;  %v96_v11 = vld [vmem:[%s7591_s23 + $0x16] sm:$0x3]  ;;  %v95_v12 = vld [vmem:[%s7591_s23 + $0x14] sm:$0x3] }
  0x33   :  { %v98_v13 = vld [vmem:[%s7591_s23 + $0x1a] sm:$0x3]  ;;  %v97_v14 = vld [vmem:[%s7591_s23 + $0x18] sm:$0x3]  ;;  %v100_v15 = vld [vmem:[%s7591_s23 + $0x1e] sm:$0x3] }
  0x34   :  { %119 = vperm.xlu1 %5547, %v88_v3   ;;  %109 = vperm.xlu0 %5546, %v86_v4   ;;  %v99_v16 = vld [vmem:[%s7591_s23 + $0x1c] sm:$0x3]  ;;  %v101_v22 = vld [vmem:[%s7592_s28] sm:$0x3] }
  0x35   :  { %v5989_v23 = vrot.slane %v101_v22, %v5980_v20  ;;  %v5992_v26 = vrot.slane %v101_v22, %v5983_v21 }
  0x38   :  { %129 = vperm.xlu1 %5547, %v90_v5   ;;  %124 = vperm.xlu0 %5546, %v89_v6  }
  0x3c   :  { %139 = vperm.xlu1 %5547, %v92_v7   ;;  %134 = vperm.xlu0 %5546, %v91_v8  }
  0x40   :  { %149 = vperm.xlu1 %5547, %v94_v9   ;;  %144 = vperm.xlu0 %5546, %v93_v10  }
  0x44   :  { %159 = vperm.xlu1 %5547, %v96_v11   ;;  %154 = vperm.xlu0 %5546, %v95_v12  }
  0x48   :  { %169 = vperm.xlu1 %5547, %v98_v13   ;;  %164 = vperm.xlu0 %5546, %v97_v14  }
  0x4c   :  { %213 = vperm.xlu1 %5547, %v100_v15   ;;  %174 = vperm.xlu0 %5546, %v99_v16   ;;  %v425_v15 = vld [vmem:[%s7573_s3] sm:$0xff]  ;;  %v426_v16 = vld [vmem:[%s7573_s3 + $0x8] sm:$0xff] }
  0x4d   :  { %v5012_v18 = vpack.c.bf16 %v426_v16, %v425_v15 }
  0x4f   :  { %5013 = vmatprep.subr.bf16.mxu0 %v5012_v18 }
  0x50   :  { %5015 = vmatpush3.bf16.msra.mxu0 %v5012_v18 }
  0xaf   :  { %v115_v24 = vpop.permute.xlu1 %114  ;;  %v105_v25 = vpop.permute.xlu0 %104 }
  0xb0   :  { %v221_v27 = vmul.f32 %v5989_v23, %v115_v24  ;;  %v183_v28 = vmul.f32 %v5992_v26, %v115_v24  ;;  %v181_v31 = vmul.f32 %v5992_v26, %v105_v25 }
  0xb3   :  { %v120_v29 = vpop.permute.xlu1 %119  ;;  %v110_v30 = vpop.permute.xlu0 %109 }
  0xb4   :  { %v222_v32 = vmul.f32 %v5989_v23, %v120_v29  ;;  %v182_v33 = vmul.f32 %v5992_v26, %v110_v30  ;;  %v220_v34 = vmul.f32 %v5989_v23, %v110_v30  ;;  %v184_v41 = vmul.f32 %v5992_v26, %v120_v29 }
  0xb6   :  { %v235_v35 = vadd.f32 %v220_v34, %v181_v31  ;;  %v236_v36 = vadd.f32 %v221_v27, %v182_v33  ;;  %v237_v38 = vadd.f32 %v222_v32, %v183_v28  ;;  %v427_v28 = vld [vmem:[%s7573_s3 + $0x10] sm:$0xff] }
  0xb7   :  { %v130_v39 = vpop.permute.xlu1 %129  ;;  %v125_v40 = vpop.permute.xlu0 %124  ;;  %4974 = vmatprep.subr.mxu0 %v427_v28 }
  0xb8   :  { %v224_v42 = vmul.f32 %v5989_v23, %v130_v39  ;;  %v185_v43 = vmul.f32 %v5992_v26, %v125_v40  ;;  %v223_v44 = vmul.f32 %v5989_v23, %v125_v40  ;;  %v6010_v45 = vadd.f32 %v6003_v37, %v235_v35  ;;  %4975 = vmatpush3.msra.mxu0 %v427_v28 }
  0xb9   :  { %v258_v46 = vadd.f32 %v6003_v37, %v236_v36  ;;  %v259_v53 = vadd.f32 %v6003_v37, %v237_v38  ;;  %v186_v54 = vmul.f32 %v5992_v26, %v130_v39 }
  0xba   :  { %v238_v47 = vadd.f32 %v223_v44, %v184_v41  ;;  %v239_v48 = vadd.f32 %v224_v42, %v185_v43  ;;  %v272_v51 = vmax.f32 %v6010_v45, 0.0 }
  0xbb   :  { %v140_v49 = vpop.permute.xlu1 %139  ;;  %v135_v50 = vpop.permute.xlu0 %134  ;;  %v6014_v52 = vmax.f32 %v258_v46, 0.0  ;;  %v6027_v62 = vmax.f32 %v259_v53, 0.0 }
  0xbc   :  { %v226_v55 = vmul.f32 %v5989_v23, %v140_v49  ;;  %v187_v56 = vmul.f32 %v5992_v26, %v135_v50  ;;  %v225_v57 = vmul.f32 %v5989_v23, %v135_v50  ;;  %302 = vrot.lane.b32.xlu0 %v272_v51, %s5806_s2  ;;  %v260_v58 = vadd.f32 %v6003_v37, %v238_v47 }
  0xbd   :  { %304 = vrot.lane.b32.xlu1 %v6014_v52, %s5806_s2  ;;  %v261_v0 = vadd.f32 %v6003_v37, %v239_v48  ;;  %v188_v1 = vmul.f32 %v5992_v26, %v140_v49 }
  0xbe   :  { %v240_v59 = vadd.f32 %v225_v57, %v186_v54  ;;  %v241_v60 = vadd.f32 %v226_v55, %v187_v56  ;;  %v6029_v63 = vmax.f32 %v260_v58, 0.0 }
  0xbf   :  { %v145_v61 = vpop.permute.xlu0 %144  ;;  %v6039_v5 = vmax.f32 %v261_v0, 0.0  ;;  %v150_v9 = vpop.permute.xlu1 %149 }
  0xc0   :  { %v227_v2 = vmul.f32 %v5989_v23, %v145_v61  ;;  %306 = vrot.lane.b32.xlu0 %v6027_v62, %s5806_s2  ;;  %v262_v3 = vadd.f32 %v6003_v37, %v240_v59  ;;  %v263_v7 = vadd.f32 %v6003_v37, %v241_v60  ;;  %v228_v13 = vmul.f32 %v5989_v23, %v150_v9 }
  0xc1   :  { %308 = vrot.lane.b32.xlu1 %v6029_v63, %s5806_s2  ;;  %v189_v14 = vmul.f32 %v5992_v26, %v145_v61  ;;  %v190_v29 = vmul.f32 %v5992_v26, %v150_v9 }
  0xc2   :  { %v242_v4 = vadd.f32 %v227_v2, %v188_v1  ;;  %v6041_v6 = vmax.f32 %v262_v3, 0.0  ;;  %v6049_v10 = vmax.f32 %v263_v7, 0.0 }
  0xc3   :  { %v155_v12 = vpop.permute.xlu0 %154  ;;  %v160_v22 = vpop.permute.xlu1 %159  ;;  %v243_v24 = vadd.f32 %v228_v13, %v189_v14 }
  0xc4   :  { %310 = vrot.lane.b32.xlu0 %v6039_v5, %s5806_s2  ;;  %v264_v8 = vadd.f32 %v6003_v37, %v242_v4  ;;  %v229_v27 = vmul.f32 %v5989_v23, %v155_v12  ;;  %v230_v30 = vmul.f32 %v5989_v23, %v160_v22  ;;  %v191_v31 = vmul.f32 %v5992_v26, %v155_v12 }
  0xc5   :  { %312 = vrot.lane.b32.xlu1 %v6041_v6, %s5806_s2  ;;  %v265_v32 = vadd.f32 %v6003_v37, %v243_v24  ;;  %v192_v38 = vmul.f32 %v5992_v26, %v160_v22  ;;  %v5807_v12 = vmov 1983009808  }
  0xc6   :  { %v6051_v11 = vmax.f32 %v264_v8, 0.0  ;;  %v244_v33 = vadd.f32 %v229_v27, %v190_v29  ;;  %v245_v39 = vadd.f32 %v230_v30, %v191_v31  ;;  %v452_v13 = vunpack.c.l.s4 %v5807_v12 }
  0xc7   :  { %v165_v25 = vpop.permute.xlu0 %164  ;;  %v170_v34 = vpop.permute.xlu1 %169  ;;  %v6088_v41 = vmax.f32 %v265_v32, 0.0 }
  0xc8   :  { %314 = vrot.lane.b32.xlu0 %v6049_v10, %s5806_s2  ;;  %v231_v35 = vmul.f32 %v5989_v23, %v165_v25  ;;  %v232_v40 = vmul.f32 %v5989_v23, %v170_v34  ;;  %v193_v42 = vmul.f32 %v5992_v26, %v165_v25  ;;  %v266_v46 = vadd.f32 %v6003_v37, %v244_v33 }
  0xc9   :  { %316 = vrot.lane.b32.xlu1 %v6051_v11, %s5806_s2  ;;  %v194_v47 = vmul.f32 %v5992_v26, %v170_v34  ;;  %v267_v48 = vadd.f32 %v6003_v37, %v245_v39  ;;  %v453_v16 = vunpack.c.0.s8 %v452_v13 }
  0xca   :  { %v246_v43 = vadd.f32 %v231_v35, %v192_v38  ;;  %v247_v49 = vadd.f32 %v232_v40, %v193_v42  ;;  %v6099_v53 = vmax.f32 %v266_v46, 0.0 }
  0xcb   :  { %v175_v36 = vpop.permute.xlu0 %174  ;;  %v6106_v55 = vmax.f32 %v267_v48, 0.0  ;;  %v214_v59 = vpop.permute.xlu1 %213  ;;  %v6148_v29 = vsub.s32 %v453_v16, %v5977_v19 }
  0xcc   :  { %348 = vrot.lane.b32.xlu0 %v6014_v52, %s5802_s20  ;;  %v233_v44 = vmul.f32 %v5989_v23, %v175_v36  ;;  %v268_v54 = vadd.f32 %v6003_v37, %v246_v43  ;;  %v269_v57 = vadd.f32 %v6003_v37, %v247_v49  ;;  %v234_v60 = vmul.f32 %v5989_v23, %v214_v59 }
  0xcd   :  { %350 = vrot.lane.b32.xlu1 %v6027_v62, %s5802_s20  ;;  %v195_v61 = vmul.f32 %v5992_v26, %v175_v36 }
  0xce   :  { %v248_v50 = vadd.f32 %v233_v44, %v194_v47  ;;  %v6108_v56 = vmax.f32 %v268_v54, 0.0  ;;  %v6118_v0 = vmax.f32 %v269_v57, 0.0 }
  0xcf   :  { %v249_v2 = vadd.f32 %v234_v60, %v195_v61 }
  0xd0   :  { %352 = vrot.lane.b32.xlu0 %v6029_v63, %s5802_s20  ;;  %v270_v58 = vadd.f32 %v6003_v37, %v248_v50 }
  0xd1   :  { %354 = vrot.lane.b32.xlu1 %v6039_v5, %s5802_s20  ;;  %v271_v23 = vadd.f32 %v6003_v37, %v249_v2 }
  0xd2   :  { %v6120_v1 = vmax.f32 %v270_v58, 0.0 }
  0xd3   :  { %v286_v26 = vmax.f32 %v271_v23, 0.0 }
  0xd4   :  { %356 = vrot.lane.b32.xlu0 %v6041_v6, %s5802_s20 }
  0xd5   :  { %358 = vrot.lane.b32.xlu1 %v6049_v10, %s5802_s20 }
  0xd8   :  { %360 = vrot.lane.b32.xlu0 %v6051_v11, %s5802_s20 }
  0xd9   :  { %362 = vrot.lane.b32.xlu1 %v6088_v41, %s5802_s20 }
  0xdc   :  { %318 = vrot.lane.b32.xlu0 %v6088_v41, %s5806_s2 }
  0xdd   :  { %320 = vrot.lane.b32.xlu1 %v6099_v53, %s5806_s2 }
  0xe0   :  { %322 = vrot.lane.b32.xlu0 %v6106_v55, %s5806_s2 }
  0xe1   :  { %324 = vrot.lane.b32.xlu1 %v6108_v56, %s5806_s2 }
  0xe4   :  { %326 = vrot.lane.b32.xlu0 %v6118_v0, %s5806_s2 }
  0xe5   :  { %328 = vrot.lane.b32.xlu1 %v6120_v1, %s5806_s2 }
  0xe8   :  { %364 = vrot.lane.b32.xlu0 %v6099_v53, %s5802_s20 }
  0xe9   :  { %366 = vrot.lane.b32.xlu1 %v6106_v55, %s5802_s20 }
  0xec   :  { %368 = vrot.lane.b32.xlu0 %v6108_v56, %s5802_s20 }
  0xed   :  { %370 = vrot.lane.b32.xlu1 %v6118_v0, %s5802_s20 }
  0xf0   :  { %372 = vrot.lane.b32.xlu0 %v6120_v1, %s5802_s20 }
  0xf1   :  { %374 = vrot.lane.b32.xlu1 %v286_v26, %s5802_s20 }
  0xf4   :  { %330 = vrot.lane.b32.xlu0 %v286_v26, %s5806_s2 }
  0xf5   :  { %376 = vrot.lane.b32.xlu1 %v5805_v17, %s5802_s20 }
 0x12e   :  { %v303_v4 = vpop.permute.xlu0 %302 }
 0x12f   :  { %v305_v3 = vpop.permute.xlu1 %304  ;;  %v394_v22 = vsel %vm393_vm0, 0.0, %v303_v4 }
 0x130   :  { %v395_v18 = vsel %vm393_vm0, %v272_v51, %v305_v3 }
 0x132   :  { %v307_v7 = vpop.permute.xlu0 %306 }
 0x133   :  { %v309_v37 = vpop.permute.xlu1 %308  ;;  %v396_v31 = vsel %vm393_vm0, %v6014_v52, %v307_v7 }
 0x134   :  { %v397_v30 = vsel %vm393_vm0, %v6027_v62, %v309_v37 }
 0x136   :  { %v311_v9 = vpop.permute.xlu0 %310 }
 0x137   :  { %v313_v8 = vpop.permute.xlu1 %312  ;;  %v398_v19 = vsel %vm393_vm0, %v6029_v63, %v311_v9 }
 0x138   :  { %v399_v36 = vsel %vm393_vm0, %v6039_v5, %v313_v8 }
 0x13a   :  { %v315_v15 = vpop.permute.xlu0 %314 }
 0x13b   :  { %v317_v14 = vpop.permute.xlu1 %316  ;;  %v400_v5 = vsel %vm393_vm0, %v6041_v6, %v315_v15 }
 0x13c   :  { %v401_v44 = vsel %vm393_vm0, %v6049_v10, %v317_v14 }
 0x13e   :  { %v349_v25 = vpop.permute.xlu0 %348 }
 0x13f   :  { %v351_v24 = vpop.permute.xlu1 %350  ;;  %v410_v28 = vsel %vm409_vm1, %v394_v22, %v349_v25 }
 0x140   :  { %v411_v27 = vsel %vm409_vm1, %v395_v18, %v351_v24 }
 0x141   :  { %v449_v45 = vcombine.low %v410_v28, %v411_v27 }
 0x142   :  { %v353_v51 = vpop.permute.xlu0 %352 }
 0x143   :  { %v355_v32 = vpop.permute.xlu1 %354  ;;  %v412_v34 = vsel %vm409_vm1, %v396_v31, %v353_v51  ;;  %v457_v62 = vrot.slane %v449_v45, %v6148_v29 }
 0x144   :  { %v413_v33 = vsel %vm409_vm1, %v397_v30, %v355_v32 }
 0x145   :  { %v450_v35 = vcombine.low %v412_v34, %v413_v33  ;;  %v731_v34 = vld [vmem:[%s7575_s5 + $0x8] sm:$0xff] }
 0x146   :  { %v357_v39 = vpop.permute.xlu0 %356 }
 0x147   :  { %v359_v38 = vpop.permute.xlu1 %358  ;;  %v464_v52 = vrot.slane %v450_v35, %v6148_v29  ;;  %v414_v42 = vsel %vm409_vm1, %v398_v19, %v357_v39  ;;  %v733_v35 = vld [vmem:[%s7575_s5 + $0x18] sm:$0xff]  ;;  %v732_v19 = vld [vmem:[%s7575_s5 + $0x10] sm:$0xff]  ;;  %v735_v39 = vld [vmem:[%s7576_s6 + $0x8] sm:$0xff] }
 0x148   :  { %v415_v40 = vsel %vm409_vm1, %v399_v36, %v359_v38  ;;  %v730_v36 = vld [vmem:[%s7575_s5] sm:$0xff] }
 0x149   :  { %v465_v43 = vcombine.low %v457_v62, %v464_v52  ;;  %v466_v46 = vcombine.low %v414_v42, %v415_v40  ;;  %v5018_v38 = vpack.c.bf16 %v732_v19, %v730_v36  ;;  %v737_v62 = vld [vmem:[%s7576_s6 + $0x18] sm:$0xff]  ;;  %v734_v40 = vld [vmem:[%s7576_s6] sm:$0xff]  ;;  %v736_v42 = vld [vmem:[%s7576_s6 + $0x10] sm:$0xff] }
 0x14a   :  { %v361_v47 = vpop.permute.xlu0 %360  ;;  %v6220_v52 = vpack.c.bf16 %v737_v62, %v735_v39 }
 0x14b   :  { %v363_v63 = vpop.permute.xlu1 %362  ;;  %4976 = vmatprep.mubr.msk.f32.mxu0 %vm535_vm2, %v465_v43  ;;  %v416_v49 = vsel %vm409_vm1, %v400_v5, %v361_v47  ;;  %v474_v54 = vrot.slane %v466_v46, %v6148_v29  ;;  %v6228_v43 = vpack.c.bf16 %v736_v42, %v734_v40  ;;  %v741_v5 = vld [vmem:[%s7576_s6 + $0x38] sm:$0xff]  ;;  %v740_v47 = vld [vmem:[%s7576_s6 + $0x30] sm:$0xff] }
 0x14c   :  { %v417_v48 = vsel %vm409_vm1, %v401_v44, %v363_v63  ;;  %v739_v44 = vld [vmem:[%s7576_s6 + $0x28] sm:$0xff]  ;;  %5037 = vmatprep.subr.bf16.mxu0 %v6220_v52  ;;  %v738_v63 = vld [vmem:[%s7576_s6 + $0x20] sm:$0xff] }
 0x14d   :  { %v467_v50 = vcombine.low %v416_v49, %v417_v48  ;;  %v6237_v46 = vpack.c.bf16 %v741_v5, %v739_v44  ;;  %v6248_v48 = vpack.c.bf16 %v740_v47, %v738_v63  ;;  %v743_v49 = vld [vmem:[%s7576_s6 + $0x48] sm:$0xff] }
 0x14e   :  { %v319_v59 = vpop.permute.xlu0 %318 }
 0x14f   :  { %v481_v57 = vrot.slane %v467_v50, %v6148_v29  ;;  %v321_v58 = vpop.permute.xlu1 %320  ;;  %v402_v26 = vsel %vm393_vm0, %v6051_v11, %v319_v59  ;;  %v745_v50 = vld [vmem:[%s7576_s6 + $0x58] sm:$0xff] }
 0x150   :  { %v403_v23 = vsel %vm393_vm0, %v6088_v41, %v321_v58  ;;  %v744_v58 = vld [vmem:[%s7576_s6 + $0x50] sm:$0xff] }
 0x151   :  { %v482_v10 = vcombine.low %v474_v54, %v481_v57  ;;  %v6257_v54 = vpack.c.bf16 %v745_v50, %v743_v49  ;;  %v742_v57 = vld [vmem:[%s7576_s6 + $0x40] sm:$0xff] }
 0x152   :  { %v323_v6 = vpop.permute.xlu0 %322  ;;  %v6265_v59 = vpack.c.bf16 %v744_v58, %v742_v57 }
 0x153   :  { %v325_v60 = vpop.permute.xlu1 %324  ;;  %4977 = vmatmul.mubr.msk.f32.vlgmr.msra.gmra.mrb[0].mxu0 %vm535_vm2, %v482_v10  ;;  %v404_v9 = vsel %vm393_vm0, %v6099_v53, %v323_v6  ;;  %v747_v10 = vld [vmem:[%s7576_s6 + $0x68] sm:$0xff]  ;;  %v746_v6 = vld [vmem:[%s7576_s6 + $0x60] sm:$0xff] }
 0x154   :  { %v405_v8 = vsel %vm393_vm0, %v6106_v55, %v325_v60  ;;  %5039 = vmatpush1.bf16.msra.mxu0 %v6228_v43  ;;  %v749_v60 = vld [vmem:[%s7576_s6 + $0x78] sm:$0xff] }
 0x155   :  { %5041 = vmatprep.subr.bf16.mxu0 %v6237_v46 }
 0x156   :  { %v327_v2 = vpop.permute.xlu0 %326 }
 0x157   :  { %v329_v61 = vpop.permute.xlu1 %328  ;;  %v406_v18 = vsel %vm393_vm0, %v6108_v56, %v327_v2  ;;  %v748_v2 = vld [vmem:[%s7576_s6 + $0x70] sm:$0xff] }
 0x158   :  { %v407_v16 = vsel %vm393_vm0, %v6118_v0, %v329_v61  ;;  %5043 = vmatpush1.bf16.msra.mxu0 %v6248_v48  ;;  %v6278_v61 = vpack.c.bf16 %v749_v60, %v747_v10 }
 0x159   :  { %5045 = vmatprep.subr.bf16.mxu0 %v6257_v54 }
 0x15a   :  { %v365_v4 = vpop.permute.xlu0 %364 }
 0x15b   :  { %v367_v3 = vpop.permute.xlu1 %366  ;;  %v418_v7 = vsel %vm409_vm1, %v402_v26, %v365_v4  ;;  %v4874_v26 = vld [vmem:[%s7574_s4] ss:$0 sm:$0xff] }
 0x15c   :  { %v419_v37 = vsel %vm409_vm1, %v403_v23, %v367_v3  ;;  %5047 = vmatpush1.bf16.msra.mxu0 %v6265_v59  ;;  %v6283_v23 = vpack.c.bf16 %v748_v2, %v746_v6  ;;  %v516_v3 = vcombine.low %v4874_v26, %v4874_v26  ;;  %v531_v39 = vrot.slane %v4874_v26, %v6148_v29 }
 0x15d   :  { %v483_v12 = vcombine.low %v418_v7, %v419_v37  ;;  %5049 = vmatprep.subr.bf16.mxu0 %v6278_v61 }
 0x15e   :  { %v369_v14 = vpop.permute.xlu0 %368  ;;  %v523_v4 = vrot.slane %v516_v3, %v6148_v29 }
 0x15f   :  { %v371_v13 = vpop.permute.xlu1 %370  ;;  %v420_v15 = vsel %vm409_vm1, %v404_v9, %v369_v14  ;;  %v491_v22 = vrot.slane %v483_v12, %v6148_v29 }
 0x160   :  { %v421_v41 = vsel %vm409_vm1, %v405_v8, %v371_v13  ;;  %5051 = vmatpush1.bf16.msra.mxu0 %v6283_v23  ;;  %v524_v37 = vcombine.low %v523_v4, %v523_v4  ;;  %v532_v62 = vcombine.low %v523_v4, %v531_v39 }
 0x161   :  { %v484_v11 = vcombine.low %v420_v15, %v421_v41  ;;  %5069 = vmatprep.subr.bf16.mxu0 %v6220_v52 }
 0x162   :  { %v373_v53 = vpop.permute.xlu0 %372 }
 0x163   :  { %v498_v55 = vrot.slane %v484_v11, %v6148_v29  ;;  %v375_v24 = vpop.permute.xlu1 %374  ;;  %v422_v27 = vsel %vm409_vm1, %v406_v18, %v373_v53 }
 0x164   :  { %v423_v25 = vsel %vm409_vm1, %v407_v16, %v375_v24 }
 0x165   :  { %v499_v28 = vcombine.low %v491_v22, %v498_v55  ;;  %v500_v30 = vcombine.low %v422_v27, %v423_v25 }
 0x166   :  { %v331_v31 = vpop.permute.xlu0 %330 }
 0x167   :  { %4979 = vmatprep.mubr.msk.f32.mxu0 %vm535_vm2, %v499_v28  ;;  %v377_v45 = vpop.permute.xlu1 %376  ;;  %v408_v0 = vsel %vm393_vm0, %v6120_v1, %v331_v31  ;;  %v507_v32 = vrot.slane %v500_v30, %v6148_v29  ;;  %v5016_v1 = vpack.c.bf16 %v733_v35, %v731_v34 }
 0x168   :  { %v424_v56 = vsel %vm409_vm1, %v408_v0, %v377_v45 }
 0x169   :  { %v514_v51 = vrot.slane %v424_v56, %v6148_v29  ;;  %5017 = vmatprep.subr.bf16.mxu1 %v5016_v1 }
 0x16a   :  { %5019 = vmatpush1.bf16.msra.mxu1 %v5018_v38 }
 0x16b   :  { %v515_v33 = vcombine.low %v507_v32, %v514_v51  ;;  %5021 = vmatprep.subr.bf16.mxu1 %v6220_v52 }
 0x16d   :  { %4980 = vmatmul.mubr.msk.f32.gmra.mrb[2].mxu0 %vm535_vm2, %v515_v33 }
 0x16e   :  { %1283 = vmatprep.mubr.f32.mxu0 %v5805_v17 }
 0x226   :  { %v4978_v7 = vpop.f32.mrb[0].mxu0 }
 0x227   :  { %v616_v8 = vadd.f32 %v4978_v7, %v524_v37  ;;  %v610_v9 = vpop.f32.mrb[1].mxu0 }
 0x228   :  { %v611_v12 = vadd.f32 %v610_v9, %v524_v37 }
 0x229   :  { %v650_v13 = vcombine.high %v616_v8, %v616_v8  ;;  %v657_v14 = vrot.slane %v616_v8, %v6148_v29 }
 0x22a   :  { %v633_v41 = vcombine.high %v611_v12, %v611_v12  ;;  %v640_v15 = vrot.slane %v611_v12, %v6148_v29 }
 0x22b   :  { %v664_v11 = vrot.slane %v650_v13, %v6148_v29  ;;  %v665_v16 = vcombine.high %v657_v14, %v657_v14  ;;  %v719_v56 = vmax.f32 %v657_v14, 0.0 }
 0x22c   :  { %v647_v18 = vrot.slane %v633_v41, %v6148_v29  ;;  %v648_v22 = vcombine.high %v640_v15, %v640_v15  ;;  %v715_v53 = vmax.f32 %v640_v15, 0.0 }
 0x22d   :  { %v666_v55 = vcombine.high %v664_v11, %v664_v11  ;;  %v720_v27 = vmax.f32 %v665_v16, 0.0  ;;  %v721_v30 = vmax.f32 %v664_v11, 0.0 }
 0x22e   :  { %v649_v24 = vcombine.high %v647_v18, %v647_v18  ;;  %v716_v25 = vmax.f32 %v648_v22, 0.0  ;;  %v717_v31 = vmax.f32 %v647_v18, 0.0  ;;  %v750_v22 = vld [vmem:[%s7577_s7] sm:$0x3] }
 0x22f   :  { %v722_v28 = vmax.f32 %v666_v55, 0.0  ;;  %v801_v33 = vcombine.low %v719_v56, %v720_v27  ;;  %v756_v55 = vrot.slane %v750_v22, %v5983_v21 }
 0x230   :  { %v718_v45 = vmax.f32 %v649_v24, 0.0  ;;  %v784_v0 = vcombine.low %v715_v53, %v716_v25  ;;  %v760_v24 = vrot.slane %v750_v22, %v5980_v20 }
 0x231   :  { %v802_v32 = vcombine.low %v721_v30, %v722_v28  ;;  %v809_v19 = vrot.slane %v801_v33, %v6148_v29 }
 0x232   :  { %v785_v51 = vcombine.low %v717_v31, %v718_v45  ;;  %v792_v34 = vrot.slane %v784_v0, %v6148_v29  ;;  %v761_v53 = vcombine.low %v756_v55, %v760_v24 }
 0x233   :  { %v816_v36 = vrot.slane %v802_v32, %v6148_v29 }
 0x234   :  { %v799_v35 = vrot.slane %v785_v51, %v6148_v29  ;;  %v768_v25 = vrot.slane %v761_v53, %v6148_v29 }
 0x235   :  { %v817_v38 = vcombine.low %v809_v19, %v816_v36 }
 0x236   :  { %v800_v1 = vcombine.low %v792_v34, %v799_v35  ;;  %v851_v27 = vcombine.low %v768_v25, %v768_v25 }
 0x238   :  { %4879 = vmatmul.mubr.msk.f32.vlgmr.msra.gmra.mrb[0].mxu1 %vm409_vm1, %v800_v1  ;;  %v858_v28 = vrot.slane %v851_v27, %v6148_v29 }
 0x239   :  { %952 = vmatprep.mubr.f32.mxu1 %v5805_v17  ;;  %5023 = vmatpush1.bf16.msra.mxu1 %v6228_v43 }
 0x23a   :  { %5025 = vmatprep.subr.bf16.mxu1 %v6237_v46  ;;  %v859_v30 = vcombine.low %v858_v28, %v858_v28  ;;  %v860_v31 = vcombine.high %v858_v28, %v858_v28 }
 0x23c   :  { %4880 = vmatmul.mubr.msk.f32.gmra.mrb[2].mxu1 %vm409_vm1, %v817_v38 }
 0x23d   :  { %958 = vmatprep.mubr.f32.mxu1 %v5805_v17  ;;  %5027 = vmatpush1.bf16.msra.mxu1 %v6248_v48 }
 0x23e   :  { %5029 = vmatprep.subr.bf16.mxu1 %v6257_v54 }
 0x240   :  { %v4981_v40 = vpop.f32.mrb[2].mxu0 }
 0x241   :  { %5031 = vmatpush1.bf16.msra.mxu1 %v6265_v59  ;;  %v626_v42 = vadd.f32 %v4981_v40, %v532_v62  ;;  %v620_v44 = vpop.f32.mrb[3].mxu0 }
 0x242   :  { %5033 = vmatprep.subr.bf16.mxu1 %v6278_v61  ;;  %v621_v5 = vadd.f32 %v620_v44, %v524_v37 }
 0x243   :  { %v691_v63 = vrot.slane %v626_v42, %v6148_v29  ;;  %v684_v50 = vcombine.high %v626_v42, %v626_v42  ;;  %v867_v42 = vrot.slane %v768_v25, %v6148_v29 }
 0x244   :  { %v667_v47 = vcombine.high %v621_v5, %v621_v5  ;;  %v674_v49 = vrot.slane %v621_v5, %v6148_v29 }
 0x245   :  { %5035 = vmatpush1.bf16.msra.mxu1 %v6283_v23  ;;  %v699_v57 = vcombine.high %v691_v63, %v691_v63  ;;  %v698_v3 = vrot.slane %v684_v50, %v6148_v29  ;;  %v727_v4 = vmax.f32 %v691_v63, 0.0 }
 0x246   :  { %5053 = vmatprep.subr.bf16.mxu1 %v6220_v52  ;;  %v681_v58 = vrot.slane %v667_v47, %v6148_v29  ;;  %v682_v10 = vcombine.high %v674_v49, %v674_v49  ;;  %v723_v2 = vmax.f32 %v674_v49, 0.0 }
 0x247   :  { %v728_v60 = vmax.f32 %v699_v57, 0.0  ;;  %v729_v13 = vmax.f32 %v698_v3, 0.0  ;;  %v868_v57 = vcombine.low %v858_v28, %v867_v42 }
 0x248   :  { %v683_v6 = vcombine.high %v681_v58, %v681_v58  ;;  %v724_v26 = vmax.f32 %v682_v10, 0.0  ;;  %v725_v37 = vmax.f32 %v681_v58, 0.0 }
 0x249   :  { %v835_v9 = vcombine.low %v727_v4, %v728_v60  ;;  %v849_v16 = vrot.slane %v729_v13, %v6148_v29 }
 0x24a   :  { %v726_v7 = vmax.f32 %v683_v6, 0.0  ;;  %v818_v8 = vcombine.low %v723_v2, %v724_v26  ;;  %v869_v6 = vcombine.high %v858_v28, %v867_v42  ;;  %v6372_v2 = vld [vmem:[%s7578_s8] sm:$0x3]  ;;  %s5808_s8 = smov 64  }
 0x24b   :  { %v842_v15 = vrot.slane %v835_v9, %v6148_v29 }
 0x24c   :  { %v819_v12 = vcombine.low %v725_v37, %v726_v7  ;;  %v826_v14 = vrot.slane %v818_v8, %v6148_v29 }
 0x24d   :  { %v850_v18 = vcombine.low %v842_v15, %v849_v16 }
 0x24e   :  { %v833_v41 = vrot.slane %v819_v12, %v6148_v29 }
 0x250   :  { %v834_v11 = vcombine.low %v826_v14, %v833_v41  ;;  %v6386_v41 = vrot.slane %v6372_v2, %v5983_v21 }
 0x252   :  { %4881 = vmatmul.mubr.msk.f32.gmra.mrb[4].mxu1 %vm409_vm1, %v834_v11 }
 0x253   :  { %964 = vmatprep.mubr.f32.mxu1 %v5805_v17 }
 0x256   :  { %4882 = vmatmul.mubr.msk.f32.gmra.mrb[6].mxu1 %vm409_vm1, %v850_v18 }
 0x257   :  { %1167 = vmatprep.mubr.f32.mxu1 %v5805_v17 }
 0x25a   :  { %1168 = vmatmul.mubr.f32.vlgmr.msra.gmra.mrb[8].mxu1 %v5805_v17 }
 0x25b   :  { %5055 = vmatpush1.bf16.msra.mxu1 %v6228_v43  ;;  %1399 = vmatprep.mubr.f32.mxu1 %v5805_v17 }
 0x25c   :  { %5057 = vmatprep.subr.bf16.mxu1 %v6237_v46 }
 0x25f   :  { %5059 = vmatpush1.bf16.msra.mxu1 %v6248_v48 }
 0x260   :  { %5061 = vmatprep.subr.bf16.mxu1 %v6257_v54 }
 0x263   :  { %5063 = vmatpush1.bf16.msra.mxu1 %v6265_v59 }
 0x264   :  { %5065 = vmatprep.subr.bf16.mxu1 %v6278_v61 }
 0x267   :  { %5067 = vmatpush1.bf16.msra.mxu1 %v6283_v23 }
 0x268   :  { %5085 = vmatprep.subr.bf16.mxu1 %v6220_v52 }
 0x30b   :  { %v948_v45 = vpop.f32.mrb[0].mxu1 }
 0x30c   :  { %v949_v0 = vadd.f32 %v948_v45, %v859_v30  ;;  %v950_v56 = vpop.f32.mrb[1].mxu1 }
 0x30d   :  { %v951_v32 = vadd.f32 %v950_v56, %v860_v31 }
 0x30f   :  { %v979_v51 = vcombine.low %v949_v0, %v951_v32  ;;  %v980_v33 = vcombine.high %v949_v0, %v951_v32  ;;  %v954_v34 = vpop.f32.mrb[2].mxu1 }
 0x310   :  { %v955_v35 = vadd.f32 %v954_v34, %v859_v30  ;;  %v956_v1 = vpop.f32.mrb[3].mxu1 }
 0x311   :  { %v957_v36 = vadd.f32 %v956_v1, %v860_v31  ;;  %v6343_v39 = vrot.slane %v979_v51, %v6148_v29  ;;  %v6346_v62 = vrot.slane %v980_v33, %v6148_v29 }
 0x313   :  { %v997_v19 = vcombine.low %v955_v35, %v957_v36  ;;  %v998_v38 = vcombine.high %v955_v35, %v957_v36  ;;  %v6357_v5 = vcombine.high %v6343_v39, %v6343_v39  ;;  %v6361_v63 = vcombine.high %v6346_v62, %v6346_v62 }
 0x314   :  { %v1071_v58 = vrot.slane %v6343_v39, %v6148_v29  ;;  %v1314_v26 = vrot.slane %v6346_v62, %v6148_v29 }
 0x315   :  { %v6349_v40 = vrot.slane %v997_v19, %v6148_v29  ;;  %v6353_v44 = vrot.slane %v998_v38, %v6148_v29  ;;  %v1198_v3 = vrot.slane %v6357_v5, %v6148_v29  ;;  %v1430_v4 = vrot.slane %v6361_v63, %v6148_v29 }
 0x316   :  { %v6388_v15 = vcombine.high %v1071_v58, %v1071_v58  ;;  %v6398_v55 = vcombine.high %v1314_v26, %v1314_v26 }
 0x317   :  { %v6367_v10 = vcombine.high %v6349_v40, %v6349_v40  ;;  %v1546_v37 = vrot.slane %v6349_v40, %v6148_v29  ;;  %v1778_v7 = vrot.slane %v6353_v44, %v6148_v29  ;;  %v6400_v24 = vcombine.high %v1198_v3, %v1198_v3 }
 0x318   :  { %v6402_v53 = vcombine.high %v1430_v4, %v1430_v4 }
 0x319   :  { %v1662_v11 = vrot.slane %v6367_v10, %v6148_v29  ;;  %v6404_v25 = vcombine.high %v1546_v37, %v1546_v37  ;;  %v6406_v27 = vcombine.high %v1778_v7, %v1778_v7 }
 0x31b   :  { %v1663_v34 = vcombine.high %v1662_v11, %v1662_v11 }
 0x325   :  { %v960_v47 = vpop.f32.mrb[4].mxu1 }
 0x326   :  { %v961_v49 = vadd.f32 %v960_v47, %v859_v30  ;;  %v962_v50 = vpop.f32.mrb[5].mxu1 }
 0x327   :  { %v963_v60 = vadd.f32 %v962_v50, %v860_v31 }
 0x329   :  { %v1015_v8 = vcombine.low %v961_v49, %v963_v60  ;;  %v1016_v9 = vcombine.high %v961_v49, %v963_v60  ;;  %v966_v12 = vpop.f32.mrb[6].mxu1 }
 0x32a   :  { %v967_v13 = vadd.f32 %v966_v12, %v868_v57  ;;  %v968_v14 = vpop.f32.mrb[7].mxu1 }
 0x32b   :  { %v6393_v16 = vrot.slane %v1015_v8, %v6148_v29  ;;  %v6396_v18 = vrot.slane %v1016_v9, %v6148_v29  ;;  %v969_v22 = vadd.f32 %v968_v14, %v869_v6 }
 0x32d   :  { %v1033_v28 = vcombine.low %v967_v13, %v969_v22  ;;  %v1034_v30 = vcombine.high %v967_v13, %v969_v22  ;;  %v1169_v31 = vpop.f32.mrb[8].mxu1  ;;  %v6410_v45 = vcombine.high %v6396_v18, %v6396_v18  ;;  %v1558_v0 = vsel %vm1083_vm3, %v6349_v40, %v6396_v18 }
 0x32e   :  { %v1170_v56 = vadd.f32 %v1169_v31, %v6386_v41  ;;  %v6416_v32 = vpop.f32.mrb[9].mxu1  ;;  %v1559_v51 = vsel %vm1085_vm4, %v1558_v0, %v6349_v40  ;;  %v1555_v33 = vrot.slane %v6396_v18, %v6148_v29  ;;  %v1031_v19 = vcombine.high %v6393_v16, %v6393_v16 }
 0x32f   :  { %v6423_v35 = vrot.slane %v1033_v28, %v6148_v29  ;;  %v6426_v1 = vrot.slane %v1034_v30, %v6148_v29  ;;  %v1442_v36 = vsel %vm1083_vm3, %v6361_v63, %v6410_v45  ;;  %v1439_v42 = vrot.slane %v6410_v45, %v6148_v29 }
 0x330   :  { %v1443_v38 = vsel %vm1085_vm4, %v1442_v36, %v6361_v63  ;;  %v6439_v47 = vsel %vm1087_vm5, %v1559_v51, %v6396_v18  ;;  %v1556_v49 = vcombine.high %v1555_v33, %v1555_v33  ;;  %v1674_v33 = vsel %vm1083_vm3, %v6367_v10, %v1031_v19 }
 0x331   :  { %v1084_v50 = vsel %vm1083_vm3, %v6343_v39, %v6426_v1  ;;  %v1080_v57 = vrot.slane %v6426_v1, %v6148_v29  ;;  %v1049_v58 = vcombine.high %v6423_v35, %v6423_v35  ;;  %v1326_v60 = vsel %vm1083_vm3, %v6346_v62, %v6423_v35 }
 0x332   :  { %v1086_v6 = vsel %vm1085_vm4, %v1084_v50, %v6343_v39  ;;  %v1327_v26 = vsel %vm1085_vm4, %v1326_v60, %v6346_v62  ;;  %v1323_v3 = vrot.slane %v6423_v35, %v6148_v29  ;;  %v6459_v4 = vsel %vm1087_vm5, %v1443_v38, %v6410_v45 }
 0x333   :  { %v1088_v37 = vsel %vm1087_vm5, %v1086_v6, %v6426_v1  ;;  %v1081_v7 = vcombine.high %v1080_v57, %v1080_v57  ;;  %v1210_v8 = vsel %vm1083_vm3, %v6357_v5, %v1049_v58  ;;  %v1207_v9 = vrot.slane %v1049_v58, %v6148_v29 }
 0x334   :  { %v1174_v12 = vadd.f32 %v1170_v56, %v1088_v37  ;;  %v1211_v13 = vsel %vm1085_vm4, %v1210_v8, %v6357_v5  ;;  %v6470_v14 = vsel %vm1087_vm5, %v1327_v26, %v6423_v35  ;;  %v1324_v11 = vcombine.high %v1323_v3, %v1323_v3 }
 0x335   :  { %v1089_v22 = vsel %vm1083_vm3, %v6388_v15, %v1081_v7  ;;  %v6475_v28 = vsel %vm1087_vm5, %v1211_v13, %v1049_v58  ;;  %v1208_v30 = vcombine.high %v1207_v9, %v1207_v9  ;;  %v1440_v31 = vcombine.high %v1439_v42, %v1439_v42 }
 0x336   :  { %v4883_v0 = vmul.f32 -1.442695, %v1174_v12  ;;  %v6479_v56 = vsel %vm1083_vm3, %v6398_v55, %v1324_v11  ;;  %v6483_v51 = vsel %vm1083_vm3, %v6404_v25, %v1556_v49  ;;  %v1675_v42 = vsel %vm1085_vm4, %v1674_v33, %v6367_v10 }
 0x337   :  { %v6489_v36 = vsel %vm1083_vm3, %v6400_v24, %v1208_v30  ;;  %v6493_v38 = vsel %vm1083_vm3, %v6402_v53, %v1440_v31  ;;  %v1671_v50 = vrot.slane %v1031_v19, %v6148_v29  ;;  %v6499_v57 = vsel %vm1087_vm5, %v1675_v42, %v1031_v19 }
 0x338   :  { %5548 = vpow2.f32 %v4883_v0  ;;  %v1790_v60 = vsel %vm1083_vm3, %v6353_v44, %v6393_v16  ;;  %v1787_v6 = vrot.slane %v6393_v16, %v6148_v29  ;;  %v1992_v37 = vsel %vm1083_vm3, %v6393_v16, %v6353_v44 }
 0x339   :  { %v1672_v26 = vcombine.high %v1671_v50, %v1671_v50  ;;  %v1791_v3 = vsel %vm1085_vm4, %v1790_v60, %v6353_v44  ;;  %v2090_v8 = vsel %vm1083_vm3, %v1031_v19, %v6367_v10  ;;  %v1993_v13 = vsel %vm1085_vm4, %v1992_v37, %v6393_v16 }
 0x33a   :  { %v6515_v9 = vsel %vm1087_vm5, %v1791_v3, %v6393_v16  ;;  %v1788_v12 = vcombine.high %v1787_v6, %v1787_v6  ;;  %v2091_v0 = vsel %vm1085_vm4, %v2090_v8, %v1031_v19  ;;  %v6525_v42 = vsel %vm1087_vm5, %v1993_v13, %v6353_v44 }
 0x33b   :  { %v6521_v33 = vsel %vm1083_vm3, %v1663_v34, %v1672_v26  ;;  %v6529_v50 = vsel %vm1087_vm5, %v2091_v0, %v6367_v10  ;;  %v6532_v60 = vsel %vm1083_vm3, %v1672_v26, %v1663_v34  ;;  %v2188_v19 = vsel %vm1083_vm3, %v6396_v18, %v6349_v40 }
 0x33c   :  { %v6536_v6 = vsel %vm1083_vm3, %v6406_v27, %v1788_v12  ;;  %v6540_v16 = vsel %vm1083_vm3, %v1788_v12, %v6406_v27  ;;  %v6547_v3 = vsel %vm1083_vm3, %v1556_v49, %v6404_v25  ;;  %v2189_v10 = vsel %vm1085_vm4, %v2188_v19, %v6396_v18 }
 0x33d   :  { %v2286_v34 = vsel %vm1083_vm3, %v6410_v45, %v6361_v63  ;;  %v6556_v26 = vsel %vm1083_vm3, %v1440_v31, %v6402_v53  ;;  %v2384_v27 = vsel %vm1083_vm3, %v6423_v35, %v6346_v62  ;;  %v6563_v37 = vsel %vm1087_vm5, %v2189_v10, %v6349_v40 }
 0x33e   :  { %v2287_v25 = vsel %vm1085_vm4, %v2286_v34, %v6410_v45  ;;  %v2385_v18 = vsel %vm1085_vm4, %v2384_v27, %v6423_v35  ;;  %v6571_v49 = vsel %vm1083_vm3, %v1324_v11, %v6398_v55  ;;  %v2482_v40 = vsel %vm1083_vm3, %v1049_v58, %v6357_v5 }
 0x33f   :  { %v6575_v53 = vsel %vm1087_vm5, %v2287_v25, %v6361_v63  ;;  %v6579_v31 = vsel %vm1087_vm5, %v2385_v18, %v6346_v62  ;;  %v6585_v45 = vsel %vm1083_vm3, %v1208_v30, %v6400_v24  ;;  %v2483_v35 = vsel %vm1085_vm4, %v2482_v40, %v1049_v58 }
 0x340   :  { %v2580_v55 = vsel %vm1083_vm3, %v6426_v1, %v6343_v39  ;;  %v6593_v63 = vsel %vm1083_vm3, %v1081_v7, %v6388_v15  ;;  %v6597_v62 = vsel %vm1087_vm5, %v2483_v35, %v6357_v5  ;;  %v6607_v30 = vrot.slane %v6372_v2, %v5980_v20 }
 0x341   :  { %v2581_v11 = vsel %vm1085_vm4, %v2580_v55, %v6426_v1 }
 0x342   :  { %v5549_v8 = vpop.eup %5548  ;;  %v6603_v24 = vsel %vm1087_vm5, %v2581_v11, %v6343_v39  ;;  %v1172_v15 = vadd.f32 %v6416_v32, %v6607_v30 }
 0x343   :  { %v1178_v58 = vadd.f32 1.0, %v5549_v8 }
 0x345   :  { %5550 = vrcp.f32 %v1178_v58 }
 0x34f   :  { %v5551_v7 = vpop.eup %5550 }
 0x350   :  { %v1181_v5 = vmul.f32 %v5551_v7, %v1172_v15  ;;  %v1184_v1 = vsub.f32 1.0, %v5551_v7  ;;  %v1190_v0 = vmul.f32 0.0, %v5551_v7 }
 0x352   :  { %v1182_v12 = vadd.f32 %v1181_v5, %v1089_v22 }
 0x354   :  { %5552 = vtanh.f32 %v1182_v12 }
 0x35e   :  { %v5553_v13 = vpop.eup %5552 }
 0x35f   :  { %1186 = vrot.lane.b32.xlu0 %v5553_v13, %s5808_s8 }
 0x3d1   :  { %v1187_v39 = vpop.permute.xlu0 %1186 }
 0x3d2   :  { %v1189_v19 = vmul.f32 %v1187_v39, %v1184_v1 }
 0x3d4   :  { %v1191_v10 = vadd.f32 %v1190_v0, %v1189_v19 }
 0x3d6   :  { %1215 = vrot.lane.b32.xlu1 %v1191_v10, %s5808_s8 }
 0x448   :  { %v6613_v2 = vpop.permute.xlu1 %1215 }
 0x449   :  { %4884 = vmatmul.mubr.msk.f32.vlgmr.msra.gmra.mrb[4].mxu0 %vm1085_vm4, %v6613_v2 }
 0x44a   :  { %5071 = vmatpush1.bf16.msra.mxu0 %v6228_v43  ;;  %1515 = vmatprep.mubr.f32.mxu0 %v5805_v17 }
 0x44b   :  { %5073 = vmatprep.subr.bf16.mxu0 %v6237_v46 }
 0x44e   :  { %5075 = vmatpush1.bf16.msra.mxu0 %v6248_v48 }
 0x44f   :  { %5077 = vmatprep.subr.bf16.mxu0 %v6257_v54 }
 0x452   :  { %5079 = vmatpush1.bf16.msra.mxu0 %v6265_v59 }
 0x453   :  { %5081 = vmatprep.subr.bf16.mxu0 %v6278_v61 }
 0x456   :  { %5083 = vmatpush1.bf16.msra.mxu0 %v6283_v23 }
 0x457   :  { %5101 = vmatprep.subr.bf16.mxu0 %v6220_v52 }
 0x51c   :  { %v1285_v32 = vpop.f32.mrb[4].mxu0 }
 0x51d   :  { %v1286_v22 = vadd.f32 %v1285_v32, %v6386_v41  ;;  %v1287_v34 = vpop.f32.mrb[5].mxu0 }
 0x51e   :  { %v1288_v35 = vadd.f32 %v1287_v34, %v6607_v30 }
 0x51f   :  { %v1290_v27 = vadd.f32 %v1286_v22, %v6475_v28 }
 0x521   :  { %v4885_v25 = vmul.f32 -1.442695, %v1290_v27 }
 0x523   :  { %5554 = vpow2.f32 %v4885_v25 }
 0x52d   :  { %v5555_v18 = vpop.eup %5554 }
 0x52e   :  { %v1294_v40 = vadd.f32 1.0, %v5555_v18 }
 0x530   :  { %5556 = vrcp.f32 %v1294_v40 }
 0x53a   :  { %v5557_v55 = vpop.eup %5556 }
 0x53b   :  { %v1297_v11 = vmul.f32 %v5557_v55, %v1288_v35  ;;  %v1300_v15 = vsub.f32 1.0, %v5557_v55  ;;  %v1306_v5 = vmul.f32 %v5557_v55, %v1191_v10 }
 0x53d   :  { %v1298_v8 = vadd.f32 %v1297_v11, %v6489_v36 }
 0x53f   :  { %5558 = vtanh.f32 %v1298_v8 }
 0x549   :  { %v5559_v58 = vpop.eup %5558 }
 0x54a   :  { %1302 = vrot.lane.b32.xlu0 %v5559_v58, %s5808_s8 }
 0x5bc   :  { %v1303_v7 = vpop.permute.xlu0 %1302 }
 0x5bd   :  { %v1305_v12 = vmul.f32 %v1303_v7, %v1300_v15 }
 0x5bf   :  { %v1307_v28 = vadd.f32 %v1306_v5, %v1305_v12 }
 0x5c1   :  { %1331 = vrot.lane.b32.xlu1 %v1307_v28, %s5808_s8 }
 0x633   :  { %v6632_v13 = vpop.permute.xlu1 %1331 }
 0x634   :  { %4886 = vmatmul.mubr.msk.f32.vlgmr.msra.gmra.mrb[10].mxu1 %vm1085_vm4, %v6632_v13 }
 0x635   :  { %5087 = vmatpush1.bf16.msra.mxu1 %v6228_v43  ;;  %1631 = vmatprep.mubr.f32.mxu1 %v5805_v17 }
 0x636   :  { %5089 = vmatprep.subr.bf16.mxu1 %v6237_v46 }
 0x639   :  { %5091 = vmatpush1.bf16.msra.mxu1 %v6248_v48 }
 0x63a   :  { %5093 = vmatprep.subr.bf16.mxu1 %v6257_v54 }
 0x63d   :  { %5095 = vmatpush1.bf16.msra.mxu1 %v6265_v59 }
 0x63e   :  { %5097 = vmatprep.subr.bf16.mxu1 %v6278_v61 }
 0x641   :  { %5099 = vmatpush1.bf16.msra.mxu1 %v6283_v23 }
 0x642   :  { %5117 = vmatprep.subr.bf16.mxu1 %v6220_v52 }
 0x707   :  { %v1401_v36 = vpop.f32.mrb[10].mxu1 }
 0x708   :  { %v1402_v1 = vadd.f32 %v1401_v36, %v6386_v41  ;;  %v1403_v39 = vpop.f32.mrb[11].mxu1 }
 0x709   :  { %v1404_v22 = vadd.f32 %v1403_v39, %v6607_v30 }
 0x70a   :  { %v1406_v0 = vadd.f32 %v1402_v1, %v6470_v14 }
 0x70c   :  { %v4887_v19 = vmul.f32 -1.442695, %v1406_v0 }
 0x70e   :  { %5560 = vpow2.f32 %v4887_v19 }
 0x718   :  { %v5561_v10 = vpop.eup %5560 }
 0x719   :  { %v1410_v32 = vadd.f32 1.0, %v5561_v10 }
 0x71b   :  { %5562 = vrcp.f32 %v1410_v32 }
 0x725   :  { %v5563_v34 = vpop.eup %5562 }
 0x726   :  { %v1413_v27 = vmul.f32 %v5563_v34, %v1404_v22  ;;  %v1416_v40 = vsub.f32 1.0, %v5563_v34  ;;  %v1422_v55 = vmul.f32 %v5563_v34, %v1307_v28 }
 0x728   :  { %v1414_v25 = vadd.f32 %v1413_v27, %v6479_v56 }
 0x72a   :  { %5564 = vtanh.f32 %v1414_v25 }
 0x734   :  { %v5565_v18 = vpop.eup %5564 }
 0x735   :  { %1418 = vrot.lane.b32.xlu0 %v5565_v18, %s5808_s8 }
 0x7a7   :  { %v1419_v35 = vpop.permute.xlu0 %1418 }
 0x7a8   :  { %v1421_v11 = vmul.f32 %v1419_v35, %v1416_v40 }
 0x7aa   :  { %v1423_v14 = vadd.f32 %v1422_v55, %v1421_v11 }
 0x7ac   :  { %1447 = vrot.lane.b32.xlu1 %v1423_v14, %s5808_s8 }
 0x81e   :  { %v6651_v8 = vpop.permute.xlu1 %1447 }
 0x81f   :  { %4888 = vmatmul.mubr.msk.f32.vlgmr.msra.gmra.mrb[6].mxu0 %vm1085_vm4, %v6651_v8 }
 0x820   :  { %5103 = vmatpush1.bf16.msra.mxu0 %v6228_v43  ;;  %1747 = vmatprep.mubr.f32.mxu0 %v5805_v17 }
 0x821   :  { %5105 = vmatprep.subr.bf16.mxu0 %v6237_v46 }
 0x824   :  { %5107 = vmatpush1.bf16.msra.mxu0 %v6248_v48 }
 0x825   :  { %5109 = vmatprep.subr.bf16.mxu0 %v6257_v54 }
 0x828   :  { %5111 = vmatpush1.bf16.msra.mxu0 %v6265_v59 }
 0x829   :  { %5113 = vmatprep.subr.bf16.mxu0 %v6278_v61 }
 0x82c   :  { %5115 = vmatpush1.bf16.msra.mxu0 %v6283_v23 }
 0x82d   :  { %5133 = vmatprep.subr.bf16.mxu0 %v6220_v52 }
 0x8f2   :  { %v1517_v56 = vpop.f32.mrb[6].mxu0 }
 0x8f3   :  { %v1518_v58 = vadd.f32 %v1517_v56, %v6386_v41  ;;  %v1519_v15 = vpop.f32.mrb[7].mxu0 }
 0x8f4   :  { %v1520_v36 = vadd.f32 %v1519_v15, %v6607_v30 }
 0x8f5   :  { %v1522_v7 = vadd.f32 %v1518_v58, %v6459_v4 }
 0x8f7   :  { %v4889_v5 = vmul.f32 -1.442695, %v1522_v7 }
 0x8f9   :  { %5566 = vpow2.f32 %v4889_v5 }
 0x903   :  { %v5567_v12 = vpop.eup %5566 }
 0x904   :  { %v1526_v28 = vadd.f32 1.0, %v5567_v12 }
 0x906   :  { %5568 = vrcp.f32 %v1526_v28 }
 0x910   :  { %v5569_v1 = vpop.eup %5568 }
 0x911   :  { %v1529_v39 = vmul.f32 %v5569_v1, %v1520_v36  ;;  %v1532_v10 = vsub.f32 1.0, %v5569_v1  ;;  %v1538_v22 = vmul.f32 %v5569_v1, %v1423_v14 }
 0x913   :  { %v1530_v0 = vadd.f32 %v1529_v39, %v6493_v38 }
 0x915   :  { %5570 = vtanh.f32 %v1530_v0 }
 0x91f   :  { %v5571_v19 = vpop.eup %5570 }
 0x920   :  { %1534 = vrot.lane.b32.xlu0 %v5571_v19, %s5808_s8 }
 0x992   :  { %v1535_v32 = vpop.permute.xlu0 %1534 }
 0x993   :  { %v1537_v34 = vmul.f32 %v1535_v32, %v1532_v10 }
 0x995   :  { %v1539_v4 = vadd.f32 %v1538_v22, %v1537_v34 }
 0x997   :  { %1563 = vrot.lane.b32.xlu1 %v1539_v4, %s5808_s8 }
 0xa09   :  { %v6670_v27 = vpop.permute.xlu1 %1563 }
 0xa0a   :  { %4890 = vmatmul.mubr.msk.f32.vlgmr.msra.gmra.mrb[12].mxu1 %vm1085_vm4, %v6670_v27 }
 0xa0b   :  { %5119 = vmatpush1.bf16.msra.mxu1 %v6228_v43  ;;  %1863 = vmatprep.mubr.f32.mxu1 %v5805_v17 }
 0xa0c   :  { %5121 = vmatprep.subr.bf16.mxu1 %v6237_v46 }
 0xa0f   :  { %5123 = vmatpush1.bf16.msra.mxu1 %v6248_v48 }
 0xa10   :  { %5125 = vmatprep.subr.bf16.mxu1 %v6257_v54 }
 0xa13   :  { %5127 = vmatpush1.bf16.msra.mxu1 %v6265_v59 }
 0xa14   :  { %5129 = vmatprep.subr.bf16.mxu1 %v6278_v61 }
 0xa17   :  { %5131 = vmatpush1.bf16.msra.mxu1 %v6283_v23 }
 0xa18   :  { %5149 = vmatprep.subr.bf16.mxu1 %v6220_v52 }
 0xadd   :  { %v1633_v38 = vpop.f32.mrb[12].mxu1 }
 0xade   :  { %v1634_v25 = vadd.f32 %v1633_v38, %v6386_v41  ;;  %v1635_v18 = vpop.f32.mrb[13].mxu1 }
 0xadf   :  { %v1636_v14 = vadd.f32 %v1635_v18, %v6607_v30 }
 0xae0   :  { %v1638_v40 = vadd.f32 %v1634_v25, %v6439_v47 }
 0xae2   :  { %v4891_v35 = vmul.f32 -1.442695, %v1638_v40 }
 0xae4   :  { %5572 = vpow2.f32 %v4891_v35 }
 0xaee   :  { %v5573_v55 = vpop.eup %5572 }
 0xaef   :  { %v1642_v11 = vadd.f32 1.0, %v5573_v55 }
 0xaf1   :  { %5574 = vrcp.f32 %v1642_v11 }
 0xafb   :  { %v5575_v56 = vpop.eup %5574 }
 0xafc   :  { %v1645_v58 = vmul.f32 %v5575_v56, %v1636_v14  ;;  %v1648_v5 = vsub.f32 1.0, %v5575_v56  ;;  %v1654_v28 = vmul.f32 %v5575_v56, %v1539_v4 }
 0xafe   :  { %v1646_v15 = vadd.f32 %v1645_v58, %v6483_v51 }
 0xb00   :  { %5576 = vtanh.f32 %v1646_v15 }
 0xb0a   :  { %v5577_v7 = vpop.eup %5576 }
 0xb0b   :  { %1650 = vrot.lane.b32.xlu0 %v5577_v7, %s5808_s8 }
 0xb7d   :  { %v1651_v12 = vpop.permute.xlu0 %1650 }
 0xb7e   :  { %v1653_v36 = vmul.f32 %v1651_v12, %v1648_v5 }
 0xb80   :  { %v1655_v47 = vadd.f32 %v1654_v28, %v1653_v36 }
 0xb82   :  { %1679 = vrot.lane.b32.xlu1 %v1655_v47, %s5808_s8 }
 0xbf4   :  { %v6689_v1 = vpop.permute.xlu1 %1679 }
 0xbf5   :  { %4892 = vmatmul.mubr.msk.f32.vlgmr.msra.gmra.mrb[8].mxu0 %vm1085_vm4, %v6689_v1 }
 0xbf6   :  { %5135 = vmatpush1.bf16.msra.mxu0 %v6228_v43  ;;  %1967 = vmatprep.mubr.f32.mxu0 %v5805_v17 }
 0xbf7   :  { %5137 = vmatprep.subr.bf16.mxu0 %v6237_v46 }
 0xbfa   :  { %5139 = vmatpush1.bf16.msra.mxu0 %v6248_v48 }
 0xbfb   :  { %5141 = vmatprep.subr.bf16.mxu0 %v6257_v54 }
 0xbfe   :  { %5143 = vmatpush1.bf16.msra.mxu0 %v6265_v59 }
 0xbff   :  { %5145 = vmatprep.subr.bf16.mxu0 %v6278_v61 }
 0xc02   :  { %5147 = vmatpush1.bf16.msra.mxu0 %v6283_v23 }
 0xc03   :  { %5165 = vmatprep.subr.bf16.mxu0 %v6220_v52 }
 0xcc8   :  { %v1749_v51 = vpop.f32.mrb[8].mxu0 }
 0xcc9   :  { %v1750_v39 = vadd.f32 %v1749_v51, %v6386_v41  ;;  %v1751_v0 = vpop.f32.mrb[9].mxu0 }
 0xcca   :  { %v1752_v34 = vadd.f32 %v1751_v0, %v6607_v30 }
 0xccb   :  { %v1754_v19 = vadd.f32 %v1750_v39, %v6499_v57 }
 0xccd   :  { %v4893_v10 = vmul.f32 -1.442695, %v1754_v19 }
 0xccf   :  { %5578 = vpow2.f32 %v4893_v10 }
 0xcd9   :  { %v5579_v32 = vpop.eup %5578 }
 0xcda   :  { %v1758_v22 = vadd.f32 1.0, %v5579_v32 }
 0xcdc   :  { %5580 = vrcp.f32 %v1758_v22 }
 0xce6   :  { %v5581_v4 = vpop.eup %5580 }
 0xce7   :  { %v1761_v38 = vmul.f32 %v5581_v4, %v1752_v34  ;;  %v1764_v40 = vsub.f32 1.0, %v5581_v4  ;;  %v1770_v55 = vmul.f32 %v5581_v4, %v1655_v47  ;;  %v1014_v34 = vcombine.high %v6353_v44, %v6353_v44 }
 0xce9   :  { %v1762_v25 = vadd.f32 %v1761_v38, %v6521_v33 }
 0xceb   :  { %5582 = vtanh.f32 %v1762_v25 }
 0xcf5   :  { %v5583_v18 = vpop.eup %5582 }
 0xcf6   :  { %1766 = vrot.lane.b32.xlu0 %v5583_v18, %s5808_s8 }
 0xd68   :  { %v1767_v35 = vpop.permute.xlu0 %1766 }
 0xd69   :  { %v1769_v11 = vmul.f32 %v1767_v35, %v1764_v40 }
 0xd6b   :  { %v1771_v57 = vadd.f32 %v1770_v55, %v1769_v11  ;;  %v1894_v55 = vrot.slane %v1014_v34, %v6148_v29 }
 0xd6d   :  { %1795 = vrot.lane.b32.xlu1 %v1771_v57, %s5808_s8 }
 0xddf   :  { %v6708_v14 = vpop.permute.xlu1 %1795 }
 0xde0   :  { %4894 = vmatmul.mubr.msk.f32.vlgmr.msra.gmra.mrb[14].mxu1 %vm1085_vm4, %v6708_v14 }
 0xde1   :  { %5151 = vmatpush1.bf16.msra.mxu1 %v6228_v43  ;;  %2065 = vmatprep.mubr.f32.mxu1 %v5805_v17 }
 0xde2   :  { %5153 = vmatprep.subr.bf16.mxu1 %v6237_v46 }
 0xde5   :  { %5155 = vmatpush1.bf16.msra.mxu1 %v6248_v48 }
 0xde6   :  { %5157 = vmatprep.subr.bf16.mxu1 %v6257_v54 }
 0xde9   :  { %5159 = vmatpush1.bf16.msra.mxu1 %v6265_v59 }
 0xdea   :  { %5161 = vmatprep.subr.bf16.mxu1 %v6278_v61 }
 0xded   :  { %5163 = vmatpush1.bf16.msra.mxu1 %v6283_v23 }
 0xdee   :  { %5181 = vmatprep.subr.bf16.mxu1 %v6220_v52 }
 0xeb3   :  { %v1865_v33 = vpop.f32.mrb[14].mxu1 }
 0xeb4   :  { %v1866_v56 = vadd.f32 %v1865_v33, %v6386_v41  ;;  %v1867_v58 = vpop.f32.mrb[15].mxu1  ;;  %v1895_v33 = vcombine.high %v1894_v55, %v1894_v55 }
 0xeb5   :  { %v1868_v28 = vadd.f32 %v1867_v58, %v6607_v30 }
 0xeb6   :  { %v1870_v15 = vadd.f32 %v1866_v56, %v6515_v9 }
 0xeb8   :  { %v4895_v7 = vmul.f32 -1.442695, %v1870_v15 }
 0xeba   :  { %5584 = vpow2.f32 %v4895_v7 }
 0xec4   :  { %v5585_v5 = vpop.eup %5584 }
 0xec5   :  { %v1874_v12 = vadd.f32 1.0, %v5585_v5 }
 0xec7   :  { %5586 = vrcp.f32 %v1874_v12 }
 0xed1   :  { %v5587_v36 = vpop.eup %5586 }
 0xed2   :  { %v1877_v47 = vmul.f32 %v5587_v36, %v1868_v28  ;;  %v1880_v0 = vsub.f32 1.0, %v5587_v36  ;;  %v1886_v10 = vmul.f32 %v5587_v36, %v1771_v57 }
 0xed4   :  { %v1878_v51 = vadd.f32 %v1877_v47, %v6536_v6 }
 0xed6   :  { %5588 = vtanh.f32 %v1878_v51 }
 0xee0   :  { %v5589_v39 = vpop.eup %5588 }
 0xee1   :  { %1882 = vrot.lane.b32.xlu0 %v5589_v39, %s5808_s8 }
 0xf53   :  { %v1883_v19 = vpop.permute.xlu0 %1882 }
 0xf54   :  { %v1885_v32 = vmul.f32 %v1883_v19, %v1880_v0 }
 0xf56   :  { %v1887_v9 = vadd.f32 %v1886_v10, %v1885_v32 }
 0xf58   :  { %1899 = vrot.lane.b32.xlu1 %v1887_v9, %s5808_s8 }
 0xfca   :  { %v6727_v22 = vpop.permute.xlu1 %1899 }
 0xfcb   :  { %4896 = vmatmul.mubr.msk.f32.vlgmr.msra.gmra.mrb[10].mxu0 %vm1085_vm4, %v6727_v22 }
 0xfcc   :  { %5167 = vmatpush1.bf16.msra.mxu0 %v6228_v43  ;;  %2163 = vmatprep.mubr.f32.mxu0 %v5805_v17 }
 0xfcd   :  { %5169 = vmatprep.subr.bf16.mxu0 %v6237_v46 }
 0xfd0   :  { %5171 = vmatpush1.bf16.msra.mxu0 %v6248_v48 }
 0xfd1   :  { %5173 = vmatprep.subr.bf16.mxu0 %v6257_v54 }
 0xfd4   :  { %5175 = vmatpush1.bf16.msra.mxu0 %v6265_v59 }
 0xfd5   :  { %5177 = vmatprep.subr.bf16.mxu0 %v6278_v61 }
 0xfd8   :  { %5179 = vmatpush1.bf16.msra.mxu0 %v6283_v23 }
 0xfd9   :  { %5197 = vmatprep.subr.bf16.mxu0 %v6220_v52 }
0x109e   :  { %v1969_v6 = vpop.f32.mrb[10].mxu0 }
0x109f   :  { %v1970_v4 = vadd.f32 %v1969_v6, %v6386_v41  ;;  %v1971_v38 = vpop.f32.mrb[11].mxu0 }
0x10a0   :  { %v1972_v11 = vadd.f32 %v1971_v38, %v6607_v30 }
0x10a1   :  { %v1974_v25 = vadd.f32 %v1970_v4, %v1014_v34 }
0x10a3   :  { %v4897_v18 = vmul.f32 -1.442695, %v1974_v25 }
0x10a5   :  { %5590 = vpow2.f32 %v4897_v18 }
0x10af   :  { %v5591_v40 = vpop.eup %5590 }
0x10b0   :  { %v1978_v35 = vadd.f32 1.0, %v5591_v40 }
0x10b2   :  { %5592 = vrcp.f32 %v1978_v35 }
0x10bc   :  { %v5593_v57 = vpop.eup %5592 }
0x10bd   :  { %v1981_v56 = vmul.f32 %v5593_v57, %v1972_v11  ;;  %v1984_v44 = vsub.f32 1.0, %v5593_v57  ;;  %v1990_v5 = vmul.f32 %v5593_v57, %v1887_v9 }
0x10bf   :  { %v1982_v58 = vadd.f32 %v1981_v56, %v1895_v33 }
0x10c1   :  { %5594 = vtanh.f32 %v1982_v58 }
0x10cb   :  { %v5595_v15 = vpop.eup %5594 }
0x10cc   :  { %1986 = vrot.lane.b32.xlu0 %v5595_v15, %s5808_s8 }
0x113e   :  { %v1987_v7 = vpop.permute.xlu0 %1986 }
0x113f   :  { %v1989_v12 = vmul.f32 %v1987_v7, %v1984_v44 }
0x1141   :  { %v1991_v28 = vadd.f32 %v1990_v5, %v1989_v12 }
0x1143   :  { %1997 = vrot.lane.b32.xlu1 %v1991_v28, %s5808_s8 }
0x11b5   :  { %v6747_v36 = vpop.permute.xlu1 %1997 }
0x11b6   :  { %4898 = vmatmul.mubr.msk.f32.vlgmr.msra.gmra.mrb[16].mxu1 %vm1085_vm4, %v6747_v36 }
0x11b7   :  { %5183 = vmatpush1.bf16.msra.mxu1 %v6228_v43  ;;  %2261 = vmatprep.mubr.f32.mxu1 %v5805_v17 }
0x11b8   :  { %5185 = vmatprep.subr.bf16.mxu1 %v6237_v46 }
0x11bb   :  { %5187 = vmatpush1.bf16.msra.mxu1 %v6248_v48 }
0x11bc   :  { %5189 = vmatprep.subr.bf16.mxu1 %v6257_v54 }
0x11bf   :  { %5191 = vmatpush1.bf16.msra.mxu1 %v6265_v59 }
0x11c0   :  { %5193 = vmatprep.subr.bf16.mxu1 %v6278_v61 }
0x11c3   :  { %5195 = vmatpush1.bf16.msra.mxu1 %v6283_v23 }
0x11c4   :  { %5213 = vmatprep.subr.bf16.mxu1 %v6220_v52 }
0x1289   :  { %v2067_v47 = vpop.f32.mrb[16].mxu1 }
0x128a   :  { %v2068_v51 = vadd.f32 %v2067_v47, %v6386_v41  ;;  %v2069_v39 = vpop.f32.mrb[17].mxu1 }
0x128b   :  { %v2070_v9 = vadd.f32 %v2069_v39, %v6607_v30 }
0x128c   :  { %v2072_v0 = vadd.f32 %v2068_v51, %v6525_v42 }
0x128e   :  { %v4899_v19 = vmul.f32 -1.442695, %v2072_v0 }
0x1290   :  { %5596 = vpow2.f32 %v4899_v19 }
0x129a   :  { %v5597_v10 = vpop.eup %5596 }
0x129b   :  { %v2076_v32 = vadd.f32 1.0, %v5597_v10 }
0x129d   :  { %5598 = vrcp.f32 %v2076_v32 }
0x12a7   :  { %v5599_v6 = vpop.eup %5598 }
0x12a8   :  { %v2079_v34 = vmul.f32 %v5599_v6, %v2070_v9  ;;  %v2082_v25 = vsub.f32 1.0, %v5599_v6  ;;  %v2088_v40 = vmul.f32 %v5599_v6, %v1991_v28 }
0x12aa   :  { %v2080_v4 = vadd.f32 %v2079_v34, %v6540_v16 }
0x12ac   :  { %5600 = vtanh.f32 %v2080_v4 }
0x12b6   :  { %v5601_v38 = vpop.eup %5600 }
0x12b7   :  { %2084 = vrot.lane.b32.xlu0 %v5601_v38, %s5808_s8 }
0x1329   :  { %v2085_v18 = vpop.permute.xlu0 %2084 }
0x132a   :  { %v2087_v35 = vmul.f32 %v2085_v18, %v2082_v25 }
0x132c   :  { %v2089_v42 = vadd.f32 %v2088_v40, %v2087_v35 }
0x132e   :  { %2095 = vrot.lane.b32.xlu1 %v2089_v42, %s5808_s8 }
0x13a0   :  { %v6766_v55 = vpop.permute.xlu1 %2095 }
0x13a1   :  { %4900 = vmatmul.mubr.msk.f32.vlgmr.msra.gmra.mrb[12].mxu0 %vm1085_vm4, %v6766_v55 }
0x13a2   :  { %5199 = vmatpush1.bf16.msra.mxu0 %v6228_v43  ;;  %2359 = vmatprep.mubr.f32.mxu0 %v5805_v17 }
0x13a3   :  { %5201 = vmatprep.subr.bf16.mxu0 %v6237_v46 }
0x13a6   :  { %5203 = vmatpush1.bf16.msra.mxu0 %v6248_v48 }
0x13a7   :  { %5205 = vmatprep.subr.bf16.mxu0 %v6257_v54 }
0x13aa   :  { %5207 = vmatpush1.bf16.msra.mxu0 %v6265_v59 }
0x13ab   :  { %5209 = vmatprep.subr.bf16.mxu0 %v6278_v61 }
0x13ae   :  { %5211 = vmatpush1.bf16.msra.mxu0 %v6283_v23 }
0x13af   :  { %5229 = vmatprep.subr.bf16.mxu0 %v6220_v52 }
0x1474   :  { %v2165_v16 = vpop.f32.mrb[12].mxu0 }
0x1475   :  { %v2166_v11 = vadd.f32 %v2165_v16, %v6386_v41  ;;  %v2167_v57 = vpop.f32.mrb[13].mxu0 }
0x1476   :  { %v2168_v44 = vadd.f32 %v2167_v57, %v6607_v30 }
0x1477   :  { %v2170_v33 = vadd.f32 %v2166_v11, %v6529_v50 }
0x1479   :  { %v4901_v56 = vmul.f32 -1.442695, %v2170_v33 }
0x147b   :  { %5602 = vpow2.f32 %v4901_v56 }
0x1485   :  { %v5603_v58 = vpop.eup %5602 }
0x1486   :  { %v2174_v15 = vadd.f32 1.0, %v5603_v58 }
0x1488   :  { %5604 = vrcp.f32 %v2174_v15 }
0x1492   :  { %v5605_v7 = vpop.eup %5604 }
0x1493   :  { %v2177_v5 = vmul.f32 %v5605_v7, %v2168_v44  ;;  %v2180_v47 = vsub.f32 1.0, %v5605_v7  ;;  %v2186_v39 = vmul.f32 %v5605_v7, %v2089_v42 }
0x1495   :  { %v2178_v12 = vadd.f32 %v2177_v5, %v6532_v60 }
0x1497   :  { %5606 = vtanh.f32 %v2178_v12 }
0x14a1   :  { %v5607_v28 = vpop.eup %5606 }
0x14a2   :  { %2182 = vrot.lane.b32.xlu0 %v5607_v28, %s5808_s8 }
0x1514   :  { %v2183_v51 = vpop.permute.xlu0 %2182 }
0x1515   :  { %v2185_v0 = vmul.f32 %v2183_v51, %v2180_v47 }
0x1517   :  { %v2187_v50 = vadd.f32 %v2186_v39, %v2185_v0 }
0x1519   :  { %2193 = vrot.lane.b32.xlu1 %v2187_v50, %s5808_s8 }
0x158b   :  { %v6785_v19 = vpop.permute.xlu1 %2193 }
0x158c   :  { %4902 = vmatmul.mubr.msk.f32.vlgmr.msra.gmra.mrb[18].mxu1 %vm1085_vm4, %v6785_v19 }
0x158d   :  { %5215 = vmatpush1.bf16.msra.mxu1 %v6228_v43  ;;  %2457 = vmatprep.mubr.f32.mxu1 %v5805_v17 }
0x158e   :  { %5217 = vmatprep.subr.bf16.mxu1 %v6237_v46 }
0x1591   :  { %5219 = vmatpush1.bf16.msra.mxu1 %v6248_v48 }
0x1592   :  { %5221 = vmatprep.subr.bf16.mxu1 %v6257_v54 }
0x1595   :  { %5223 = vmatpush1.bf16.msra.mxu1 %v6265_v59 }
0x1596   :  { %5225 = vmatprep.subr.bf16.mxu1 %v6278_v61 }
0x1599   :  { %5227 = vmatpush1.bf16.msra.mxu1 %v6283_v23 }
0x159a   :  { %5245 = vmatprep.subr.bf16.mxu1 %v6220_v52 }
0x165f   :  { %v2263_v60 = vpop.f32.mrb[18].mxu1 }
0x1660   :  { %v2264_v10 = vadd.f32 %v2263_v60, %v6386_v41  ;;  %v2265_v32 = vpop.f32.mrb[19].mxu1 }
0x1661   :  { %v2266_v38 = vadd.f32 %v2265_v32, %v6607_v30 }
0x1662   :  { %v2268_v9 = vadd.f32 %v2264_v10, %v6563_v37 }
0x1664   :  { %v4903_v6 = vmul.f32 -1.442695, %v2268_v9 }
0x1666   :  { %5608 = vpow2.f32 %v4903_v6 }
0x1670   :  { %v5609_v34 = vpop.eup %5608 }
0x1671   :  { %v2272_v4 = vadd.f32 1.0, %v5609_v34 }
0x1673   :  { %5610 = vrcp.f32 %v2272_v4 }
0x167d   :  { %v5611_v25 = vpop.eup %5610 }
0x167e   :  { %v2275_v18 = vmul.f32 %v5611_v25, %v2266_v38  ;;  %v2278_v52 = vsub.f32 1.0, %v5611_v25  ;;  %v2284_v16 = vmul.f32 %v5611_v25, %v2187_v50 }
0x1680   :  { %v2276_v40 = vadd.f32 %v2275_v18, %v6547_v3 }
0x1682   :  { %5612 = vtanh.f32 %v2276_v40 }
0x168c   :  { %v5613_v35 = vpop.eup %5612 }
0x168d   :  { %2280 = vrot.lane.b32.xlu0 %v5613_v35, %s5808_s8 }
0x16ff   :  { %v2281_v42 = vpop.permute.xlu0 %2280 }
0x1700   :  { %v2283_v11 = vmul.f32 %v2281_v42, %v2278_v52 }
0x1702   :  { %v2285_v37 = vadd.f32 %v2284_v16, %v2283_v11 }
0x1704   :  { %2291 = vrot.lane.b32.xlu1 %v2285_v37, %s5808_s8 }
0x1776   :  { %v6804_v57 = vpop.permute.xlu1 %2291 }
0x1777   :  { %4904 = vmatmul.mubr.msk.f32.vlgmr.msra.gmra.mrb[14].mxu0 %vm1085_vm4, %v6804_v57 }
0x1778   :  { %5231 = vmatpush1.bf16.msra.mxu0 %v6228_v43  ;;  %2555 = vmatprep.mubr.f32.mxu0 %v5805_v17 }
0x1779   :  { %5233 = vmatprep.subr.bf16.mxu0 %v6237_v46 }
0x177c   :  { %5235 = vmatpush1.bf16.msra.mxu0 %v6248_v48 }
0x177d   :  { %5237 = vmatprep.subr.bf16.mxu0 %v6257_v54 }
0x1780   :  { %5239 = vmatpush1.bf16.msra.mxu0 %v6265_v59 }
0x1781   :  { %5241 = vmatprep.subr.bf16.mxu0 %v6278_v61 }
0x1784   :  { %5243 = vmatpush1.bf16.msra.mxu0 %v6283_v23 }
0x184a   :  { %v2361_v3 = vpop.f32.mrb[14].mxu0 }
0x184b   :  { %v2362_v33 = vadd.f32 %v2361_v3, %v6386_v41  ;;  %v2363_v56 = vpop.f32.mrb[15].mxu0 }
0x184c   :  { %v2364_v5 = vadd.f32 %v2363_v56, %v6607_v30 }
0x184d   :  { %v2366_v58 = vadd.f32 %v2362_v33, %v6575_v53 }
0x184f   :  { %v4905_v15 = vmul.f32 -1.442695, %v2366_v58 }
0x1851   :  { %5614 = vpow2.f32 %v4905_v15 }
0x185b   :  { %v5615_v44 = vpop.eup %5614 }
0x185c   :  { %v2370_v7 = vadd.f32 1.0, %v5615_v44 }
0x185e   :  { %5616 = vrcp.f32 %v2370_v7 }
0x1868   :  { %v5617_v12 = vpop.eup %5616 }
0x1869   :  { %v2373_v28 = vmul.f32 %v5617_v12, %v2364_v5  ;;  %v2376_v39 = vsub.f32 1.0, %v5617_v12  ;;  %v2382_v50 = vmul.f32 %v5617_v12, %v2285_v37 }
0x186b   :  { %v2374_v47 = vadd.f32 %v2373_v28, %v6556_v26 }
0x186d   :  { %5618 = vtanh.f32 %v2374_v47 }
0x1877   :  { %v5619_v51 = vpop.eup %5618 }
0x1878   :  { %2378 = vrot.lane.b32.xlu0 %v5619_v51, %s5808_s8 }
0x18ea   :  { %v2379_v0 = vpop.permute.xlu0 %2378 }
0x18eb   :  { %v2381_v60 = vmul.f32 %v2379_v0, %v2376_v39 }
0x18ed   :  { %v2383_v53 = vadd.f32 %v2382_v50, %v2381_v60 }
0x18ef   :  { %2389 = vrot.lane.b32.xlu1 %v2383_v53, %s5808_s8 }
0x1961   :  { %v6822_v10 = vpop.permute.xlu1 %2389 }
0x1962   :  { %4906 = vmatmul.mubr.msk.f32.vlgmr.msra.gmra.mrb[20].mxu1 %vm1085_vm4, %v6822_v10 }
0x1963   :  { %5247 = vmatpush1.bf16.msra.mxu1 %v6228_v43  ;;  %2653 = vmatprep.mubr.f32.mxu1 %v5805_v17 }
0x1964   :  { %5249 = vmatprep.subr.bf16.mxu1 %v6237_v46 }
0x1967   :  { %5251 = vmatpush1.bf16.msra.mxu1 %v6248_v48 }
0x1968   :  { %5253 = vmatprep.subr.bf16.mxu1 %v6257_v54 }
0x196b   :  { %5255 = vmatpush1.bf16.msra.mxu1 %v6265_v59 }
0x196c   :  { %5257 = vmatprep.subr.bf16.mxu1 %v6278_v61 }
0x196f   :  { %5259 = vmatpush1.bf16.msra.mxu1 %v6283_v23 }
0x1a35   :  { %v2459_v26 = vpop.f32.mrb[20].mxu1 }
0x1a36   :  { %v2460_v32 = vadd.f32 %v2459_v26, %v6386_v41  ;;  %v2461_v9 = vpop.f32.mrb[21].mxu1 }
0x1a37   :  { %v2462_v48 = vadd.f32 %v2461_v9, %v6607_v30 }
0x1a38   :  { %v2464_v43 = vadd.f32 %v2460_v32, %v6579_v31 }
0x1a3a   :  { %v4907_v6 = vmul.f32 -1.442695, %v2464_v43  ;;  %v2711_v43 = vld [vmem:[#allocation2 + $0x8] sm:$0xff] }
0x1a3c   :  { %5620 = vpow2.f32 %v4907_v6  ;;  %v2713_v6 = vld [vmem:[#allocation2 + $0x18] sm:$0xff] }
0x1a46   :  { %v5621_v34 = vpop.eup %5620 }
0x1a47   :  { %v2468_v46 = vadd.f32 1.0, %v5621_v34  ;;  %v2710_v34 = vld [vmem:[#allocation2] sm:$0xff] }
0x1a49   :  { %5622 = vrcp.f32 %v2468_v46  ;;  %v5260_v46 = vpack.c.bf16 %v2713_v6, %v2711_v43  ;;  %v2736_v43 = vld [vmem:[#allocation5 + $0x50] sm:$0xff]  ;;  %v2739_v6 = vld [vmem:[#allocation5 + $0x68] sm:$0xff] }
0x1a4b   :  { %5261 = vmatprep.subr.bf16.mxu0 %v5260_v46  ;;  %v2741_v46 = vld [vmem:[#allocation5 + $0x78] sm:$0xff] }
0x1a53   :  { %v5623_v54 = vpop.eup %5622 }
0x1a54   :  { %v2471_v4 = vmul.f32 %v5623_v54, %v2462_v48  ;;  %v2474_v23 = vsub.f32 1.0, %v5623_v54  ;;  %v2480_v25 = vmul.f32 %v5623_v54, %v2383_v53  ;;  %v2715_v48 = vld [vmem:[#allocation2 + $0x28] sm:$0xff]  ;;  %v2717_v54 = vld [vmem:[#allocation2 + $0x38] sm:$0xff] }
0x1a56   :  { %v2472_v59 = vadd.f32 %v2471_v4, %v6571_v49  ;;  %v5264_v4 = vpack.c.bf16 %v2717_v54, %v2715_v48  ;;  %v2740_v48 = vld [vmem:[#allocation5 + $0x70] sm:$0xff]  ;;  %v6880_v54 = vpack.c.bf16 %v2741_v46, %v2739_v6 }
0x1a58   :  { %5624 = vtanh.f32 %v2472_v59  ;;  %v2714_v59 = vld [vmem:[#allocation2 + $0x20] sm:$0xff] }
0x1a62   :  { %v5625_v61 = vpop.eup %5624 }
0x1a63   :  { %2476 = vrot.lane.b32.xlu0 %v5625_v61, %s5808_s8  ;;  %v2716_v61 = vld [vmem:[#allocation2 + $0x30] sm:$0xff] }
0x1ad5   :  { %v2477_v38 = vpop.permute.xlu0 %2476 }
0x1ad6   :  { %v2479_v18 = vmul.f32 %v2477_v38, %v2474_v23  ;;  %v2719_v23 = vld [vmem:[#allocation2 + $0x48] sm:$0xff]  ;;  %v2721_v38 = vld [vmem:[#allocation2 + $0x58] sm:$0xff] }
0x1ad8   :  { %v2481_v31 = vadd.f32 %v2480_v25, %v2479_v18  ;;  %v5268_v25 = vpack.c.bf16 %v2721_v38, %v2719_v23  ;;  %v2718_v18 = vld [vmem:[#allocation2 + $0x40] sm:$0xff] }
0x1ada   :  { %2487 = vrot.lane.b32.xlu1 %v2481_v31, %s5808_s8 }
0x1b4c   :  { %v6840_v40 = vpop.permute.xlu1 %2487 }
0x1b4d   :  { %4908 = vmatmul.mubr.msk.f32.vlgmr.msra.gmra.mrb[16].mxu0 %vm1085_vm4, %v6840_v40 }
0x1b4e   :  { %2938 = vmatprep.mubr.f32.mxu0 %v5805_v17 }
0x1c20   :  { %v2557_v35 = vpop.f32.mrb[16].mxu0 }
0x1c21   :  { %v2558_v49 = vadd.f32 %v2557_v35, %v6386_v41  ;;  %v2559_v52 = vpop.f32.mrb[17].mxu0  ;;  %v2723_v35 = vld [vmem:[#allocation2 + $0x68] sm:$0xff] }
0x1c22   :  { %v2560_v3 = vadd.f32 %v2559_v52, %v6607_v30  ;;  %v2725_v52 = vld [vmem:[#allocation2 + $0x78] sm:$0xff] }
0x1c23   :  { %v2562_v42 = vadd.f32 %v2558_v49, %v6597_v62 }
0x1c25   :  { %v4909_v16 = vmul.f32 -1.442695, %v2562_v42  ;;  %v2722_v42 = vld [vmem:[#allocation2 + $0x60] sm:$0xff] }
0x1c27   :  { %5626 = vpow2.f32 %v4909_v16  ;;  %v2724_v16 = vld [vmem:[#allocation2 + $0x70] sm:$0xff] }
0x1c31   :  { %v5627_v11 = vpop.eup %5626 }
0x1c32   :  { %v2566_v37 = vadd.f32 1.0, %v5627_v11 }
0x1c34   :  { %5628 = vrcp.f32 %v2566_v37  ;;  %v5272_v37 = vpack.c.bf16 %v2725_v52, %v2723_v35 }
0x1c3e   :  { %v5629_v33 = vpop.eup %5628 }
0x1c3f   :  { %v2569_v56 = vmul.f32 %v5629_v33, %v2560_v3  ;;  %v2572_v44 = vsub.f32 1.0, %v5629_v33  ;;  %v2578_v5 = vmul.f32 %v5629_v33, %v2481_v31  ;;  %v2720_v31 = vld [vmem:[#allocation2 + $0x50] sm:$0xff]  ;;  %v5274_v33 = vpack.c.bf16 %v2724_v16, %v2722_v42 }
0x1c40   :  { %v5270_v49 = vpack.c.bf16 %v2720_v31, %v2718_v18 }
0x1c41   :  { %v2570_v58 = vadd.f32 %v2569_v56, %v6585_v45  ;;  %v2727_v56 = vld [vmem:[#allocation5 + $0x8] sm:$0xff] }
0x1c43   :  { %5630 = vtanh.f32 %v2570_v58  ;;  %v2729_v58 = vld [vmem:[#allocation5 + $0x18] sm:$0xff] }
0x1c4d   :  { %v5631_v15 = vpop.eup %5630 }
0x1c4e   :  { %2574 = vrot.lane.b32.xlu0 %v5631_v15, %s5808_s8 }
0x1cc0   :  { %v2575_v7 = vpop.permute.xlu0 %2574 }
0x1cc1   :  { %v2577_v12 = vmul.f32 %v2575_v7, %v2572_v44  ;;  %v6861_v7 = vpack.c.bf16 %v2729_v58, %v2727_v56 }
0x1cc3   :  { %v2579_v62 = vadd.f32 %v2578_v5, %v2577_v12  ;;  %5277 = vmatprep.subr.bf16.mxu1 %v6861_v7  ;;  %v2726_v12 = vld [vmem:[#allocation5] sm:$0xff] }
0x1cc5   :  { %2585 = vrot.lane.b32.xlu1 %v2579_v62, %s5808_s8 }
0x1d37   :  { %v6851_v28 = vpop.permute.xlu1 %2585 }
0x1d38   :  { %4910 = vmatmul.mubr.msk.f32.vlgmr.msra.gmra.mrb[22].mxu1 %vm1085_vm4, %v6851_v28 }
0x1d39   :  { %3154 = vmatprep.mubr.f32.mxu1 %v5805_v17 }
0x1e0b   :  { %v2655_v47 = vpop.f32.mrb[22].mxu1 }
0x1e0c   :  { %v2656_v45 = vadd.f32 %v2655_v47, %v6386_v41  ;;  %v2657_v51 = vpop.f32.mrb[23].mxu1  ;;  %v2712_v41 = vld [vmem:[#allocation2 + $0x10] sm:$0xff] }
0x1e0d   :  { %v2658_v53 = vadd.f32 %v2657_v51, %v6607_v30  ;;  %v5266_v30 = vpack.c.bf16 %v2716_v61, %v2714_v59  ;;  %v2728_v47 = vld [vmem:[#allocation5 + $0x10] sm:$0xff]  ;;  %v2731_v51 = vld [vmem:[#allocation5 + $0x28] sm:$0xff]  ;;  %v2695_v59 = vsel %vm1083_vm3, %v6689_v1, %v6804_v57  ;;  %v2692_v61 = vsel %vm1083_vm3, %v6670_v27, %v6822_v10 }
0x1e0e   :  { %v2660_v39 = vadd.f32 %v2656_v45, %v6603_v24  ;;  %v5262_v24 = vpack.c.bf16 %v2712_v41, %v2710_v34  ;;  %v6864_v45 = vpack.c.bf16 %v2728_v47, %v2726_v12  ;;  %v2738_v41 = vld [vmem:[#allocation5 + $0x60] sm:$0xff] }
0x1e10   :  { %v4911_v0 = vmul.f32 -1.442695, %v2660_v39  ;;  %5263 = vmatpush1.bf16.msra.mxu0 %v5262_v24  ;;  %v2733_v39 = vld [vmem:[#allocation5 + $0x38] sm:$0xff]  ;;  %5279 = vmatpush1.bf16.msra.mxu1 %v6864_v45  ;;  %v6883_v24 = vpack.c.bf16 %v2740_v48, %v2738_v41 }
0x1e11   :  { %5265 = vmatprep.subr.bf16.mxu0 %v5264_v4  ;;  %v2689_v4 = vsel %vm1083_vm3, %v6651_v8, %v6840_v40 }
0x1e12   :  { %5632 = vpow2.f32 %v4911_v0  ;;  %v6867_v0 = vpack.c.bf16 %v2733_v39, %v2731_v51  ;;  %v2777_v23 = vcombine.low %v2689_v4, %v2692_v61 }
0x1e14   :  { %5267 = vmatpush1.bf16.msra.mxu0 %v5266_v30  ;;  %5281 = vmatprep.subr.bf16.mxu1 %v6867_v0  ;;  %v2701_v30 = vsel %vm1083_vm3, %v6727_v22, %v6766_v55  ;;  %v2791_v42 = vrot.slane %v2777_v23, %v6148_v29 }
0x1e15   :  { %5269 = vmatprep.subr.bf16.mxu0 %v5268_v25  ;;  %v2698_v25 = vsel %vm1083_vm3, %v6708_v14, %v6785_v19  ;;  %v2794_v52 = vcombine.low %v2701_v30, %v6747_v36 }
0x1e16   :  { %v2793_v31 = vcombine.low %v2695_v59, %v2698_v25  ;;  %v6982_v25 = vld [vmem:[%s7582_s12] sm:$0x3] }
0x1e17   :  { %v2808_v36 = vrot.slane %v2794_v52, %v6148_v29 }
0x1e18   :  { %5271 = vmatpush1.bf16.msra.mxu0 %v5270_v49  ;;  %v2706_v49 = vsel %vm1083_vm3, %v6822_v10, %v6670_v27  ;;  %v2703_v27 = vsel %vm1083_vm3, %v6766_v55, %v6727_v22  ;;  %v2707_v22 = vsel %vm1083_vm3, %v6840_v40, %v6651_v8 }
0x1e19   :  { %5273 = vmatprep.subr.bf16.mxu0 %v5272_v37  ;;  %v2705_v37 = vsel %vm1083_vm3, %v6804_v57, %v6689_v1 }
0x1e1c   :  { %v5633_v50 = vpop.eup %5632  ;;  %5275 = vmatpush1.bf16.msra.mxu0 %v5274_v33  ;;  %v2811_v33 = vcombine.low %v2705_v37, %v2706_v49 }
0x1e1d   :  { %v2664_v60 = vadd.f32 1.0, %v5633_v50  ;;  %5293 = vmatprep.subr.bf16.mxu0 %v6861_v7  ;;  %v2732_v50 = vld [vmem:[#allocation5 + $0x30] sm:$0xff] }
0x1e1e   :  { %v2825_v1 = vrot.slane %v2811_v33, %v6148_v29 }
0x1e1f   :  { %5634 = vrcp.f32 %v2664_v60 }
0x1e29   :  { %v5635_v26 = vpop.eup %5634 }
0x1e2a   :  { %v2667_v32 = vmul.f32 %v5635_v26, %v2658_v53  ;;  %v2670_v11 = vsub.f32 1.0, %v5635_v26  ;;  %v2676_v15 = vmul.f32 %v5635_v26, %v2579_v62  ;;  %v2730_v62 = vld [vmem:[#allocation5 + $0x20] sm:$0xff]  ;;  %v2735_v53 = vld [vmem:[#allocation5 + $0x48] sm:$0xff]  ;;  %v2737_v26 = vld [vmem:[#allocation5 + $0x58] sm:$0xff] }
0x1e2b   :  { %v6872_v60 = vpack.c.bf16 %v2732_v50, %v2730_v62 }
0x1e2c   :  { %v2668_v9 = vadd.f32 %v2667_v32, %v6593_v63  ;;  %v6874_v32 = vpack.c.bf16 %v2737_v26, %v2735_v53 }
0x1e2d   :  { %5283 = vmatpush1.bf16.msra.mxu1 %v6872_v60 }
0x1e2e   :  { %5636 = vtanh.f32 %v2668_v9  ;;  %5285 = vmatprep.subr.bf16.mxu1 %v6874_v32  ;;  %v2734_v9 = vld [vmem:[#allocation5 + $0x40] sm:$0xff] }
0x1e2f   :  { %v6878_v34 = vpack.c.bf16 %v2736_v43, %v2734_v9 }
0x1e31   :  { %5287 = vmatpush1.bf16.msra.mxu1 %v6878_v34 }
0x1e32   :  { %5289 = vmatprep.subr.bf16.mxu1 %v6880_v54 }
0x1e35   :  { %5291 = vmatpush1.bf16.msra.mxu1 %v6883_v24 }
0x1e36   :  { %5309 = vmatprep.subr.bf16.mxu1 %v6861_v7 }
0x1e38   :  { %v5637_v63 = vpop.eup %5636  ;;  %3155 = vmatmul.mubr.f32.vlgmr.msra.gmra.mrb[24].mxu1 %v5805_v17 }
0x1e39   :  { %2672 = vrot.lane.b32.xlu0 %v5637_v63, %s5808_s8  ;;  %5311 = vmatpush1.bf16.msra.mxu1 %v6864_v45  ;;  %v2686_v63 = vsel %vm1083_vm3, %v6632_v13, %v6851_v28 }
0x1e3a   :  { %3386 = vmatprep.mubr.f32.mxu1 %v5805_v17  ;;  %5313 = vmatprep.subr.bf16.mxu1 %v6867_v0 }
0x1e3d   :  { %5315 = vmatpush1.bf16.msra.mxu1 %v6872_v60 }
0x1e3e   :  { %5317 = vmatprep.subr.bf16.mxu1 %v6874_v32 }
0x1e41   :  { %5319 = vmatpush1.bf16.msra.mxu1 %v6878_v34 }
0x1e42   :  { %5321 = vmatprep.subr.bf16.mxu1 %v6880_v54 }
0x1e45   :  { %5323 = vmatpush1.bf16.msra.mxu1 %v6883_v24 }
0x1e46   :  { %5341 = vmatprep.subr.bf16.mxu1 %v6861_v7 }
0x1eab   :  { %v2673_v3 = vpop.permute.xlu0 %2672 }
0x1eac   :  { %v2675_v44 = vmul.f32 %v2673_v3, %v2670_v11  ;;  %v2704_v11 = vsel %vm1083_vm3, %v6785_v19, %v6708_v14  ;;  %v2801_v3 = vrot.slane %v2793_v31, %v6148_v29  ;;  %v2708_v14 = vsel %vm1083_vm3, %v6851_v28, %v6632_v13 }
0x1ead   :  { %v2810_v10 = vcombine.low %v2703_v27, %v2704_v11  ;;  %v2827_v58 = vcombine.low %v2707_v22, %v2708_v14 }
0x1eae   :  { %v2677_v5 = vadd.f32 %v2676_v15, %v2675_v44  ;;  %v2809_v19 = vcombine.low %v2801_v3, %v2808_v36  ;;  %v2742_v44 = vld [vmem:[%s7581_s11] sm:$0x3] }
0x1eaf   :  { %v2818_v57 = vrot.slane %v2810_v10, %v6148_v29  ;;  %v2834_v15 = vrot.slane %v2827_v58, %v6148_v29  ;;  %v2752_v12 = vrot.slane %v2742_v44, %v5980_v20 }
0x1eb0   :  { %2680 = vrot.lane.b32.xlu1 %v2677_v5, %s5808_s8  ;;  %v2748_v5 = vrot.slane %v2742_v44, %v5983_v21 }
0x1eb1   :  { %v2826_v28 = vcombine.low %v2818_v57, %v2825_v1 }
0x1eb2   :  { %v2753_v47 = vcombine.low %v2748_v5, %v2752_v12 }
0x1eb4   :  { %v2760_v51 = vrot.slane %v2753_v47, %v6148_v29 }
0x1eb6   :  { %v2843_v39 = vcombine.low %v2760_v51, %v2760_v51  ;;  %v2859_v4 = vrot.slane %v2760_v51, %v6148_v29 }
0x1eb8   :  { %v2850_v62 = vrot.slane %v2843_v39, %v6148_v29 }
0x1eba   :  { %v2851_v50 = vcombine.low %v2850_v62, %v2850_v62  ;;  %v2852_v53 = vcombine.high %v2850_v62, %v2850_v62 }
0x1f0b   :  { %v3156_v8 = vpop.f32.mrb[24].mxu1 }
0x1f0c   :  { %v6963_v40 = vpop.f32.mrb[25].mxu1 }
0x1f22   :  { %v2681_v38 = vpop.permute.xlu1 %2680 }
0x1f23   :  { %v2683_v18 = vsel %vm1083_vm3, %v6613_v2, %v2681_v38  ;;  %v2709_v55 = vsel %vm1083_vm3, %v2681_v38, %v6613_v2 }
0x1f24   :  { %v2776_v35 = vcombine.low %v2683_v18, %v2686_v63  ;;  %v2841_v13 = vrot.slane %v2709_v55, %v6148_v29 }
0x1f26   :  { %v2784_v16 = vrot.slane %v2776_v35, %v6148_v29  ;;  %v2842_v2 = vcombine.low %v2834_v15, %v2841_v13  ;;  %v2860_v35 = vcombine.low %v2850_v62, %v2859_v4 }
0x1f28   :  { %v2792_v56 = vcombine.low %v2784_v16, %v2791_v42  ;;  %v6990_v16 = vrot.slane %v6982_v25, %v5983_v21 }
0x1f2a   :  { %4912 = vmatmul.mubr.msk.f32.vlgmr.msra.gmra.mrb[18].mxu0 %vm1085_vm4, %v2792_v56  ;;  %v2861_v56 = vcombine.high %v2850_v62, %v2859_v4  ;;  %v3157_v58 = vadd.f32 %v3156_v8, %v6990_v16 }
0x1f2b   :  { %2944 = vmatprep.mubr.f32.mxu0 %v5805_v17  ;;  %5295 = vmatpush1.bf16.msra.mxu0 %v6864_v45 }
0x1f2c   :  { %5297 = vmatprep.subr.bf16.mxu0 %v6867_v0 }
0x1f2e   :  { %4913 = vmatmul.mubr.msk.f32.gmra.mrb[20].mxu0 %vm1085_vm4, %v2809_v19 }
0x1f2f   :  { %2950 = vmatprep.mubr.f32.mxu0 %v5805_v17  ;;  %5299 = vmatpush1.bf16.msra.mxu0 %v6872_v60 }
0x1f30   :  { %5301 = vmatprep.subr.bf16.mxu0 %v6874_v32 }
0x1f32   :  { %4914 = vmatmul.mubr.msk.f32.gmra.mrb[22].mxu0 %vm1085_vm4, %v2826_v28 }
0x1f33   :  { %2956 = vmatprep.mubr.f32.mxu0 %v5805_v17  ;;  %5303 = vmatpush1.bf16.msra.mxu0 %v6878_v34 }
0x1f34   :  { %5305 = vmatprep.subr.bf16.mxu0 %v6880_v54 }
0x1f36   :  { %4915 = vmatmul.mubr.msk.f32.gmra.mrb[24].mxu0 %vm1085_vm4, %v2842_v2 }
0x1f37   :  { %5307 = vmatpush1.bf16.msra.mxu0 %v6883_v24  ;;  %3270 = vmatprep.mubr.f32.mxu0 %v5805_v17 }
0x1f38   :  { %5325 = vmatprep.subr.bf16.mxu0 %v6861_v7 }
0x1ffd   :  { %v2940_v26 = vpop.f32.mrb[18].mxu0 }
0x1ffe   :  { %v2941_v9 = vadd.f32 %v2940_v26, %v2851_v50  ;;  %v2942_v43 = vpop.f32.mrb[19].mxu0 }
0x1fff   :  { %v2943_v6 = vadd.f32 %v2942_v43, %v2852_v53 }
0x2001   :  { %v2971_v46 = vcombine.low %v2941_v9, %v2943_v6  ;;  %v2972_v41 = vcombine.high %v2941_v9, %v2943_v6  ;;  %v2946_v48 = vpop.f32.mrb[20].mxu0 }
0x2002   :  { %v2947_v59 = vadd.f32 %v2946_v48, %v2851_v50  ;;  %v2948_v61 = vpop.f32.mrb[21].mxu0 }
0x2003   :  { %v6974_v23 = vrot.slane %v2971_v46, %v6148_v29  ;;  %v6977_v38 = vrot.slane %v2972_v41, %v6148_v29  ;;  %v2949_v30 = vadd.f32 %v2948_v61, %v2852_v53 }
0x2005   :  { %v2989_v63 = vcombine.low %v2947_v59, %v2949_v30  ;;  %v2990_v18 = vcombine.high %v2947_v59, %v2949_v30  ;;  %v2952_v31 = vpop.f32.mrb[22].mxu0  ;;  %v6986_v49 = vcombine.high %v6974_v23, %v6974_v23  ;;  %v3063_v11 = vrot.slane %v6974_v23, %v6148_v29 }
0x2006   :  { %v2953_v52 = vadd.f32 %v2952_v31, %v2851_v50  ;;  %v2954_v42 = vpop.f32.mrb[23].mxu0  ;;  %v6996_v37 = vcombine.high %v6977_v38, %v6977_v38  ;;  %v3301_v27 = vrot.slane %v6977_v38, %v6148_v29 }
0x2007   :  { %v6999_v3 = vrot.slane %v2989_v63, %v6148_v29  ;;  %v2955_v33 = vadd.f32 %v2954_v42, %v2852_v53  ;;  %v7004_v36 = vrot.slane %v2990_v18, %v6148_v29  ;;  %v3185_v21 = vrot.slane %v6986_v49, %v6148_v29 }
0x2008   :  { %v3417_v10 = vrot.slane %v6996_v37, %v6148_v29  ;;  %v7013_v13 = vcombine.high %v3063_v11, %v3063_v11  ;;  %v7025_v5 = vcombine.high %v3301_v27, %v3301_v27 }
0x2009   :  { %v3007_v14 = vcombine.low %v2953_v52, %v2955_v33  ;;  %v3008_v1 = vcombine.high %v2953_v52, %v2955_v33  ;;  %v2958_v19 = vpop.f32.mrb[24].mxu0  ;;  %v3533_v22 = vrot.slane %v6999_v3, %v6148_v29  ;;  %v7017_v28 = vcombine.high %v6999_v3, %v6999_v3 }
0x200a   :  { %v2959_v55 = vadd.f32 %v2958_v19, %v2860_v35  ;;  %v2960_v57 = vpop.f32.mrb[25].mxu0  ;;  %v7027_v12 = vcombine.high %v3185_v21, %v3185_v21  ;;  %v7029_v47 = vcombine.high %v3417_v10, %v3417_v10  ;;  %v3765_v51 = vrot.slane %v7004_v36, %v6148_v29 }
0x200b   :  { %v7020_v15 = vrot.slane %v3007_v14, %v6148_v29  ;;  %v7023_v2 = vrot.slane %v3008_v1, %v6148_v29  ;;  %v2961_v44 = vadd.f32 %v2960_v57, %v2861_v56  ;;  %v7031_v8 = vcombine.high %v3533_v22, %v3533_v22 }
0x200c   :  { %v3649_v6 = vrot.slane %v7017_v28, %v6148_v29 }
0x200d   :  { %v3025_v39 = vcombine.low %v2959_v55, %v2961_v44  ;;  %v3026_v62 = vcombine.high %v2959_v55, %v2961_v44  ;;  %v7037_v50 = vcombine.high %v7023_v2, %v7023_v2  ;;  %v3545_v53 = vsel %vm1083_vm3, %v6999_v3, %v7023_v2 }
0x200e   :  { %v3546_v26 = vsel %vm1085_vm4, %v3545_v53, %v6999_v3  ;;  %v3542_v9 = vrot.slane %v7023_v2, %v6148_v29  ;;  %v3023_v43 = vcombine.high %v7020_v15, %v7020_v15 }
0x200f   :  { %v7051_v46 = vrot.slane %v3025_v39, %v6148_v29  ;;  %v7054_v41 = vrot.slane %v3026_v62, %v6148_v29  ;;  %v3429_v48 = vsel %vm1083_vm3, %v6996_v37, %v7037_v50  ;;  %v3426_v4 = vrot.slane %v7037_v50, %v6148_v29 }
0x2010   :  { %v3430_v59 = vsel %vm1085_vm4, %v3429_v48, %v6996_v37  ;;  %v7065_v61 = vsel %vm1087_vm5, %v3546_v26, %v7023_v2  ;;  %v3543_v30 = vcombine.high %v3542_v9, %v3542_v9  ;;  %v3661_v63 = vsel %vm1083_vm3, %v7017_v28, %v3023_v43 }
0x2011   :  { %v3075_v18 = vsel %vm1083_vm3, %v6974_v23, %v7054_v41  ;;  %v3072_v31 = vrot.slane %v7054_v41, %v6148_v29  ;;  %v3041_v35 = vcombine.high %v7051_v46, %v7051_v46  ;;  %v3313_v52 = vsel %vm1083_vm3, %v6977_v38, %v7051_v46 }
0x2012   :  { %v3076_v42 = vsel %vm1085_vm4, %v3075_v18, %v6974_v23  ;;  %v3314_v11 = vsel %vm1085_vm4, %v3313_v52, %v6977_v38  ;;  %v3310_v33 = vrot.slane %v7051_v46, %v6148_v29  ;;  %v7087_v56 = vsel %vm1087_vm5, %v3430_v59, %v7037_v50 }
0x2013   :  { %v3077_v27 = vsel %vm1087_vm5, %v3076_v42, %v7054_v41  ;;  %v3073_v21 = vcombine.high %v3072_v31, %v3072_v31  ;;  %v3197_v10 = vsel %vm1083_vm3, %v6986_v49, %v3041_v35  ;;  %v3194_v14 = vrot.slane %v3041_v35, %v6148_v29 }
0x2014   :  { %v3161_v1 = vadd.f32 %v3157_v58, %v3077_v27  ;;  %v3198_v19 = vsel %vm1085_vm4, %v3197_v10, %v6986_v49  ;;  %v7098_v22 = vsel %vm1087_vm5, %v3314_v11, %v7051_v46  ;;  %v3311_v55 = vcombine.high %v3310_v33, %v3310_v33 }
0x2015   :  { %v3078_v57 = vsel %vm1083_vm3, %v7013_v13, %v3073_v21  ;;  %v7103_v44 = vsel %vm1087_vm5, %v3198_v19, %v3041_v35  ;;  %v3195_v39 = vcombine.high %v3194_v14, %v3194_v14  ;;  %v3427_v62 = vcombine.high %v3426_v4, %v3426_v4 }
0x2016   :  { %v4916_v53 = vmul.f32 -1.442695, %v3161_v1  ;;  %v7107_v58 = vsel %vm1083_vm3, %v7025_v5, %v3311_v55  ;;  %v7111_v26 = vsel %vm1083_vm3, %v7031_v8, %v3543_v30  ;;  %v3662_v9 = vsel %vm1085_vm4, %v3661_v63, %v7017_v28 }
0x2017   :  { %v7117_v48 = vsel %vm1083_vm3, %v7027_v12, %v3195_v39  ;;  %v7121_v59 = vsel %vm1083_vm3, %v7029_v47, %v3427_v62  ;;  %v7124_v4 = vsel %vm1087_vm5, %v3662_v9, %v3023_v43  ;;  %v3658_v18 = vrot.slane %v3023_v43, %v6148_v29 }
0x2018   :  { %5638 = vpow2.f32 %v4916_v53  ;;  %v3650_v31 = vcombine.high %v3649_v6, %v3649_v6  ;;  %v3777_v52 = vsel %vm1083_vm3, %v7004_v36, %v7020_v15  ;;  %v3774_v63 = vrot.slane %v7020_v15, %v6148_v29 }
0x2019   :  { %v3659_v42 = vcombine.high %v3658_v18, %v3658_v18  ;;  %v3778_v11 = vsel %vm1085_vm4, %v3777_v52, %v7004_v36  ;;  %v3979_v33 = vsel %vm1083_vm3, %v7020_v15, %v7004_v36  ;;  %v4077_v27 = vsel %vm1083_vm3, %v3023_v43, %v7017_v28 }
0x201a   :  { %v7141_v6 = vsel %vm1087_vm5, %v3778_v11, %v7020_v15  ;;  %v3766_v10 = vcombine.high %v3765_v51, %v3765_v51  ;;  %v3775_v14 = vcombine.high %v3774_v63, %v3774_v63  ;;  %v3980_v1 = vsel %vm1085_vm4, %v3979_v33, %v7020_v15 }
0x201b   :  { %v7146_v19 = vsel %vm1083_vm3, %v3650_v31, %v3659_v42  ;;  %v7150_v53 = vsel %vm1087_vm5, %v3980_v1, %v7004_v36  ;;  %v4078_v9 = vsel %vm1085_vm4, %v4077_v27, %v3023_v43  ;;  %v7154_v18 = vsel %vm1083_vm3, %v3659_v42, %v3650_v31 }
0x201c   :  { %v7157_v52 = vsel %vm1083_vm3, %v3766_v10, %v3775_v14  ;;  %v7160_v51 = vsel %vm1083_vm3, %v3775_v14, %v3766_v10  ;;  %v7164_v15 = vsel %vm1087_vm5, %v4078_v9, %v7017_v28  ;;  %v4175_v63 = vsel %vm1083_vm3, %v7023_v2, %v6999_v3 }
0x201d   :  { %v4176_v43 = vsel %vm1085_vm4, %v4175_v63, %v7023_v2  ;;  %v7173_v31 = vsel %vm1083_vm3, %v3543_v30, %v7031_v8  ;;  %v4273_v42 = vsel %vm1083_vm3, %v7037_v50, %v6996_v37  ;;  %v7180_v11 = vsel %vm1083_vm3, %v3427_v62, %v7029_v47 }
0x201e   :  { %v7184_v28 = vsel %vm1087_vm5, %v4176_v43, %v6999_v3  ;;  %v4274_v33 = vsel %vm1085_vm4, %v4273_v42, %v7037_v50  ;;  %v4371_v2 = vsel %vm1083_vm3, %v7051_v46, %v6977_v38  ;;  %v7193_v8 = vsel %vm1083_vm3, %v3311_v55, %v7025_v5 }
0x201f   :  { %v7197_v30 = vsel %vm1087_vm5, %v4274_v33, %v6996_v37  ;;  %v4372_v47 = vsel %vm1085_vm4, %v4371_v2, %v7051_v46  ;;  %v4469_v3 = vsel %vm1083_vm3, %v3041_v35, %v6986_v49  ;;  %v7205_v50 = vsel %vm1083_vm3, %v3195_v39, %v7027_v12 }
0x2020   :  { %v7209_v62 = vsel %vm1087_vm5, %v4372_v47, %v6977_v38  ;;  %v4470_v5 = vsel %vm1085_vm4, %v4469_v3, %v3041_v35  ;;  %v4567_v37 = vsel %vm1083_vm3, %v7054_v41, %v6974_v23  ;;  %v7217_v46 = vsel %vm1083_vm3, %v3073_v21, %v7013_v13 }
0x2021   :  { %v7221_v55 = vsel %vm1087_vm5, %v4470_v5, %v6986_v49  ;;  %v4568_v12 = vsel %vm1085_vm4, %v4567_v37, %v7054_v41  ;;  %v7231_v27 = vrot.slane %v6982_v25, %v5980_v20 }
0x2022   :  { %v5639_v39 = vpop.eup %5638  ;;  %v7227_v38 = vsel %vm1087_vm5, %v4568_v12, %v6974_v23 }
0x2023   :  { %v3165_v35 = vadd.f32 1.0, %v5639_v39  ;;  %v3159_v13 = vadd.f32 %v6963_v40, %v7231_v27 }
0x2025   :  { %5640 = vrcp.f32 %v3165_v35 }
0x202f   :  { %v5641_v21 = vpop.eup %5640 }
0x2030   :  { %v3168_v49 = vmul.f32 %v5641_v21, %v3159_v13  ;;  %v3171_v41 = vsub.f32 1.0, %v5641_v21  ;;  %v3177_v23 = vmul.f32 0.0, %v5641_v21 }
0x2032   :  { %v3169_v10 = vadd.f32 %v3168_v49, %v3078_v57 }
0x2034   :  { %5642 = vtanh.f32 %v3169_v10 }
0x203e   :  { %v5643_v14 = vpop.eup %5642 }
0x203f   :  { %3173 = vrot.lane.b32.xlu0 %v5643_v14, %s5808_s8 }
0x20b1   :  { %v3174_v1 = vpop.permute.xlu0 %3173 }
0x20b2   :  { %v3176_v9 = vmul.f32 %v3174_v1, %v3171_v41 }
0x20b4   :  { %v7236_v63 = vadd.f32 %v3177_v23, %v3176_v9 }
0x20b6   :  { %3202 = vrot.lane.b32.xlu1 %v7236_v63, %s5808_s8 }
0x2128   :  { %v3203_v20 = vpop.permute.xlu1 %3202 }
0x2129   :  { %4917 = vmatmul.mubr.msk.f32.vlgmr.msra.gmra.mrb[26].mxu0 %vm1085_vm4, %v3203_v20 }
0x212a   :  { %5327 = vmatpush1.bf16.msra.mxu0 %v6864_v45  ;;  %3502 = vmatprep.mubr.f32.mxu0 %v5805_v17 }
0x212b   :  { %5329 = vmatprep.subr.bf16.mxu0 %v6867_v0 }
0x212e   :  { %5331 = vmatpush1.bf16.msra.mxu0 %v6872_v60 }
0x212f   :  { %5333 = vmatprep.subr.bf16.mxu0 %v6874_v32 }
0x2132   :  { %5335 = vmatpush1.bf16.msra.mxu0 %v6878_v34 }
0x2133   :  { %5337 = vmatprep.subr.bf16.mxu0 %v6880_v54 }
0x2136   :  { %5339 = vmatpush1.bf16.msra.mxu0 %v6883_v24 }
0x2137   :  { %5357 = vmatprep.subr.bf16.mxu0 %v6861_v7 }
0x21fc   :  { %v3272_v40 = vpop.f32.mrb[26].mxu0 }
0x21fd   :  { %v3273_v25 = vadd.f32 %v3272_v40, %v6990_v16  ;;  %v3274_v57 = vpop.f32.mrb[27].mxu0 }
0x21fe   :  { %v3275_v47 = vadd.f32 %v3274_v57, %v7231_v27 }
0x21ff   :  { %v3277_v43 = vadd.f32 %v3273_v25, %v7103_v44 }
0x2201   :  { %v4918_v42 = vmul.f32 -1.442695, %v3277_v43 }
0x2203   :  { %5644 = vpow2.f32 %v4918_v42 }
0x220d   :  { %v5645_v33 = vpop.eup %5644 }
0x220e   :  { %v3281_v2 = vadd.f32 1.0, %v5645_v33 }
0x2210   :  { %5646 = vrcp.f32 %v3281_v2 }
0x221a   :  { %v5647_v3 = vpop.eup %5646 }
0x221b   :  { %v3284_v5 = vmul.f32 %v5647_v3, %v3275_v47  ;;  %v3287_v39 = vsub.f32 1.0, %v5647_v3  ;;  %v3293_v13 = vmul.f32 %v5647_v3, %v7236_v63 }
0x221d   :  { %v3285_v37 = vadd.f32 %v3284_v5, %v7117_v48 }
0x221f   :  { %5648 = vtanh.f32 %v3285_v37 }
0x2229   :  { %v5649_v12 = vpop.eup %5648 }
0x222a   :  { %3289 = vrot.lane.b32.xlu0 %v5649_v12, %s5808_s8 }
0x229c   :  { %v3290_v35 = vpop.permute.xlu0 %3289 }
0x229d   :  { %v3292_v44 = vmul.f32 %v3290_v35, %v3287_v39 }
0x229f   :  { %v7256_v21 = vadd.f32 %v3293_v13, %v3292_v44 }
0x22a1   :  { %3318 = vrot.lane.b32.xlu1 %v7256_v21, %s5808_s8 }
0x2313   :  { %v3319_v49 = vpop.permute.xlu1 %3318 }
0x2314   :  { %4919 = vmatmul.mubr.msk.f32.vlgmr.msra.gmra.mrb[26].mxu1 %vm1085_vm4, %v3319_v49 }
0x2315   :  { %5343 = vmatpush1.bf16.msra.mxu1 %v6864_v45  ;;  %3618 = vmatprep.mubr.f32.mxu1 %v5805_v17 }
0x2316   :  { %5345 = vmatprep.subr.bf16.mxu1 %v6867_v0 }
0x2319   :  { %5347 = vmatpush1.bf16.msra.mxu1 %v6872_v60 }
0x231a   :  { %5349 = vmatprep.subr.bf16.mxu1 %v6874_v32 }
0x231d   :  { %5351 = vmatpush1.bf16.msra.mxu1 %v6878_v34 }
0x231e   :  { %5353 = vmatprep.subr.bf16.mxu1 %v6880_v54 }
0x2321   :  { %5355 = vmatpush1.bf16.msra.mxu1 %v6883_v24 }
0x2322   :  { %5373 = vmatprep.subr.bf16.mxu1 %v6861_v7 }
0x23e7   :  { %v3388_v48 = vpop.f32.mrb[26].mxu1 }
0x23e8   :  { %v3389_v10 = vadd.f32 %v3388_v48, %v6990_v16  ;;  %v3390_v14 = vpop.f32.mrb[27].mxu1 }
0x23e9   :  { %v3391_v20 = vadd.f32 %v3390_v14, %v7231_v27 }
0x23ea   :  { %v3393_v41 = vadd.f32 %v3389_v10, %v7098_v22 }
0x23ec   :  { %v4920_v1 = vmul.f32 -1.442695, %v3393_v41 }
0x23ee   :  { %5650 = vpow2.f32 %v4920_v1 }
0x23f8   :  { %v5651_v23 = vpop.eup %5650 }
0x23f9   :  { %v3397_v9 = vadd.f32 1.0, %v5651_v23 }
0x23fb   :  { %5652 = vrcp.f32 %v3397_v9 }
0x2405   :  { %v5653_v40 = vpop.eup %5652 }
0x2406   :  { %v3400_v25 = vmul.f32 %v5653_v40, %v3391_v20  ;;  %v3403_v42 = vsub.f32 1.0, %v5653_v40  ;;  %v3409_v2 = vmul.f32 %v5653_v40, %v7256_v21 }
0x2408   :  { %v3401_v57 = vadd.f32 %v3400_v25, %v7107_v58 }
0x240a   :  { %5654 = vtanh.f32 %v3401_v57 }
0x2414   :  { %v5655_v43 = vpop.eup %5654 }
0x2415   :  { %3405 = vrot.lane.b32.xlu0 %v5655_v43, %s5808_s8 }
0x2487   :  { %v3406_v33 = vpop.permute.xlu0 %3405 }
0x2488   :  { %v3408_v22 = vmul.f32 %v3406_v33, %v3403_v42 }
0x248a   :  { %v7276_v47 = vadd.f32 %v3409_v2, %v3408_v22 }
0x248c   :  { %3434 = vrot.lane.b32.xlu1 %v7276_v47, %s5808_s8 }
0x24fe   :  { %v3435_v3 = vpop.permute.xlu1 %3434 }
0x24ff   :  { %4921 = vmatmul.mubr.msk.f32.vlgmr.msra.gmra.mrb[28].mxu0 %vm1085_vm4, %v3435_v3 }
0x2500   :  { %5359 = vmatpush1.bf16.msra.mxu0 %v6864_v45  ;;  %3734 = vmatprep.mubr.f32.mxu0 %v5805_v17 }
0x2501   :  { %5361 = vmatprep.subr.bf16.mxu0 %v6867_v0 }
0x2504   :  { %5363 = vmatpush1.bf16.msra.mxu0 %v6872_v60 }
0x2505   :  { %5365 = vmatprep.subr.bf16.mxu0 %v6874_v32 }
0x2508   :  { %5367 = vmatpush1.bf16.msra.mxu0 %v6878_v34 }
0x2509   :  { %5369 = vmatprep.subr.bf16.mxu0 %v6880_v54 }
0x250c   :  { %5371 = vmatpush1.bf16.msra.mxu0 %v6883_v24 }
0x250d   :  { %5389 = vmatprep.subr.bf16.mxu0 %v6861_v7 }
0x25d2   :  { %v3504_v58 = vpop.f32.mrb[28].mxu0 }
0x25d3   :  { %v3505_v5 = vadd.f32 %v3504_v58, %v6990_v16  ;;  %v3506_v37 = vpop.f32.mrb[29].mxu0 }
0x25d4   :  { %v3507_v44 = vadd.f32 %v3506_v37, %v7231_v27 }
0x25d5   :  { %v3509_v12 = vadd.f32 %v3505_v5, %v7087_v56 }
0x25d7   :  { %v4922_v39 = vmul.f32 -1.442695, %v3509_v12 }
0x25d9   :  { %5656 = vpow2.f32 %v4922_v39 }
0x25e3   :  { %v5657_v35 = vpop.eup %5656 }
0x25e4   :  { %v3513_v13 = vadd.f32 1.0, %v5657_v35 }
0x25e6   :  { %5658 = vrcp.f32 %v3513_v13 }
0x25f0   :  { %v5659_v49 = vpop.eup %5658 }
0x25f1   :  { %v3516_v48 = vmul.f32 %v5659_v49, %v3507_v44  ;;  %v3519_v41 = vsub.f32 1.0, %v5659_v49  ;;  %v3525_v23 = vmul.f32 %v5659_v49, %v7276_v47 }
0x25f3   :  { %v3517_v10 = vadd.f32 %v3516_v48, %v7121_v59 }
0x25f5   :  { %5660 = vtanh.f32 %v3517_v10 }
0x25ff   :  { %v5661_v14 = vpop.eup %5660 }
0x2600   :  { %3521 = vrot.lane.b32.xlu0 %v5661_v14, %s5808_s8 }
0x2672   :  { %v3522_v1 = vpop.permute.xlu0 %3521 }
0x2673   :  { %v3524_v56 = vmul.f32 %v3522_v1, %v3519_v41 }
0x2675   :  { %v7296_v9 = vadd.f32 %v3525_v23, %v3524_v56 }
0x2677   :  { %3550 = vrot.lane.b32.xlu1 %v7296_v9, %s5808_s8 }
0x26e9   :  { %v3551_v20 = vpop.permute.xlu1 %3550 }
0x26ea   :  { %4923 = vmatmul.mubr.msk.f32.vlgmr.msra.gmra.mrb[28].mxu1 %vm1085_vm4, %v3551_v20 }
0x26eb   :  { %5375 = vmatpush1.bf16.msra.mxu1 %v6864_v45  ;;  %3850 = vmatprep.mubr.f32.mxu1 %v5805_v17 }
0x26ec   :  { %5377 = vmatprep.subr.bf16.mxu1 %v6867_v0 }
0x26ef   :  { %5379 = vmatpush1.bf16.msra.mxu1 %v6872_v60 }
0x26f0   :  { %5381 = vmatprep.subr.bf16.mxu1 %v6874_v32 }
0x26f3   :  { %5383 = vmatpush1.bf16.msra.mxu1 %v6878_v34 }
0x26f4   :  { %5385 = vmatprep.subr.bf16.mxu1 %v6880_v54 }
0x26f7   :  { %5387 = vmatpush1.bf16.msra.mxu1 %v6883_v24 }
0x26f8   :  { %5405 = vmatprep.subr.bf16.mxu1 %v6861_v7 }
0x27bd   :  { %v3620_v59 = vpop.f32.mrb[28].mxu1 }
0x27be   :  { %v3621_v40 = vadd.f32 %v3620_v59, %v6990_v16  ;;  %v3622_v25 = vpop.f32.mrb[29].mxu1 }
0x27bf   :  { %v3623_v2 = vadd.f32 %v3622_v25, %v7231_v27 }
0x27c0   :  { %v3625_v57 = vadd.f32 %v3621_v40, %v7065_v61 }
0x27c2   :  { %v4924_v43 = vmul.f32 -1.442695, %v3625_v57 }
0x27c4   :  { %5662 = vpow2.f32 %v4924_v43 }
0x27ce   :  { %v5663_v42 = vpop.eup %5662 }
0x27cf   :  { %v3629_v33 = vadd.f32 1.0, %v5663_v42 }
0x27d1   :  { %5664 = vrcp.f32 %v3629_v33 }
0x27db   :  { %v5665_v22 = vpop.eup %5664 }
0x27dc   :  { %v3632_v3 = vmul.f32 %v5665_v22, %v3623_v2  ;;  %v3635_v37 = vsub.f32 1.0, %v5665_v22  ;;  %v3641_v39 = vmul.f32 %v5665_v22, %v7296_v9 }
0x27de   :  { %v3633_v58 = vadd.f32 %v3632_v3, %v7111_v26 }
0x27e0   :  { %5666 = vtanh.f32 %v3633_v58 }
0x27ea   :  { %v5667_v5 = vpop.eup %5666 }
0x27eb   :  { %3637 = vrot.lane.b32.xlu0 %v5667_v5, %s5808_s8 }
0x285d   :  { %v3638_v12 = vpop.permute.xlu0 %3637 }
0x285e   :  { %v3640_v61 = vmul.f32 %v3638_v12, %v3635_v37 }
0x2860   :  { %v7316_v35 = vadd.f32 %v3641_v39, %v3640_v61 }
0x2862   :  { %3666 = vrot.lane.b32.xlu1 %v7316_v35, %s5808_s8 }
0x28d4   :  { %v3667_v13 = vpop.permute.xlu1 %3666 }
0x28d5   :  { %4925 = vmatmul.mubr.msk.f32.vlgmr.msra.gmra.mrb[30].mxu0 %vm1085_vm4, %v3667_v13 }
0x28d6   :  { %5391 = vmatpush1.bf16.msra.mxu0 %v6864_v45  ;;  %3954 = vmatprep.mubr.f32.mxu0 %v5805_v17 }
0x28d7   :  { %5393 = vmatprep.subr.bf16.mxu0 %v6867_v0 }
0x28da   :  { %5395 = vmatpush1.bf16.msra.mxu0 %v6872_v60 }
0x28db   :  { %5397 = vmatprep.subr.bf16.mxu0 %v6874_v32 }
0x28de   :  { %5399 = vmatpush1.bf16.msra.mxu0 %v6878_v34 }
0x28df   :  { %5401 = vmatprep.subr.bf16.mxu0 %v6880_v54 }
0x28e2   :  { %5403 = vmatpush1.bf16.msra.mxu0 %v6883_v24 }
0x28e3   :  { %5421 = vmatprep.subr.bf16.mxu0 %v6861_v7 }
0x29a8   :  { %v3736_v26 = vpop.f32.mrb[30].mxu0 }
0x29a9   :  { %v3737_v44 = vadd.f32 %v3736_v26, %v6990_v16  ;;  %v3738_v49 = vpop.f32.mrb[31].mxu0 }
0x29aa   :  { %v3739_v1 = vadd.f32 %v3738_v49, %v7231_v27 }
0x29ab   :  { %v3741_v48 = vadd.f32 %v3737_v44, %v7124_v4 }
0x29ad   :  { %v4926_v10 = vmul.f32 -1.442695, %v3741_v48 }
0x29af   :  { %5668 = vpow2.f32 %v4926_v10 }
0x29b9   :  { %v5669_v14 = vpop.eup %5668 }
0x29ba   :  { %v3745_v41 = vadd.f32 1.0, %v5669_v14  ;;  %v3006_v14 = vcombine.high %v7004_v36, %v7004_v36 }
0x29bc   :  { %5670 = vrcp.f32 %v3745_v41 }
0x29c6   :  { %v5671_v23 = vpop.eup %5670 }
0x29c7   :  { %v3748_v56 = vmul.f32 %v5671_v23, %v3739_v1  ;;  %v3751_v40 = vsub.f32 1.0, %v5671_v23  ;;  %v3757_v57 = vmul.f32 %v5671_v23, %v7316_v35 }
0x29c9   :  { %v3749_v20 = vadd.f32 %v3748_v56, %v7146_v19 }
0x29cb   :  { %5672 = vtanh.f32 %v3749_v20 }
0x29d5   :  { %v5673_v59 = vpop.eup %5672 }
0x29d6   :  { %3753 = vrot.lane.b32.xlu0 %v5673_v59, %s5808_s8 }
0x2a48   :  { %v3754_v25 = vpop.permute.xlu0 %3753 }
0x2a49   :  { %v3756_v4 = vmul.f32 %v3754_v25, %v3751_v40  ;;  %v3881_v40 = vrot.slane %v3006_v14, %v6148_v29 }
0x2a4b   :  { %v7336_v43 = vadd.f32 %v3757_v57, %v3756_v4  ;;  %v3882_v4 = vcombine.high %v3881_v40, %v3881_v40 }
0x2a4d   :  { %3782 = vrot.lane.b32.xlu1 %v7336_v43, %s5808_s8 }
0x2abf   :  { %v3783_v42 = vpop.permute.xlu1 %3782 }
0x2ac0   :  { %4927 = vmatmul.mubr.msk.f32.vlgmr.msra.gmra.mrb[30].mxu1 %vm1085_vm4, %v3783_v42 }
0x2ac1   :  { %5407 = vmatpush1.bf16.msra.mxu1 %v6864_v45  ;;  %4052 = vmatprep.mubr.f32.mxu1 %v5805_v17 }
0x2ac2   :  { %5409 = vmatprep.subr.bf16.mxu1 %v6867_v0 }
0x2ac5   :  { %5411 = vmatpush1.bf16.msra.mxu1 %v6872_v60 }
0x2ac6   :  { %5413 = vmatprep.subr.bf16.mxu1 %v6874_v32 }
0x2ac9   :  { %5415 = vmatpush1.bf16.msra.mxu1 %v6878_v34 }
0x2aca   :  { %5417 = vmatprep.subr.bf16.mxu1 %v6880_v54 }
0x2acd   :  { %5419 = vmatpush1.bf16.msra.mxu1 %v6883_v24 }
0x2ace   :  { %5437 = vmatprep.subr.bf16.mxu1 %v6861_v7 }
0x2b93   :  { %v3852_v19 = vpop.f32.mrb[30].mxu1 }
0x2b94   :  { %v3853_v33 = vadd.f32 %v3852_v19, %v6990_v16  ;;  %v3854_v2 = vpop.f32.mrb[31].mxu1 }
0x2b95   :  { %v3855_v37 = vadd.f32 %v3854_v2, %v7231_v27 }
0x2b96   :  { %v3857_v22 = vadd.f32 %v3853_v33, %v7141_v6 }
0x2b98   :  { %v4928_v3 = vmul.f32 -1.442695, %v3857_v22 }
0x2b9a   :  { %5674 = vpow2.f32 %v4928_v3 }
0x2ba4   :  { %v5675_v58 = vpop.eup %5674 }
0x2ba5   :  { %v3861_v5 = vadd.f32 1.0, %v5675_v58 }
0x2ba7   :  { %5676 = vrcp.f32 %v3861_v5 }
0x2bb1   :  { %v5677_v12 = vpop.eup %5676 }
0x2bb2   :  { %v3864_v39 = vmul.f32 %v5677_v12, %v3855_v37  ;;  %v3867_v26 = vsub.f32 1.0, %v5677_v12  ;;  %v3873_v49 = vmul.f32 %v5677_v12, %v7336_v43 }
0x2bb4   :  { %v3865_v61 = vadd.f32 %v3864_v39, %v7157_v52 }
0x2bb6   :  { %5678 = vtanh.f32 %v3865_v61 }
0x2bc0   :  { %v5679_v13 = vpop.eup %5678 }
0x2bc1   :  { %3869 = vrot.lane.b32.xlu0 %v5679_v13, %s5808_s8 }
0x2c33   :  { %v3870_v44 = vpop.permute.xlu0 %3869 }
0x2c34   :  { %v3872_v6 = vmul.f32 %v3870_v44, %v3867_v26 }
0x2c36   :  { %v7356_v48 = vadd.f32 %v3873_v49, %v3872_v6 }
0x2c38   :  { %3886 = vrot.lane.b32.xlu1 %v7356_v48, %s5808_s8 }
0x2caa   :  { %v3887_v10 = vpop.permute.xlu1 %3886 }
0x2cab   :  { %4929 = vmatmul.mubr.msk.f32.vlgmr.msra.gmra.mrb[32].mxu0 %vm1085_vm4, %v3887_v10 }
0x2cac   :  { %5423 = vmatpush1.bf16.msra.mxu0 %v6864_v45  ;;  %4150 = vmatprep.mubr.f32.mxu0 %v5805_v17 }
0x2cad   :  { %5425 = vmatprep.subr.bf16.mxu0 %v6867_v0 }
0x2cb0   :  { %5427 = vmatpush1.bf16.msra.mxu0 %v6872_v60 }
0x2cb1   :  { %5429 = vmatprep.subr.bf16.mxu0 %v6874_v32 }
0x2cb4   :  { %5431 = vmatpush1.bf16.msra.mxu0 %v6878_v34 }
0x2cb5   :  { %5433 = vmatprep.subr.bf16.mxu0 %v6880_v54 }
0x2cb8   :  { %5435 = vmatpush1.bf16.msra.mxu0 %v6883_v24 }
0x2cb9   :  { %5453 = vmatprep.subr.bf16.mxu0 %v6861_v7 }
0x2d7e   :  { %v3956_v52 = vpop.f32.mrb[32].mxu0 }
0x2d7f   :  { %v3957_v41 = vadd.f32 %v3956_v52, %v6990_v16  ;;  %v3958_v1 = vpop.f32.mrb[33].mxu0 }
0x2d80   :  { %v3959_v25 = vadd.f32 %v3958_v1, %v7231_v27 }
0x2d81   :  { %v3961_v23 = vadd.f32 %v3957_v41, %v3006_v14 }
0x2d83   :  { %v4930_v56 = vmul.f32 -1.442695, %v3961_v23 }
0x2d85   :  { %5680 = vpow2.f32 %v4930_v56 }
0x2d8f   :  { %v5681_v20 = vpop.eup %5680 }
0x2d90   :  { %v3965_v59 = vadd.f32 1.0, %v5681_v20 }
0x2d92   :  { %5682 = vrcp.f32 %v3965_v59 }
0x2d9c   :  { %v5683_v57 = vpop.eup %5682 }
0x2d9d   :  { %v3968_v42 = vmul.f32 %v5683_v57, %v3959_v25  ;;  %v3971_v36 = vsub.f32 1.0, %v5683_v57  ;;  %v3977_v22 = vmul.f32 %v5683_v57, %v7356_v48 }
0x2d9f   :  { %v3969_v19 = vadd.f32 %v3968_v42, %v3882_v4 }
0x2da1   :  { %5684 = vtanh.f32 %v3969_v19 }
0x2dab   :  { %v5685_v33 = vpop.eup %5684 }
0x2dac   :  { %3973 = vrot.lane.b32.xlu0 %v5685_v33, %s5808_s8 }
0x2e1e   :  { %v3974_v2 = vpop.permute.xlu0 %3973 }
0x2e1f   :  { %v3976_v3 = vmul.f32 %v3974_v2, %v3971_v36 }
0x2e21   :  { %v7377_v58 = vadd.f32 %v3977_v22, %v3976_v3 }
0x2e23   :  { %3984 = vrot.lane.b32.xlu1 %v7377_v58, %s5808_s8 }
0x2e95   :  { %v3985_v29 = vpop.permute.xlu1 %3984 }
0x2e96   :  { %4931 = vmatmul.mubr.msk.f32.vlgmr.msra.gmra.mrb[32].mxu1 %vm1085_vm4, %v3985_v29 }
0x2e97   :  { %5439 = vmatpush1.bf16.msra.mxu1 %v6864_v45  ;;  %4248 = vmatprep.mubr.f32.mxu1 %v5805_v17 }
0x2e98   :  { %5441 = vmatprep.subr.bf16.mxu1 %v6867_v0 }
0x2e9b   :  { %5443 = vmatpush1.bf16.msra.mxu1 %v6872_v60 }
0x2e9c   :  { %5445 = vmatprep.subr.bf16.mxu1 %v6874_v32 }
0x2e9f   :  { %5447 = vmatpush1.bf16.msra.mxu1 %v6878_v34 }
0x2ea0   :  { %5449 = vmatprep.subr.bf16.mxu1 %v6880_v54 }
0x2ea3   :  { %5451 = vmatpush1.bf16.msra.mxu1 %v6883_v24 }
0x2ea4   :  { %5469 = vmatprep.subr.bf16.mxu1 %v6861_v7 }
0x2f69   :  { %v4054_v5 = vpop.f32.mrb[32].mxu1 }
0x2f6a   :  { %v4055_v37 = vadd.f32 %v4054_v5, %v6990_v16  ;;  %v4056_v12 = vpop.f32.mrb[33].mxu1 }
0x2f6b   :  { %v4057_v44 = vadd.f32 %v4056_v12, %v7231_v27 }
0x2f6c   :  { %v4059_v39 = vadd.f32 %v4055_v37, %v7150_v53 }
0x2f6e   :  { %v4932_v61 = vmul.f32 -1.442695, %v4059_v39 }
0x2f70   :  { %5686 = vpow2.f32 %v4932_v61 }
0x2f7a   :  { %v5687_v13 = vpop.eup %5686 }
0x2f7b   :  { %v4063_v26 = vadd.f32 1.0, %v5687_v13 }
0x2f7d   :  { %5688 = vrcp.f32 %v4063_v26 }
0x2f87   :  { %v5689_v49 = vpop.eup %5688 }
0x2f88   :  { %v4066_v6 = vmul.f32 %v5689_v49, %v4057_v44  ;;  %v4069_v14 = vsub.f32 1.0, %v5689_v49  ;;  %v4075_v1 = vmul.f32 %v5689_v49, %v7377_v58 }
0x2f8a   :  { %v4067_v10 = vadd.f32 %v4066_v6, %v7160_v51 }
0x2f8c   :  { %5690 = vtanh.f32 %v4067_v10 }
0x2f96   :  { %v5691_v52 = vpop.eup %5690 }
0x2f97   :  { %4071 = vrot.lane.b32.xlu0 %v5691_v52, %s5808_s8 }
0x3009   :  { %v4072_v41 = vpop.permute.xlu0 %4071 }
0x300a   :  { %v4074_v53 = vmul.f32 %v4072_v41, %v4069_v14 }
0x300c   :  { %v7397_v23 = vadd.f32 %v4075_v1, %v4074_v53 }
0x300e   :  { %4082 = vrot.lane.b32.xlu1 %v7397_v23, %s5808_s8 }
0x3080   :  { %v4083_v56 = vpop.permute.xlu1 %4082 }
0x3081   :  { %4933 = vmatmul.mubr.msk.f32.vlgmr.msra.gmra.mrb[34].mxu0 %vm1085_vm4, %v4083_v56 }
0x3082   :  { %5455 = vmatpush1.bf16.msra.mxu0 %v6864_v45  ;;  %4346 = vmatprep.mubr.f32.mxu0 %v5805_v17 }
0x3083   :  { %5457 = vmatprep.subr.bf16.mxu0 %v6867_v0 }
0x3086   :  { %5459 = vmatpush1.bf16.msra.mxu0 %v6872_v60 }
0x3087   :  { %5461 = vmatprep.subr.bf16.mxu0 %v6874_v32 }
0x308a   :  { %5463 = vmatpush1.bf16.msra.mxu0 %v6878_v34 }
0x308b   :  { %5465 = vmatprep.subr.bf16.mxu0 %v6880_v54 }
0x308e   :  { %5467 = vmatpush1.bf16.msra.mxu0 %v6883_v24 }
0x308f   :  { %5485 = vmatprep.subr.bf16.mxu0 %v6861_v7 }
0x3154   :  { %v4152_v51 = vpop.f32.mrb[34].mxu0 }
0x3155   :  { %v4153_v20 = vadd.f32 %v4152_v51, %v6990_v16  ;;  %v4154_v59 = vpop.f32.mrb[35].mxu0 }
0x3156   :  { %v4155_v42 = vadd.f32 %v4154_v59, %v7231_v27 }
0x3157   :  { %v4157_v40 = vadd.f32 %v4153_v20, %v7164_v15 }
0x3159   :  { %v4934_v25 = vmul.f32 -1.442695, %v4157_v40 }
0x315b   :  { %5692 = vpow2.f32 %v4934_v25 }
0x3165   :  { %v5693_v57 = vpop.eup %5692 }
0x3166   :  { %v4161_v4 = vadd.f32 1.0, %v5693_v57 }
0x3168   :  { %5694 = vrcp.f32 %v4161_v4 }
0x3172   :  { %v5695_v19 = vpop.eup %5694 }
0x3173   :  { %v4164_v33 = vmul.f32 %v5695_v19, %v4155_v42  ;;  %v4167_v22 = vsub.f32 1.0, %v5695_v19  ;;  %v4173_v29 = vmul.f32 %v5695_v19, %v7397_v23 }
0x3175   :  { %v4165_v36 = vadd.f32 %v4164_v33, %v7154_v18 }
0x3177   :  { %5696 = vtanh.f32 %v4165_v36 }
0x3181   :  { %v5697_v2 = vpop.eup %5696 }
0x3182   :  { %4169 = vrot.lane.b32.xlu0 %v5697_v2, %s5808_s8 }
0x31f4   :  { %v4170_v3 = vpop.permute.xlu0 %4169 }
0x31f5   :  { %v4172_v15 = vmul.f32 %v4170_v3, %v4167_v22 }
0x31f7   :  { %v7417_v5 = vadd.f32 %v4173_v29, %v4172_v15 }
0x31f9   :  { %4180 = vrot.lane.b32.xlu1 %v7417_v5, %s5808_s8 }
0x326b   :  { %v4181_v37 = vpop.permute.xlu1 %4180 }
0x326c   :  { %4935 = vmatmul.mubr.msk.f32.vlgmr.msra.gmra.mrb[34].mxu1 %vm1085_vm4, %v4181_v37 }
0x326d   :  { %5471 = vmatpush1.bf16.msra.mxu1 %v6864_v45  ;;  %4444 = vmatprep.mubr.f32.mxu1 %v5805_v17 }
0x326e   :  { %5473 = vmatprep.subr.bf16.mxu1 %v6867_v0 }
0x3271   :  { %5475 = vmatpush1.bf16.msra.mxu1 %v6872_v60 }
0x3272   :  { %5477 = vmatprep.subr.bf16.mxu1 %v6874_v32 }
0x3275   :  { %5479 = vmatpush1.bf16.msra.mxu1 %v6878_v34 }
0x3276   :  { %5481 = vmatprep.subr.bf16.mxu1 %v6880_v54 }
0x3279   :  { %5483 = vmatpush1.bf16.msra.mxu1 %v6883_v24 }
0x327a   :  { %5501 = vmatprep.subr.bf16.mxu1 %v6861_v7 }
0x333f   :  { %v4250_v18 = vpop.f32.mrb[34].mxu1 }
0x3340   :  { %v4251_v12 = vadd.f32 %v4250_v18, %v6990_v16  ;;  %v4252_v39 = vpop.f32.mrb[35].mxu1 }
0x3341   :  { %v4253_v49 = vadd.f32 %v4252_v39, %v7231_v27 }
0x3342   :  { %v4255_v61 = vadd.f32 %v4251_v12, %v7184_v28 }
0x3344   :  { %v4936_v13 = vmul.f32 -1.442695, %v4255_v61 }
0x3346   :  { %5698 = vpow2.f32 %v4936_v13 }
0x3350   :  { %v5699_v26 = vpop.eup %5698 }
0x3351   :  { %v4259_v44 = vadd.f32 1.0, %v5699_v26 }
0x3353   :  { %5700 = vrcp.f32 %v4259_v44 }
0x335d   :  { %v5701_v6 = vpop.eup %5700 }
0x335e   :  { %v4262_v10 = vmul.f32 %v5701_v6, %v4253_v49  ;;  %v4265_v7 = vsub.f32 1.0, %v5701_v6  ;;  %v4271_v1 = vmul.f32 %v5701_v6, %v7417_v5 }
0x3360   :  { %v4263_v52 = vadd.f32 %v4262_v10, %v7173_v31 }
0x3362   :  { %5702 = vtanh.f32 %v4263_v52 }
0x336c   :  { %v5703_v14 = vpop.eup %5702 }
0x336d   :  { %4267 = vrot.lane.b32.xlu0 %v5703_v14, %s5808_s8 }
0x33df   :  { %v4268_v41 = vpop.permute.xlu0 %4267 }
0x33e0   :  { %v4270_v28 = vmul.f32 %v4268_v41, %v4265_v7 }
0x33e2   :  { %v7437_v53 = vadd.f32 %v4271_v1, %v4270_v28 }
0x33e4   :  { %4278 = vrot.lane.b32.xlu1 %v7437_v53, %s5808_s8 }
0x3456   :  { %v4279_v56 = vpop.permute.xlu1 %4278 }
0x3457   :  { %4937 = vmatmul.mubr.msk.f32.vlgmr.msra.gmra.mrb[36].mxu0 %vm1085_vm4, %v4279_v56 }
0x3458   :  { %5487 = vmatpush1.bf16.msra.mxu0 %v6864_v45  ;;  %4542 = vmatprep.mubr.f32.mxu0 %v5805_v17 }
0x3459   :  { %5489 = vmatprep.subr.bf16.mxu0 %v6867_v0 }
0x345c   :  { %5491 = vmatpush1.bf16.msra.mxu0 %v6872_v60 }
0x345d   :  { %5493 = vmatprep.subr.bf16.mxu0 %v6874_v32 }
0x3460   :  { %5495 = vmatpush1.bf16.msra.mxu0 %v6878_v34 }
0x3461   :  { %5497 = vmatprep.subr.bf16.mxu0 %v6880_v54 }
0x3464   :  { %5499 = vmatpush1.bf16.msra.mxu0 %v6883_v24 }
0x352a   :  { %v4348_v31 = vpop.f32.mrb[36].mxu0 }
0x352b   :  { %v4349_v51 = vadd.f32 %v4348_v31, %v6990_v16  ;;  %v4350_v20 = vpop.f32.mrb[37].mxu0 }
0x352c   :  { %v4351_v4 = vadd.f32 %v4350_v20, %v7231_v27 }
0x352d   :  { %v4353_v59 = vadd.f32 %v4349_v51, %v7197_v30 }
0x352f   :  { %v4938_v40 = vmul.f32 -1.442695, %v4353_v59 }
0x3531   :  { %5704 = vpow2.f32 %v4938_v40 }
0x353b   :  { %v5705_v25 = vpop.eup %5704 }
0x353c   :  { %v4357_v57 = vadd.f32 1.0, %v5705_v25 }
0x353e   :  { %5706 = vrcp.f32 %v4357_v57 }
0x3548   :  { %v5707_v42 = vpop.eup %5706 }
0x3549   :  { %v4360_v19 = vmul.f32 %v5707_v42, %v4351_v4  ;;  %v4363_v2 = vsub.f32 1.0, %v5707_v42  ;;  %v4369_v3 = vmul.f32 %v5707_v42, %v7437_v53 }
0x354b   :  { %v4361_v33 = vadd.f32 %v4360_v19, %v7180_v11 }
0x354d   :  { %5708 = vtanh.f32 %v4361_v33 }
0x3557   :  { %v5709_v36 = vpop.eup %5708 }
0x3558   :  { %4365 = vrot.lane.b32.xlu0 %v5709_v36, %s5808_s8 }
0x35ca   :  { %v4366_v22 = vpop.permute.xlu0 %4365 }
0x35cb   :  { %v4368_v30 = vmul.f32 %v4366_v22, %v4363_v2 }
0x35cd   :  { %v7456_v29 = vadd.f32 %v4369_v3, %v4368_v30 }
0x35cf   :  { %4376 = vrot.lane.b32.xlu1 %v7456_v29, %s5808_s8 }
0x3641   :  { %v4377_v15 = vpop.permute.xlu1 %4376 }
0x3642   :  { %4939 = vmatmul.mubr.msk.f32.vlgmr.msra.gmra.mrb[36].mxu1 %vm1085_vm4, %v4377_v15 }
0x3643   :  { %5503 = vmatpush1.bf16.msra.mxu1 %v6864_v45  ;;  %4640 = vmatprep.mubr.f32.mxu1 %v5805_v17 }
0x3644   :  { %5505 = vmatprep.subr.bf16.mxu1 %v6867_v0 }
0x3647   :  { %5507 = vmatpush1.bf16.msra.mxu1 %v6872_v60 }
0x3648   :  { %5509 = vmatprep.subr.bf16.mxu1 %v6874_v32 }
0x364b   :  { %5511 = vmatpush1.bf16.msra.mxu1 %v6878_v34 }
0x364c   :  { %5513 = vmatprep.subr.bf16.mxu1 %v6880_v54 }
0x364f   :  { %5515 = vmatpush1.bf16.msra.mxu1 %v6883_v24 }
0x3715   :  { %v4446_v11 = vpop.f32.mrb[36].mxu1 }
0x3716   :  { %v4447_v37 = vadd.f32 %v4446_v11, %v6990_v16  ;;  %v4448_v18 = vpop.f32.mrb[37].mxu1  ;;  %v4680_v11 = vld [vmem:[%s7583_s13] sm:$0xff] }
0x3717   :  { %v4449_v60 = vadd.f32 %v4448_v18, %v7231_v27 }
0x3718   :  { %v4451_v45 = vadd.f32 %v4447_v37, %v7209_v62  ;;  %v5809_v37 = vmov 0.0|0.0  }
0x3719   :  { %5516 = vmatprep.subr.bf16.mxu0 %v5809_v37  ;;  %5528 = vmatprep.subr.bf16.mxu1 %v5809_v37 }
0x371a   :  { %v4940_v12 = vmul.f32 -1.442695, %v4451_v45 }
0x371c   :  { %5710 = vpow2.f32 %v4940_v12  ;;  %v4684_v12 = vld [vmem:[%s7583_s13 + $0x20] sm:$0xff] }
0x3726   :  { %v5711_v39 = vpop.eup %5710 }
0x3727   :  { %v4455_v0 = vadd.f32 1.0, %v5711_v39  ;;  %v4685_v39 = vld [vmem:[%s7583_s13 + $0x28] sm:$0xff] }
0x3729   :  { %5712 = vrcp.f32 %v4455_v0  ;;  %v5523_v0 = vpack.c.bf16 %v4685_v39, %v4684_v12 }
0x3733   :  { %v5713_v32 = vpop.eup %5712 }
0x3734   :  { %v4458_v61 = vmul.f32 %v5713_v32, %v4449_v60  ;;  %v4461_v24 = vsub.f32 1.0, %v5713_v32  ;;  %v4467_v26 = vmul.f32 %v5713_v32, %v7456_v29  ;;  %v4687_v60 = vld [vmem:[%s7583_s13 + $0x38] sm:$0xff] }
0x3736   :  { %v4459_v34 = vadd.f32 %v4458_v61, %v7193_v8  ;;  %v4665_v61 = vadd.f32 %v7256_v21, %v7236_v63  ;;  %v4771_v63 = vld [vmem:[%s7585_s15] sm:$0xff]  ;;  %v4772_v21 = vld [vmem:[%s7585_s15 + $0x8] sm:$0xff] }
0x3738   :  { %5714 = vtanh.f32 %v4459_v34  ;;  %v4666_v34 = vadd.f32 %v4665_v61, %v7276_v47 }
0x3742   :  { %v5715_v54 = vpop.eup %5714 }
0x3743   :  { %4463 = vrot.lane.b32.xlu0 %v5715_v54, %s5808_s8  ;;  %v4667_v54 = vadd.f32 %v4666_v34, %v7296_v9  ;;  %v5529_v9 = vpack.c.bf16 %v4772_v21, %v4771_v63 }
0x37b5   :  { %v4464_v13 = vpop.permute.xlu0 %4463 }
0x37b6   :  { %v4466_v62 = vmul.f32 %v4464_v13, %v4461_v24  ;;  %v4668_v24 = vadd.f32 %v4667_v54, %v7316_v35 }
0x37b8   :  { %v7475_v44 = vadd.f32 %v4467_v26, %v4466_v62  ;;  %v4669_v13 = vadd.f32 %v4668_v24, %v7336_v43 }
0x37ba   :  { %4474 = vrot.lane.b32.xlu1 %v7475_v44, %s5808_s8  ;;  %v4670_v26 = vadd.f32 %v4669_v13, %v7356_v48 }
0x37bc   :  { %v4671_v62 = vadd.f32 %v4670_v26, %v7377_v58 }
0x382c   :  { %v4475_v49 = vpop.permute.xlu1 %4474 }
0x382d   :  { %4941 = vmatmul.mubr.msk.f32.vlgmr.msra.gmra.mrb[38].mxu0 %vm1085_vm4, %v4475_v49  ;;  %v4672_v49 = vadd.f32 %v4671_v62, %v7397_v23 }
0x382e   :  { %4998 = vmatprep.mubr.msk.f32.mxu0 %vm5810_vm6, %v5805_v17 }
0x3900   :  { %v4544_v6 = vpop.f32.mrb[38].mxu0 }
0x3901   :  { %v4545_v8 = vadd.f32 %v4544_v6, %v6990_v16  ;;  %v4546_v10 = vpop.f32.mrb[39].mxu0  ;;  %v4673_v6 = vadd.f32 %v4672_v49, %v7417_v5 }
0x3902   :  { %v4547_v1 = vadd.f32 %v4546_v10, %v7231_v27 }
0x3903   :  { %v4549_v52 = vadd.f32 %v4545_v8, %v7221_v55  ;;  %v4674_v47 = vadd.f32 %v4673_v6, %v7437_v53 }
0x3905   :  { %v4942_v14 = vmul.f32 -1.442695, %v4549_v52  ;;  %v4675_v35 = vadd.f32 %v4674_v47, %v7456_v29  ;;  %v4773_v29 = vld [vmem:[%s7585_s15 + $0x10] sm:$0xff] }
0x3907   :  { %5716 = vpow2.f32 %v4942_v14  ;;  %v4676_v58 = vadd.f32 %v4675_v35, %v7475_v44 }
0x3911   :  { %v5717_v7 = vpop.eup %5716 }
0x3912   :  { %v4553_v41 = vadd.f32 1.0, %v5717_v7 }
0x3914   :  { %5718 = vrcp.f32 %v4553_v41  ;;  %v4945_v41 = vld [vmem:[%s7584_s14] ss:$0 sm:$0xff] }
0x391e   :  { %v5719_v28 = vpop.eup %5718 }
0x391f   :  { %v4556_v56 = vmul.f32 %v5719_v28, %v4547_v1  ;;  %v4559_v20 = vsub.f32 1.0, %v5719_v28  ;;  %v4565_v40 = vmul.f32 %v5719_v28, %v7475_v44  ;;  %v4774_v44 = vld [vmem:[%s7585_s15 + $0x18] sm:$0xff]  ;;  %s5772_s15 = scalar_lea.vmem %s4864_s26, 32 }
0x3920   :  { %v5532_v7 = vpack.c.bf16 %v4774_v44, %v4773_v29  ;;  %p5773_p2 = scmp.ne.s32.totalorder %s4864_s26, %s5772_s15  ;;  %p5778_p4 = scmp.lt.s32.totalorder %s5772_s15, %s5772_s15 }
0x3921   :  { %v4557_v31 = vadd.f32 %v4556_v56, %v7205_v50 }
0x3922   :  { %p5779_p5 = por %p5778_p4, %p5777_p3 }
0x3923   :  { %5720 = vtanh.f32 %v4557_v31 }
0x3924   :  { %p5780_p6 = pnand %p5779_p5, %p5773_p2 }
0x392d   :  { %v5721_v51 = vpop.eup %5720 }
0x392e   :  { %4561 = vrot.lane.b32.xlu0 %v5721_v51, %s5808_s8  ;;  %v4947_v51 = vld [vmem:[%s7586_s16] ss:$0 sm:$0xff] }
0x39a0   :  { %v4562_v59 = vpop.permute.xlu0 %4561 }
0x39a1   :  { %v4564_v55 = vmul.f32 %v4562_v59, %v4559_v20 }
0x39a3   :  { %v7486_v25 = vadd.f32 %v4565_v40, %v4564_v55 }
0x39a5   :  { %4572 = vrot.lane.b32.xlu1 %v7486_v25, %s5808_s8  ;;  %v4677_v10 = vadd.f32 %v4676_v58, %v7486_v25 }
0x3a17   :  { %v4573_v57 = vpop.permute.xlu1 %4572 }
0x3a18   :  { %4943 = vmatmul.mubr.msk.f32.vlgmr.msra.gmra.mrb[38].mxu1 %vm1085_vm4, %v4573_v57 }
0x3a19   :  { %5009 = vmatprep.mubr.msk.f32.mxu1 %vm5810_vm6, %v5805_v17  ;;  %v4686_v17 = vld [vmem:[%s7583_s13 + $0x30] sm:$0xff]  ;;  %5530 = vmatpush3.bf16.msra.mxu1 %v5529_v9 }
0x3a1a   :  { %v5526_v32 = vpack.c.bf16 %v4687_v60, %v4686_v17  ;;  %5531 = vmatprep.subr.bf16.mxu1 %v5809_v37 }
0x3a1d   :  { %5533 = vmatpush3.bf16.msra.mxu1 %v5532_v7 }
0x3aeb   :  { %v4642_v4 = vpop.f32.mrb[38].mxu1 }
0x3aec   :  { %v4643_v50 = vadd.f32 %v4642_v4, %v6990_v16  ;;  %v4644_v42 = vpop.f32.mrb[39].mxu1  ;;  %v4681_v16 = vld [vmem:[%s7583_s13 + $0x8] sm:$0xff] }
0x3aed   :  { %v4645_v22 = vadd.f32 %v4644_v42, %v7231_v27  ;;  %v5517_v27 = vpack.c.bf16 %v4681_v16, %v4680_v11 }
0x3aee   :  { %v4647_v19 = vadd.f32 %v4643_v50, %v7227_v38  ;;  %v4682_v38 = vld [vmem:[%s7583_s13 + $0x10] sm:$0xff] }
0x3aef   :  { %5518 = vmatpush3.bf16.msra.mxu0 %v5517_v27 }
0x3af0   :  { %v4944_v33 = vmul.f32 -1.442695, %v4647_v19  ;;  %5519 = vmatprep.subr.bf16.mxu0 %v5809_v37 }
0x3af2   :  { %5722 = vpow2.f32 %v4944_v33 }
0x3afc   :  { %v5723_v36 = vpop.eup %5722 }
0x3afd   :  { %v4651_v2 = vadd.f32 1.0, %v5723_v36 }
0x3aff   :  { %5724 = vrcp.f32 %v4651_v2 }
0x3b09   :  { %v5725_v3 = vpop.eup %5724 }
0x3b0a   :  { %v4654_v30 = vmul.f32 %v5725_v3, %v4645_v22  ;;  %v4657_v43 = vsub.f32 1.0, %v5725_v3  ;;  %v4663_v23 = vmul.f32 %v5725_v3, %v7486_v25 }
0x3b0c   :  { %v4655_v15 = vadd.f32 %v4654_v30, %v7217_v46  ;;  %v4683_v46 = vld [vmem:[%s7583_s13 + $0x18] sm:$0xff] }
0x3b0d   :  { %v5520_v18 = vpack.c.bf16 %v4683_v46, %v4682_v38 }
0x3b0e   :  { %5726 = vtanh.f32 %v4655_v15 }
0x3b0f   :  { %5521 = vmatpush3.bf16.msra.mxu0 %v5520_v18 }
0x3b10   :  { %5522 = vmatprep.subr.bf16.mxu0 %v5809_v37 }
0x3b13   :  { %5524 = vmatpush3.bf16.msra.mxu0 %v5523_v0 }
0x3b14   :  { %5525 = vmatprep.subr.bf16.mxu0 %v5809_v37 }
0x3b17   :  { %5527 = vmatpush3.bf16.msra.mxu0 %v5526_v32 }
0x3b18   :  { %v5727_v45 = vpop.eup %5726 }
0x3b19   :  { %4659 = vrot.lane.b32.xlu0 %v5727_v45, %s5808_s8 }
0x3b8b   :  { %v4660_v48 = vpop.permute.xlu0 %4659 }
0x3b8c   :  { %v4662_v5 = vmul.f32 %v4660_v48, %v4657_v43 }
0x3b8e   :  { %v4664_v8 = vadd.f32 %v4663_v23, %v4662_v5 }
0x3b90   :  { %v4678_v52 = vadd.f32 %v4677_v10, %v4664_v8 }
0x3b92   :  { %v4679_v14 = vmul.f32 0.06666667, %v4678_v52 }
0x3b94   :  { %4696 = vrot.lane.b32.xlu1 %v4679_v14, %s5808_s8 }
0x3c06   :  { %v4697_v53 = vpop.permute.xlu1 %4696 }
0x3c07   :  { %4999 = vmatmul.mubr.msk.f32.vlgmr.msra.gmra.mrb[40].mxu0 %vm1085_vm4, %v4697_v53 }
0x3cda   :  { %v4766_v1 = vpop.f32.mrb[40].mxu0 }
0x3cdb   :  { %v4767_v28 = vadd.f32 %v4945_v41, %v4766_v1  ;;  %v5000_v56 = vpop.f32.mrb[41].mxu0 }
0x3cdd   :  { %v4770_v31 = vmax.f32 %v4767_v28, 0.0 }
0x3cdf   :  { %5010 = vmatmul.mubr.msk.f32.vlgmr.msra.gmra.mrb[40].mxu1 %vm1083_vm3, %v4770_v31 }
0x3db2   :  { %v4851_v20 = vpop.f32.mrb[40].mxu1 }
0x3db3   :  { %v4852_v59 = vadd.f32 %v4947_v51, %v4851_v20  ;;  %v5011_v40 = vpop.f32.mrb[41].mxu1 }
0x3db5   :  { %4856 = vst.msk [vmem:[#allocation7] sm:$0x3] %vm4855_vm7, %v4852_v59 }
0x3db6   :  { %5783 = shalt.err (!%p5780_p6)
}
0x3db7   :  { %s5784_s28 = scalar_lea.hbm %s7587_s17, 32 }
0x3db8   :  { %p5785_p7 = scmp.ne.s32.totalorder %s7587_s17, %s5784_s28  ;;  %p5788_p8 = scmp.lt.u32.totalorder %s5784_s28, %s7587_s17 }
0x3dba   :  { %p5790_p9 = pnand %p5788_p8, %p5785_p7 }
0x3dbc   :  { %5793 = shalt.err (!%p5790_p9)
}
0x3dbd   :  { %4866 = dma.vmem_to_hbm [thread:$0]  %s4864_s26, 32, %s7587_s17, [#allocation4]  }
0x3dbe   :  { %5798 = dma.done.wait [#allocation4], 32  }
0x3dbf   :  { %5799 = vsyncadd [#allocation4], 4294967264 }
0x3dc0   :  { %4870 = vsyncpa [#allocation3], 1 }
0x3dc1   :  { %4871 = vsyncpa [#allocation6], 1 }
0x3dc2   :  { %4872 = vsyncpa [#allocation4], 1 }

</bundles_post_ra>
